<compile_context>
chip_gen: v6e
topology: v6e:2x2x1
jax: 0.10.0
libtpu: 0.0.40
codegen_flags: <defaults>
</compile_context>

<pallas_src>
import numpy as np
import jax
import jax.numpy as jnp
from jax.experimental import pallas as pl
from jax.experimental.pallas import tpu as pltpu

# ---------------- configuration (small shapes consistent with the module) -----
B = 2
H = 8
W = 8
C = 32                     # dim
NUM_HEADS = 4
HEAD_DIM = C // NUM_HEADS
WS = 4                     # window_size
SHIFT = 2                  # shift_size (SW-MSA path, exercises the attn mask)
MLP_RATIO = 4.0
MLP_HIDDEN = int(C * MLP_RATIO)   # 128
L = H * W                  # tokens per image (64)
N = WS * WS                # tokens per window (16)
NW = (H // WS) * (W // WS) # windows per image (4)
BL = B * L                 # tokens per slab (128) — whole batch in one grid step
VEC_ROWS = 10
NEG_INF = -1e9


# ------------------------------ fused Pallas kernel ----------------------------
def swin_block_kernel(x_ref, perm_ref, iperm_ref, seg_ref, mb_ref,
                      qw_ref, kw_ref, vw_ref, proj_w_ref,
                      fc1_w_ref, fc2_w_ref, vec_ref, o_ref):
    # packed small vectors: rows are 128-lane padded, slices at lane offset 0
    vec = vec_ref[...]                                      # (VEC_ROWS, 128)
    q_b    = vec[0:1, :C]
    v_b    = vec[1:2, :C]
    ls_v   = vec[2:3, :C]     # per-channel logit scale (head value repeated over 8 lanes)
    proj_b = vec[3:4, :C]
    g1     = vec[4:5, :C]
    b1     = vec[5:6, :C]
    g2     = vec[6:7, :C]
    b2     = vec[7:8, :C]
    fc2_b  = vec[8:9, :C]
    fc1_b  = vec[9:10, :]                                   # full 128-wide row

    # ---- cyclic shift + window partition for both images (block-diag permutation matmul)
    xw = jnp.dot(perm_ref[...], x_ref[...],
                 preferred_element_type=jnp.float32)        # (BL, C) window layout

    # ---- separate Q/K/V projections (no lane-offset slices of a fused 3C output)
    q = jnp.dot(xw, qw_ref[...], preferred_element_type=jnp.float32) + q_b
    k = jnp.dot(xw, kw_ref[...], preferred_element_type=jnp.float32)
    v = jnp.dot(xw, vw_ref[...], preferred_element_type=jnp.float32) + v_b

    # ---- cosine-attention normalization, all heads at once:
    # per-head sum-of-squares via one block-diagonal ones matmul (q and k stacked),
    # rsqrt on the EUP; F.normalize eps=1e-12 -> clamp ss at 1e-24.
    ss = jnp.dot(jnp.concatenate([q * q, k * k], axis=0), seg_ref[...],
                 preferred_element_type=jnp.float32)        # (2*BL, C)
    qn = q * jax.lax.rsqrt(jnp.maximum(ss[:BL], 1e-24)) * ls_v   # logit scale folded into q
    kn = k * jax.lax.rsqrt(jnp.maximum(ss[BL:], 1e-24))
    knT = kn.T                                              # (C, BL), one hoisted transpose

    proj_w = proj_w_ref[...]                                # (C, C) pre-transposed

    # ---- per-head full-slab attention; mb already holds rel-bias + shift mask +
    # off-window/-image block mask + static softmax shift, so exp() directly.
    acc = jnp.zeros((BL, C), jnp.float32)
    for h in range(NUM_HEADS):
        lo = h * HEAD_DIM
        hi = lo + HEAD_DIM
        s = jnp.dot(qn[:, lo:hi], knT[lo:hi, :],
                    preferred_element_type=jnp.float32) + mb_ref[h]    # (BL, BL)
        e = jnp.exp(s)
        p = e * pl.reciprocal(jnp.sum(e, axis=-1, keepdims=True), approx=True)
        oh = jnp.dot(p, v[:, lo:hi], preferred_element_type=jnp.float32)   # (BL, hd)
        acc = acc + jnp.dot(oh, proj_w[lo:hi, :],
                            preferred_element_type=jnp.float32)
    attn_win = acc + proj_b                                 # (BL, C) window layout

    # ---- window reverse + un-shift (inverse block-diag permutation matmul)
    attn_sp = jnp.dot(iperm_ref[...], attn_win, preferred_element_type=jnp.float32)

    def layernorm(t, g, b):
        mu = jnp.mean(t, axis=-1, keepdims=True)
        var = jnp.mean((t - mu) * (t - mu), axis=-1, keepdims=True)
        return (t - mu) * jax.lax.rsqrt(var + 1e-5) * g + b

    # Swin-V2 post-norm residuals (drop_path / dropout = identity)
    x1 = x_ref[...] + layernorm(attn_sp, g1, b1)

    # MLP: fc1 -> exact GELU (erf) -> fc2 (weights pre-transposed)
    hdn = jnp.dot(x1, fc1_w_ref[...], preferred_element_type=jnp.float32) + fc1_b
    hdn = 0.5 * hdn * (1.0 + jax.lax.erf(hdn * 0.7071067811865476))
    m = jnp.dot(hdn, fc2_w_ref[...], preferred_element_type=jnp.float32) + fc2_b

    y = x1 + layernorm(m, g2, b2)
    o_ref[...] = y.astype(o_ref.dtype)


# ------------------------------ pallas_call wrapper ----------------------------
def swin_block_pallas(x_flat, perm, iperm, seg, mb, q_wT, k_wT, v_wT, proj_wT,
                      fc1_wT, fc2_wT, vecs):
    c2 = lambda shape: pl.BlockSpec(shape, lambda i: (0, 0))
    c3 = lambda shape: pl.BlockSpec(shape, lambda i: (0, 0, 0))
    return pl.pallas_call(
        swin_block_kernel,
        out_shape=jax.ShapeDtypeStruct((BL, C), x_flat.dtype),
        grid_spec=pltpu.PrefetchScalarGridSpec(
            num_scalar_prefetch=0,
            grid=(1,),                                      # whole batch in one step
            in_specs=[
                c2((BL, C)),                                # x (also shortcut)
                c2((BL, BL)),                               # block-diag perm (spatial -> window)
                c2((BL, BL)),                               # block-diag perm^T (window -> spatial)
                c2((C, C)),                                 # block-diag ones (head sum-of-squares)
                c3((NUM_HEADS, BL, BL)),                    # rel-bias + mask + shift constant
                c2((C, C)),                                 # q weight^T
                c2((C, C)),                                 # k weight^T
                c2((C, C)),                                 # v weight^T
                c2((C, C)),                                 # proj weight^T
                c2((C, MLP_HIDDEN)),                        # fc1 weight^T
                c2((MLP_HIDDEN, C)),                        # fc2 weight^T
                c2((VEC_ROWS, 128)),                        # packed small vectors
            ],
            out_specs=pl.BlockSpec((BL, C), lambda i: (0, 0)),
        ),
        compiler_params=pltpu.CompilerParams(dimension_semantics=("arbitrary",)),
    )(x_flat, perm, iperm, seg, mb, q_wT, k_wT, v_wT, proj_wT, fc1_wT, fc2_wT, vecs)


# ------------------------------ host-side constant builders --------------------
def window_partition_np(x, ws):
    b, h, w, c = x.shape
    x = x.reshape(b, h // ws, ws, w // ws, ws, c)
    return x.transpose(0, 1, 3, 2, 4, 5).reshape(-1, ws, ws, c)


def build_permutation_np():
    """P (L, L): window-ordered tokens = P @ spatial tokens (includes -SHIFT roll)."""
    P = np.zeros((L, L), np.float32)
    for i in range(H):
        for j in range(W):
            src = ((i + SHIFT) % H) * W + ((j + SHIFT) % W)
            win = (i // WS) * (W // WS) + (j // WS)
            tok = (i % WS) * WS + (j % WS)
            P[win * N + tok, src] = 1.0
    return P


def build_shift_mask_np():
    """(NW, N, N) SW-MSA shift mask (0 / -100), per window within one image."""
    if SHIFT == 0:
        return np.zeros((NW, N, N), np.float32)
    img_mask = np.zeros((1, H, W, 1), np.float32)
    slices = (slice(0, -WS), slice(-WS, -SHIFT), slice(-SHIFT, None))
    cnt = 0
    for hs in slices:
        for wsl in slices:
            img_mask[:, hs, wsl, :] = cnt
            cnt += 1
    mw = window_partition_np(img_mask, WS).reshape(-1, N)          # (NW, N)
    am = mw[:, None, :] - mw[:, :, None]                           # (NW, N, N)
    return np.where(am != 0, -100.0, 0.0).astype(np.float32)


def build_relative_position_bias(cpb_w1, cpb_b1, cpb_w2):
    """(num_heads, N, N): 16*sigmoid(cpb_mlp(log-spaced rel coords)) gathered by rel index."""
    rch = np.arange(-(WS - 1), WS, dtype=np.float32)
    rcw = np.arange(-(WS - 1), WS, dtype=np.float32)
    gh, gw = np.meshgrid(rch, rcw, indexing="ij")
    table = np.stack([gh, gw], axis=-1)[None].copy()
    table[..., 0] /= (WS - 1)
    table[..., 1] /= (WS - 1)
    table *= 8.0
    table = np.sign(table) * np.log2(np.abs(table) + 1.0) / np.log2(8.0)
    table = jnp.asarray(table, jnp.float32).reshape(-1, 2)         # ((2WS-1)^2, 2)

    # cpb_mlp: Linear(2,512)+ReLU, Linear(512,nh, no bias) — tiny param-only compute
    h1 = jnp.maximum(table @ cpb_w1.T + cpb_b1, 0.0)
    bias_table = h1 @ cpb_w2.T                                     # ((2WS-1)^2, nh)

    ch = np.arange(WS)
    cw = np.arange(WS)
    gy, gx = np.meshgrid(ch, cw, indexing="ij")
    coords = np.stack([gy, gx]).reshape(2, -1)                     # (2, N)
    rel = coords[:, :, None] - coords[:, None, :]                  # (2, N, N)
    rel = rel.transpose(1, 2, 0).copy()
    rel[..., 0] += WS - 1
    rel[..., 1] += WS - 1
    rel[..., 0] *= 2 * WS - 1
    rpi = rel.sum(-1).reshape(-1)                                  # (N*N,)

    rpb = bias_table[jnp.asarray(rpi)].reshape(N, N, NUM_HEADS).transpose(2, 0, 1)
    return 16.0 * jax.nn.sigmoid(rpb)                              # (nh, N, N)


def build_mask_bias(rel_bias, ls):
    """(NUM_HEADS, BL, BL): rel bias (per window) + shift mask + off-window/-image
    -1e9 block mask + static softmax shift (per-head score upper bound ls_h+16)."""
    bound = ls + 16.0                                              # (nh,)
    blocks = (rel_bias[:, None, :, :] + SHIFT_MASK_NP[None, :, :, :]
              - bound[:, None, None, None])                        # (nh, NW, N, N)
    mb = jnp.full((NUM_HEADS, BL, BL), NEG_INF, jnp.float32)
    for b in range(B):
        for w in range(NW):
            o = b * L + w * N
            mb = mb.at[:, o:o + N, o:o + N].set(blocks[:, w])
    return mb


# module-level constants (trace-time)
_P = build_permutation_np()
PERM_BL = jnp.asarray(np.kron(np.eye(B, dtype=np.float32), _P))        # (BL, BL)
IPERM_BL = jnp.asarray(np.kron(np.eye(B, dtype=np.float32), _P.T))     # (BL, BL)
SEG = jnp.asarray(np.kron(np.eye(NUM_HEADS, dtype=np.float32),
                          np.ones((HEAD_DIM, HEAD_DIM), np.float32)))  # (C, C)
SHIFT_MASK_NP = build_shift_mask_np()                                  # (NW, N, N)


def init_params(key):
    ks = jax.random.split(key, 12)
    w = lambda k, s, sc=0.02: (sc * jax.random.normal(k, s)).astype(jnp.float32)
    return dict(
        qkv_w=w(ks[0], (3 * C, C)),
        q_bias=w(ks[1], (C,)),
        v_bias=w(ks[2], (C,)),
        proj_w=w(ks[3], (C, C)),
        proj_b=w(ks[4], (C,)),
        logit_scale=jnp.log(10.0 * jnp.ones((NUM_HEADS, 1, 1), jnp.float32)),
        cpb_w1=w(ks[5], (512, 2)),
        cpb_b1=w(ks[6], (512,)),
        cpb_w2=w(ks[7], (NUM_HEADS, 512)),
        fc1_w=w(ks[8], (MLP_HIDDEN, C)),
        fc1_b=w(ks[9], (MLP_HIDDEN,)),
        fc2_w=w(ks[10], (C, MLP_HIDDEN)),
        fc2_b=w(ks[11], (C,)),
        norm1_g=jnp.ones((C,), jnp.float32),
        norm1_b=jnp.zeros((C,), jnp.float32),
        norm2_g=jnp.ones((C,), jnp.float32),
        norm2_b=jnp.zeros((C,), jnp.float32),
    )


def swin_block_forward(x, p):
    # derived attention constants (parameter-only, tiny; stays in plain JAX)
    ls = jnp.exp(jnp.minimum(p["logit_scale"], jnp.log(100.0))).reshape(NUM_HEADS)
    ls_vec = jnp.repeat(ls, HEAD_DIM)                              # (C,) per-channel scale
    rel_bias = build_relative_position_bias(p["cpb_w1"], p["cpb_b1"], p["cpb_w2"])
    mb = build_mask_bias(rel_bias, ls)                             # (nh, BL, BL)

    qkv_w = p["qkv_w"]                                             # (3C, C)
    q_wT = qkv_w[:C].T
    k_wT = qkv_w[C:2 * C].T
    v_wT = qkv_w[2 * C:].T

    pad128 = lambda v: jnp.pad(v.reshape(1, -1), ((0, 0), (0, 128 - v.shape[-1])))
    vecs = jnp.concatenate([
        pad128(p["q_bias"]), pad128(p["v_bias"]), pad128(ls_vec),
        pad128(p["proj_b"]), pad128(p["norm1_g"]), pad128(p["norm1_b"]),
        pad128(p["norm2_g"]), pad128(p["norm2_b"]), pad128(p["fc2_b"]),
        p["fc1_b"].reshape(1, MLP_HIDDEN)], axis=0)                # (VEC_ROWS, 128)

    y_flat = swin_block_pallas(
        x.reshape(BL, C), PERM_BL, IPERM_BL, SEG, mb,
        q_wT, k_wT, v_wT, p["proj_w"].T,
        p["fc1_w"].T, p["fc2_w"].T, vecs)
    return y_flat.reshape(B, L, C)


if __name__ == "__main__":
    key = jax.random.PRNGKey(0)
    kx, kp = jax.random.split(key)
    x = jax.random.normal(kx, (B, L, C), jnp.float32)   # (2, 64, 32)
    params = init_params(kp)

    out = jax.jit(swin_block_forward)(x, params)
    out = jax.block_until_ready(out)

    assert out.shape == (B, L, C), out.shape
    assert bool(jnp.all(jnp.isfinite(out)))
    print("KERNEL_OK")
</pallas_src>

<mosaic_0001>
module attributes {stable_mosaic.version = 11 : i64} {
  func.func @swin_block_kernel(%arg0: i32, %arg1: memref<128x32xf32, #tpu.memory_space<vmem>>, %arg2: memref<128x128xf32, #tpu.memory_space<vmem>>, %arg3: memref<128x128xf32, #tpu.memory_space<vmem>>, %arg4: memref<32x32xf32, #tpu.memory_space<vmem>>, %arg5: memref<4x128x128xf32, #tpu.memory_space<vmem>>, %arg6: memref<32x32xf32, #tpu.memory_space<vmem>>, %arg7: memref<32x32xf32, #tpu.memory_space<vmem>>, %arg8: memref<32x32xf32, #tpu.memory_space<vmem>>, %arg9: memref<32x32xf32, #tpu.memory_space<vmem>>, %arg10: memref<32x128xf32, #tpu.memory_space<vmem>>, %arg11: memref<128x32xf32, #tpu.memory_space<vmem>>, %arg12: memref<10x128xf32, #tpu.memory_space<vmem>>, %arg13: memref<128x32xf32, #tpu.memory_space<vmem>>) attributes {dimension_semantics = [#tpu.dimension_semantics<arbitrary>], iteration_bounds = array<i64: 1>, scalar_prefetch = 0 : i64, scratch_operands = 0 : i64, tpu.core_type = #tpu.core_type<tc>, window_params = [{pipeline_mode = #tpu.pipeline_mode<synchronous>, transform_indices = @transform_0, window_bounds = array<i64: 128, 32>}, {pipeline_mode = #tpu.pipeline_mode<synchronous>, transform_indices = @transform_1, window_bounds = array<i64: 128, 128>}, {pipeline_mode = #tpu.pipeline_mode<synchronous>, transform_indices = @transform_2, window_bounds = array<i64: 128, 128>}, {pipeline_mode = #tpu.pipeline_mode<synchronous>, transform_indices = @transform_3, window_bounds = array<i64: 32, 32>}, {pipeline_mode = #tpu.pipeline_mode<synchronous>, transform_indices = @transform_4, window_bounds = array<i64: 4, 128, 128>}, {pipeline_mode = #tpu.pipeline_mode<synchronous>, transform_indices = @transform_5, window_bounds = array<i64: 32, 32>}, {pipeline_mode = #tpu.pipeline_mode<synchronous>, transform_indices = @transform_6, window_bounds = array<i64: 32, 32>}, {pipeline_mode = #tpu.pipeline_mode<synchronous>, transform_indices = @transform_7, window_bounds = array<i64: 32, 32>}, {pipeline_mode = #tpu.pipeline_mode<synchronous>, transform_indices = @transform_8, window_bounds = array<i64: 32, 32>}, {pipeline_mode = #tpu.pipeline_mode<synchronous>, transform_indices = @transform_9, window_bounds = array<i64: 32, 128>}, {pipeline_mode = #tpu.pipeline_mode<synchronous>, transform_indices = @transform_10, window_bounds = array<i64: 128, 32>}, {pipeline_mode = #tpu.pipeline_mode<synchronous>, transform_indices = @transform_11, window_bounds = array<i64: 10, 128>}, {pipeline_mode = #tpu.pipeline_mode<synchronous>, transform_indices = @transform_12, window_bounds = array<i64: 128, 32>}]} {
    %c0 = arith.constant 0 : index
    %c0_0 = arith.constant 0 : index
    %0 = vector.load %arg12[%c0, %c0_0] : memref<10x128xf32, #tpu.memory_space<vmem>>, vector<10x128xf32>
    %1 = vector.extract_strided_slice %0 {offsets = [0, 0], sizes = [1, 32], strides = [1, 1]} : vector<10x128xf32> to vector<1x32xf32>
    %2 = vector.extract_strided_slice %0 {offsets = [1, 0], sizes = [1, 32], strides = [1, 1]} : vector<10x128xf32> to vector<1x32xf32>
    %3 = vector.extract_strided_slice %0 {offsets = [2, 0], sizes = [1, 32], strides = [1, 1]} : vector<10x128xf32> to vector<1x32xf32>
    %4 = vector.extract_strided_slice %0 {offsets = [3, 0], sizes = [1, 32], strides = [1, 1]} : vector<10x128xf32> to vector<1x32xf32>
    %5 = vector.extract_strided_slice %0 {offsets = [4, 0], sizes = [1, 32], strides = [1, 1]} : vector<10x128xf32> to vector<1x32xf32>
    %6 = vector.extract_strided_slice %0 {offsets = [5, 0], sizes = [1, 32], strides = [1, 1]} : vector<10x128xf32> to vector<1x32xf32>
    %7 = vector.extract_strided_slice %0 {offsets = [6, 0], sizes = [1, 32], strides = [1, 1]} : vector<10x128xf32> to vector<1x32xf32>
    %8 = vector.extract_strided_slice %0 {offsets = [7, 0], sizes = [1, 32], strides = [1, 1]} : vector<10x128xf32> to vector<1x32xf32>
    %9 = vector.extract_strided_slice %0 {offsets = [8, 0], sizes = [1, 32], strides = [1, 1]} : vector<10x128xf32> to vector<1x32xf32>
    %10 = vector.extract_strided_slice %0 {offsets = [9, 0], sizes = [1, 128], strides = [1, 1]} : vector<10x128xf32> to vector<1x128xf32>
    %c0_1 = arith.constant 0 : index
    %c0_2 = arith.constant 0 : index
    %11 = vector.load %arg2[%c0_1, %c0_2] : memref<128x128xf32, #tpu.memory_space<vmem>>, vector<128x128xf32>
    %c0_3 = arith.constant 0 : index
    %c0_4 = arith.constant 0 : index
    %12 = vector.load %arg1[%c0_3, %c0_4] : memref<128x32xf32, #tpu.memory_space<vmem>>, vector<128x32xf32>
    %cst = arith.constant dense<0.000000e+00> : vector<128x32xf32>
    %13 = tpu.matmul %11, %12, %cst {dimension_numbers = #tpu.dot_dimension_numbers<[1], [0], [0], [1], [0, 0, 1, 1], [], []>} : vector<128x128xf32>, vector<128x32xf32>, vector<128x32xf32> -> vector<128x32xf32>
    %c0_5 = arith.constant 0 : index
    %c0_6 = arith.constant 0 : index
    %14 = vector.load %arg6[%c0_5, %c0_6] : memref<32x32xf32, #tpu.memory_space<vmem>>, vector<32x32xf32>
    %cst_7 = arith.constant dense<0.000000e+00> : vector<128x32xf32>
    %15 = tpu.matmul %13, %14, %cst_7 {dimension_numbers = #tpu.dot_dimension_numbers<[1], [0], [0], [1], [0, 0, 1, 1], [], []>} : vector<128x32xf32>, vector<32x32xf32>, vector<128x32xf32> -> vector<128x32xf32>
    %16 = vector.broadcast %1 : vector<1x32xf32> to vector<128x32xf32>
    %17 = arith.addf %15, %16 : vector<128x32xf32>
    %c0_8 = arith.constant 0 : index
    %c0_9 = arith.constant 0 : index
    %18 = vector.load %arg7[%c0_8, %c0_9] : memref<32x32xf32, #tpu.memory_space<vmem>>, vector<32x32xf32>
    %cst_10 = arith.constant dense<0.000000e+00> : vector<128x32xf32>
    %19 = tpu.matmul %13, %18, %cst_10 {dimension_numbers = #tpu.dot_dimension_numbers<[1], [0], [0], [1], [0, 0, 1, 1], [], []>} : vector<128x32xf32>, vector<32x32xf32>, vector<128x32xf32> -> vector<128x32xf32>
    %c0_11 = arith.constant 0 : index
    %c0_12 = arith.constant 0 : index
    %20 = vector.load %arg8[%c0_11, %c0_12] : memref<32x32xf32, #tpu.memory_space<vmem>>, vector<32x32xf32>
    %cst_13 = arith.constant dense<0.000000e+00> : vector<128x32xf32>
    %21 = tpu.matmul %13, %20, %cst_13 {dimension_numbers = #tpu.dot_dimension_numbers<[1], [0], [0], [1], [0, 0, 1, 1], [], []>} : vector<128x32xf32>, vector<32x32xf32>, vector<128x32xf32> -> vector<128x32xf32>
    %22 = vector.broadcast %2 : vector<1x32xf32> to vector<128x32xf32>
    %23 = arith.addf %21, %22 : vector<128x32xf32>
    %24 = arith.mulf %17, %17 : vector<128x32xf32>
    %25 = arith.mulf %19, %19 : vector<128x32xf32>
    %26 = tpu.concatenate %24, %25 in 0 : vector<128x32xf32>, vector<128x32xf32> -> vector<256x32xf32>
    %c0_14 = arith.constant 0 : index
    %c0_15 = arith.constant 0 : index
    %27 = vector.load %arg4[%c0_14, %c0_15] : memref<32x32xf32, #tpu.memory_space<vmem>>, vector<32x32xf32>
    %cst_16 = arith.constant dense<0.000000e+00> : vector<256x32xf32>
    %28 = tpu.matmul %26, %27, %cst_16 {dimension_numbers = #tpu.dot_dimension_numbers<[1], [0], [0], [1], [0, 0, 1, 1], [], []>} : vector<256x32xf32>, vector<32x32xf32>, vector<256x32xf32> -> vector<256x32xf32>
    %29 = vector.extract_strided_slice %28 {offsets = [0, 0], sizes = [128, 32], strides = [1, 1]} : vector<256x32xf32> to vector<128x32xf32>
    %cst_17 = arith.constant 1.000000e-24 : f32
    %30 = vector.broadcast %cst_17 : f32 to vector<128x32xf32>
    %31 = arith.maximumf %29, %30 : vector<128x32xf32>
    %32 = math.rsqrt %31 : vector<128x32xf32>
    %33 = arith.mulf %17, %32 : vector<128x32xf32>
    %34 = vector.broadcast %3 : vector<1x32xf32> to vector<128x32xf32>
    %35 = arith.mulf %33, %34 : vector<128x32xf32>
    %36 = vector.extract_strided_slice %28 {offsets = [128, 0], sizes = [128, 32], strides = [1, 1]} : vector<256x32xf32> to vector<128x32xf32>
    %cst_18 = arith.constant 1.000000e-24 : f32
    %37 = vector.broadcast %cst_18 : f32 to vector<128x32xf32>
    %38 = arith.maximumf %36, %37 : vector<128x32xf32>
    %39 = math.rsqrt %38 : vector<128x32xf32>
    %40 = arith.mulf %19, %39 : vector<128x32xf32>
    %41 = tpu.transpose %40, [1, 0] : vector<128x32xf32> -> vector<32x128xf32>
    %c0_19 = arith.constant 0 : index
    %c0_20 = arith.constant 0 : index
    %42 = vector.load %arg9[%c0_19, %c0_20] : memref<32x32xf32, #tpu.memory_space<vmem>>, vector<32x32xf32>
    %cst_21 = arith.constant 0.000000e+00 : f32
    %43 = vector.broadcast %cst_21 : f32 to vector<128x32xf32>
    %44 = vector.extract_strided_slice %35 {offsets = [0, 0], sizes = [128, 8], strides = [1, 1]} : vector<128x32xf32> to vector<128x8xf32>
    %45 = vector.extract_strided_slice %41 {offsets = [0, 0], sizes = [8, 128], strides = [1, 1]} : vector<32x128xf32> to vector<8x128xf32>
    %cst_22 = arith.constant dense<0.000000e+00> : vector<128x128xf32>
    %46 = tpu.matmul %44, %45, %cst_22 {dimension_numbers = #tpu.dot_dimension_numbers<[1], [0], [0], [1], [0, 0, 1, 1], [], []>} : vector<128x8xf32>, vector<8x128xf32>, vector<128x128xf32> -> vector<128x128xf32>
    %c0_23 = arith.constant 0 : index
    %c0_24 = arith.constant 0 : index
    %c0_25 = arith.constant 0 : index
    %47 = vector.load %arg5[%c0_23, %c0_24, %c0_25] : memref<4x128x128xf32, #tpu.memory_space<vmem>>, vector<1x128x128xf32>
    %48 = vector.shape_cast %47 : vector<1x128x128xf32> to vector<128x128xf32>
    %49 = arith.addf %46, %48 : vector<128x128xf32>
    %50 = math.exp %49 : vector<128x128xf32>
    %cst_26 = arith.constant dense<0.000000e+00> : vector<128xf32>
    %51 = vector.multi_reduction <add>, %50, %cst_26 [1] : vector<128x128xf32> to vector<128xf32>
    %52 = vector.shape_cast %51 : vector<128xf32> to vector<128x1xf32>
    %53 = tpu.reciprocal %52 {approx = true} : vector<128x1xf32> -> vector<128x1xf32>
    %54 = vector.broadcast %53 : vector<128x1xf32> to vector<128x128xf32>
    %55 = arith.mulf %50, %54 : vector<128x128xf32>
    %56 = vector.extract_strided_slice %23 {offsets = [0, 0], sizes = [128, 8], strides = [1, 1]} : vector<128x32xf32> to vector<128x8xf32>
    %cst_27 = arith.constant dense<0.000000e+00> : vector<128x8xf32>
    %57 = tpu.matmul %55, %56, %cst_27 {dimension_numbers = #tpu.dot_dimension_numbers<[1], [0], [0], [1], [0, 0, 1, 1], [], []>} : vector<128x128xf32>, vector<128x8xf32>, vector<128x8xf32> -> vector<128x8xf32>
    %58 = vector.extract_strided_slice %42 {offsets = [0, 0], sizes = [8, 32], strides = [1, 1]} : vector<32x32xf32> to vector<8x32xf32>
    %cst_28 = arith.constant dense<0.000000e+00> : vector<128x32xf32>
    %59 = tpu.matmul %57, %58, %cst_28 {dimension_numbers = #tpu.dot_dimension_numbers<[1], [0], [0], [1], [0, 0, 1, 1], [], []>} : vector<128x8xf32>, vector<8x32xf32>, vector<128x32xf32> -> vector<128x32xf32>
    %60 = arith.addf %43, %59 : vector<128x32xf32>
    %61 = vector.extract_strided_slice %35 {offsets = [0, 8], sizes = [128, 8], strides = [1, 1]} : vector<128x32xf32> to vector<128x8xf32>
    %62 = vector.extract_strided_slice %41 {offsets = [8, 0], sizes = [8, 128], strides = [1, 1]} : vector<32x128xf32> to vector<8x128xf32>
    %cst_29 = arith.constant dense<0.000000e+00> : vector<128x128xf32>
    %63 = tpu.matmul %61, %62, %cst_29 {dimension_numbers = #tpu.dot_dimension_numbers<[1], [0], [0], [1], [0, 0, 1, 1], [], []>} : vector<128x8xf32>, vector<8x128xf32>, vector<128x128xf32> -> vector<128x128xf32>
    %c1 = arith.constant 1 : index
    %c0_30 = arith.constant 0 : index
    %c0_31 = arith.constant 0 : index
    %64 = vector.load %arg5[%c1, %c0_30, %c0_31] : memref<4x128x128xf32, #tpu.memory_space<vmem>>, vector<1x128x128xf32>
    %65 = vector.shape_cast %64 : vector<1x128x128xf32> to vector<128x128xf32>
    %66 = arith.addf %63, %65 : vector<128x128xf32>
    %67 = math.exp %66 : vector<128x128xf32>
    %cst_32 = arith.constant dense<0.000000e+00> : vector<128xf32>
    %68 = vector.multi_reduction <add>, %67, %cst_32 [1] : vector<128x128xf32> to vector<128xf32>
    %69 = vector.shape_cast %68 : vector<128xf32> to vector<128x1xf32>
    %70 = tpu.reciprocal %69 {approx = true} : vector<128x1xf32> -> vector<128x1xf32>
    %71 = vector.broadcast %70 : vector<128x1xf32> to vector<128x128xf32>
    %72 = arith.mulf %67, %71 : vector<128x128xf32>
    %73 = vector.extract_strided_slice %23 {offsets = [0, 8], sizes = [128, 8], strides = [1, 1]} : vector<128x32xf32> to vector<128x8xf32>
    %cst_33 = arith.constant dense<0.000000e+00> : vector<128x8xf32>
    %74 = tpu.matmul %72, %73, %cst_33 {dimension_numbers = #tpu.dot_dimension_numbers<[1], [0], [0], [1], [0, 0, 1, 1], [], []>} : vector<128x128xf32>, vector<128x8xf32>, vector<128x8xf32> -> vector<128x8xf32>
    %75 = vector.extract_strided_slice %42 {offsets = [8, 0], sizes = [8, 32], strides = [1, 1]} : vector<32x32xf32> to vector<8x32xf32>
    %cst_34 = arith.constant dense<0.000000e+00> : vector<128x32xf32>
    %76 = tpu.matmul %74, %75, %cst_34 {dimension_numbers = #tpu.dot_dimension_numbers<[1], [0], [0], [1], [0, 0, 1, 1], [], []>} : vector<128x8xf32>, vector<8x32xf32>, vector<128x32xf32> -> vector<128x32xf32>
    %77 = arith.addf %60, %76 : vector<128x32xf32>
    %78 = vector.extract_strided_slice %35 {offsets = [0, 16], sizes = [128, 8], strides = [1, 1]} : vector<128x32xf32> to vector<128x8xf32>
    %79 = vector.extract_strided_slice %41 {offsets = [16, 0], sizes = [8, 128], strides = [1, 1]} : vector<32x128xf32> to vector<8x128xf32>
    %cst_35 = arith.constant dense<0.000000e+00> : vector<128x128xf32>
    %80 = tpu.matmul %78, %79, %cst_35 {dimension_numbers = #tpu.dot_dimension_numbers<[1], [0], [0], [1], [0, 0, 1, 1], [], []>} : vector<128x8xf32>, vector<8x128xf32>, vector<128x128xf32> -> vector<128x128xf32>
    %c2 = arith.constant 2 : index
    %c0_36 = arith.constant 0 : index
    %c0_37 = arith.constant 0 : index
    %81 = vector.load %arg5[%c2, %c0_36, %c0_37] : memref<4x128x128xf32, #tpu.memory_space<vmem>>, vector<1x128x128xf32>
    %82 = vector.shape_cast %81 : vector<1x128x128xf32> to vector<128x128xf32>
    %83 = arith.addf %80, %82 : vector<128x128xf32>
    %84 = math.exp %83 : vector<128x128xf32>
    %cst_38 = arith.constant dense<0.000000e+00> : vector<128xf32>
    %85 = vector.multi_reduction <add>, %84, %cst_38 [1] : vector<128x128xf32> to vector<128xf32>
    %86 = vector.shape_cast %85 : vector<128xf32> to vector<128x1xf32>
    %87 = tpu.reciprocal %86 {approx = true} : vector<128x1xf32> -> vector<128x1xf32>
    %88 = vector.broadcast %87 : vector<128x1xf32> to vector<128x128xf32>
    %89 = arith.mulf %84, %88 : vector<128x128xf32>
    %90 = vector.extract_strided_slice %23 {offsets = [0, 16], sizes = [128, 8], strides = [1, 1]} : vector<128x32xf32> to vector<128x8xf32>
    %cst_39 = arith.constant dense<0.000000e+00> : vector<128x8xf32>
    %91 = tpu.matmul %89, %90, %cst_39 {dimension_numbers = #tpu.dot_dimension_numbers<[1], [0], [0], [1], [0, 0, 1, 1], [], []>} : vector<128x128xf32>, vector<128x8xf32>, vector<128x8xf32> -> vector<128x8xf32>
    %92 = vector.extract_strided_slice %42 {offsets = [16, 0], sizes = [8, 32], strides = [1, 1]} : vector<32x32xf32> to vector<8x32xf32>
    %cst_40 = arith.constant dense<0.000000e+00> : vector<128x32xf32>
    %93 = tpu.matmul %91, %92, %cst_40 {dimension_numbers = #tpu.dot_dimension_numbers<[1], [0], [0], [1], [0, 0, 1, 1], [], []>} : vector<128x8xf32>, vector<8x32xf32>, vector<128x32xf32> -> vector<128x32xf32>
    %94 = arith.addf %77, %93 : vector<128x32xf32>
    %95 = vector.extract_strided_slice %35 {offsets = [0, 24], sizes = [128, 8], strides = [1, 1]} : vector<128x32xf32> to vector<128x8xf32>
    %96 = vector.extract_strided_slice %41 {offsets = [24, 0], sizes = [8, 128], strides = [1, 1]} : vector<32x128xf32> to vector<8x128xf32>
    %cst_41 = arith.constant dense<0.000000e+00> : vector<128x128xf32>
    %97 = tpu.matmul %95, %96, %cst_41 {dimension_numbers = #tpu.dot_dimension_numbers<[1], [0], [0], [1], [0, 0, 1, 1], [], []>} : vector<128x8xf32>, vector<8x128xf32>, vector<128x128xf32> -> vector<128x128xf32>
    %c3 = arith.constant 3 : index
    %c0_42 = arith.constant 0 : index
    %c0_43 = arith.constant 0 : index
    %98 = vector.load %arg5[%c3, %c0_42, %c0_43] : memref<4x128x128xf32, #tpu.memory_space<vmem>>, vector<1x128x128xf32>
    %99 = vector.shape_cast %98 : vector<1x128x128xf32> to vector<128x128xf32>
    %100 = arith.addf %97, %99 : vector<128x128xf32>
    %101 = math.exp %100 : vector<128x128xf32>
    %cst_44 = arith.constant dense<0.000000e+00> : vector<128xf32>
    %102 = vector.multi_reduction <add>, %101, %cst_44 [1] : vector<128x128xf32> to vector<128xf32>
    %103 = vector.shape_cast %102 : vector<128xf32> to vector<128x1xf32>
    %104 = tpu.reciprocal %103 {approx = true} : vector<128x1xf32> -> vector<128x1xf32>
    %105 = vector.broadcast %104 : vector<128x1xf32> to vector<128x128xf32>
    %106 = arith.mulf %101, %105 : vector<128x128xf32>
    %107 = vector.extract_strided_slice %23 {offsets = [0, 24], sizes = [128, 8], strides = [1, 1]} : vector<128x32xf32> to vector<128x8xf32>
    %cst_45 = arith.constant dense<0.000000e+00> : vector<128x8xf32>
    %108 = tpu.matmul %106, %107, %cst_45 {dimension_numbers = #tpu.dot_dimension_numbers<[1], [0], [0], [1], [0, 0, 1, 1], [], []>} : vector<128x128xf32>, vector<128x8xf32>, vector<128x8xf32> -> vector<128x8xf32>
    %109 = vector.extract_strided_slice %42 {offsets = [24, 0], sizes = [8, 32], strides = [1, 1]} : vector<32x32xf32> to vector<8x32xf32>
    %cst_46 = arith.constant dense<0.000000e+00> : vector<128x32xf32>
    %110 = tpu.matmul %108, %109, %cst_46 {dimension_numbers = #tpu.dot_dimension_numbers<[1], [0], [0], [1], [0, 0, 1, 1], [], []>} : vector<128x8xf32>, vector<8x32xf32>, vector<128x32xf32> -> vector<128x32xf32>
    %111 = arith.addf %94, %110 : vector<128x32xf32>
    %112 = vector.broadcast %4 : vector<1x32xf32> to vector<128x32xf32>
    %113 = arith.addf %111, %112 : vector<128x32xf32>
    %c0_47 = arith.constant 0 : index
    %c0_48 = arith.constant 0 : index
    %114 = vector.load %arg3[%c0_47, %c0_48] : memref<128x128xf32, #tpu.memory_space<vmem>>, vector<128x128xf32>
    %cst_49 = arith.constant dense<0.000000e+00> : vector<128x32xf32>
    %115 = tpu.matmul %114, %113, %cst_49 {dimension_numbers = #tpu.dot_dimension_numbers<[1], [0], [0], [1], [0, 0, 1, 1], [], []>} : vector<128x128xf32>, vector<128x32xf32>, vector<128x32xf32> -> vector<128x32xf32>
    %c0_50 = arith.constant 0 : index
    %c0_51 = arith.constant 0 : index
    %116 = vector.load %arg1[%c0_50, %c0_51] : memref<128x32xf32, #tpu.memory_space<vmem>>, vector<128x32xf32>
    %cst_52 = arith.constant dense<0.000000e+00> : vector<128xf32>
    %117 = vector.multi_reduction <add>, %115, %cst_52 [1] : vector<128x32xf32> to vector<128xf32>
    %118 = vector.shape_cast %117 : vector<128xf32> to vector<128x1xf32>
    %cst_53 = arith.constant 3.200000e+01 : f32
    %119 = vector.broadcast %cst_53 : f32 to vector<128x1xf32>
    %120 = arith.divf %118, %119 : vector<128x1xf32>
    %121 = vector.broadcast %120 : vector<128x1xf32> to vector<128x32xf32>
    %122 = arith.subf %115, %121 : vector<128x32xf32>
    %123 = vector.broadcast %120 : vector<128x1xf32> to vector<128x32xf32>
    %124 = arith.subf %115, %123 : vector<128x32xf32>
    %125 = arith.mulf %122, %124 : vector<128x32xf32>
    %cst_54 = arith.constant dense<0.000000e+00> : vector<128xf32>
    %126 = vector.multi_reduction <add>, %125, %cst_54 [1] : vector<128x32xf32> to vector<128xf32>
    %127 = vector.shape_cast %126 : vector<128xf32> to vector<128x1xf32>
    %cst_55 = arith.constant 3.200000e+01 : f32
    %128 = vector.broadcast %cst_55 : f32 to vector<128x1xf32>
    %129 = arith.divf %127, %128 : vector<128x1xf32>
    %130 = vector.broadcast %120 : vector<128x1xf32> to vector<128x32xf32>
    %131 = arith.subf %115, %130 : vector<128x32xf32>
    %cst_56 = arith.constant 9.99999974E-6 : f32
    %132 = vector.broadcast %cst_56 : f32 to vector<128x1xf32>
    %133 = arith.addf %129, %132 : vector<128x1xf32>
    %134 = math.rsqrt %133 : vector<128x1xf32>
    %135 = vector.broadcast %134 : vector<128x1xf32> to vector<128x32xf32>
    %136 = arith.mulf %131, %135 : vector<128x32xf32>
    %137 = vector.broadcast %5 : vector<1x32xf32> to vector<128x32xf32>
    %138 = arith.mulf %136, %137 : vector<128x32xf32>
    %139 = vector.broadcast %6 : vector<1x32xf32> to vector<128x32xf32>
    %140 = arith.addf %138, %139 : vector<128x32xf32>
    %141 = arith.addf %116, %140 : vector<128x32xf32>
    %c0_57 = arith.constant 0 : index
    %c0_58 = arith.constant 0 : index
    %142 = vector.load %arg10[%c0_57, %c0_58] : memref<32x128xf32, #tpu.memory_space<vmem>>, vector<32x128xf32>
    %cst_59 = arith.constant dense<0.000000e+00> : vector<128x128xf32>
    %143 = tpu.matmul %141, %142, %cst_59 {dimension_numbers = #tpu.dot_dimension_numbers<[1], [0], [0], [1], [0, 0, 1, 1], [], []>} : vector<128x32xf32>, vector<32x128xf32>, vector<128x128xf32> -> vector<128x128xf32>
    %144 = vector.broadcast %10 : vector<1x128xf32> to vector<128x128xf32>
    %145 = arith.addf %143, %144 : vector<128x128xf32>
    %cst_60 = arith.constant 5.000000e-01 : f32
    %146 = vector.broadcast %cst_60 : f32 to vector<128x128xf32>
    %147 = arith.mulf %146, %145 : vector<128x128xf32>
    %cst_61 = arith.constant 0.707106769 : f32
    %148 = vector.broadcast %cst_61 : f32 to vector<128x128xf32>
    %149 = arith.mulf %145, %148 : vector<128x128xf32>
    %150 = math.erf %149 : vector<128x128xf32>
    %cst_62 = arith.constant 1.000000e+00 : f32
    %151 = vector.broadcast %cst_62 : f32 to vector<128x128xf32>
    %152 = arith.addf %151, %150 : vector<128x128xf32>
    %153 = arith.mulf %147, %152 : vector<128x128xf32>
    %c0_63 = arith.constant 0 : index
    %c0_64 = arith.constant 0 : index
    %154 = vector.load %arg11[%c0_63, %c0_64] : memref<128x32xf32, #tpu.memory_space<vmem>>, vector<128x32xf32>
    %cst_65 = arith.constant dense<0.000000e+00> : vector<128x32xf32>
    %155 = tpu.matmul %153, %154, %cst_65 {dimension_numbers = #tpu.dot_dimension_numbers<[1], [0], [0], [1], [0, 0, 1, 1], [], []>} : vector<128x128xf32>, vector<128x32xf32>, vector<128x32xf32> -> vector<128x32xf32>
    %156 = vector.broadcast %9 : vector<1x32xf32> to vector<128x32xf32>
    %157 = arith.addf %155, %156 : vector<128x32xf32>
    %cst_66 = arith.constant dense<0.000000e+00> : vector<128xf32>
    %158 = vector.multi_reduction <add>, %157, %cst_66 [1] : vector<128x32xf32> to vector<128xf32>
    %159 = vector.shape_cast %158 : vector<128xf32> to vector<128x1xf32>
    %cst_67 = arith.constant 3.200000e+01 : f32
    %160 = vector.broadcast %cst_67 : f32 to vector<128x1xf32>
    %161 = arith.divf %159, %160 : vector<128x1xf32>
    %162 = vector.broadcast %161 : vector<128x1xf32> to vector<128x32xf32>
    %163 = arith.subf %157, %162 : vector<128x32xf32>
    %164 = vector.broadcast %161 : vector<128x1xf32> to vector<128x32xf32>
    %165 = arith.subf %157, %164 : vector<128x32xf32>
    %166 = arith.mulf %163, %165 : vector<128x32xf32>
    %cst_68 = arith.constant dense<0.000000e+00> : vector<128xf32>
    %167 = vector.multi_reduction <add>, %166, %cst_68 [1] : vector<128x32xf32> to vector<128xf32>
    %168 = vector.shape_cast %167 : vector<128xf32> to vector<128x1xf32>
    %cst_69 = arith.constant 3.200000e+01 : f32
    %169 = vector.broadcast %cst_69 : f32 to vector<128x1xf32>
    %170 = arith.divf %168, %169 : vector<128x1xf32>
    %171 = vector.broadcast %161 : vector<128x1xf32> to vector<128x32xf32>
    %172 = arith.subf %157, %171 : vector<128x32xf32>
    %cst_70 = arith.constant 9.99999974E-6 : f32
    %173 = vector.broadcast %cst_70 : f32 to vector<128x1xf32>
    %174 = arith.addf %170, %173 : vector<128x1xf32>
    %175 = math.rsqrt %174 : vector<128x1xf32>
    %176 = vector.broadcast %175 : vector<128x1xf32> to vector<128x32xf32>
    %177 = arith.mulf %172, %176 : vector<128x32xf32>
    %178 = vector.broadcast %7 : vector<1x32xf32> to vector<128x32xf32>
    %179 = arith.mulf %177, %178 : vector<128x32xf32>
    %180 = vector.broadcast %8 : vector<1x32xf32> to vector<128x32xf32>
    %181 = arith.addf %179, %180 : vector<128x32xf32>
    %182 = arith.addf %141, %181 : vector<128x32xf32>
    %c0_71 = arith.constant 0 : index
    %c0_72 = arith.constant 0 : index
    %183 = vector.load %arg13[%c0_71, %c0_72] : memref<128x32xf32, #tpu.memory_space<vmem>>, vector<128x32xf32>
    tpu.vector_store %arg13[%c0_71, %c0_72], %182 {strides = array<i32>} : memref<128x32xf32, #tpu.memory_space<vmem>>, vector<128x32xf32>,
    return
  }
  func.func @transform_0(%arg0: i32) -> (i32, i32) {
    %c0_i32 = arith.constant 0 : i32
    %c0_i32_0 = arith.constant 0 : i32
    %c0_i32_1 = arith.constant 0 : i32
    return %c0_i32, %c0_i32_0 : i32, i32
  }
  func.func @transform_1(%arg0: i32) -> (i32, i32) {
    %c0_i32 = arith.constant 0 : i32
    %c0_i32_0 = arith.constant 0 : i32
    %c0_i32_1 = arith.constant 0 : i32
    return %c0_i32, %c0_i32_0 : i32, i32
  }
  func.func @transform_2(%arg0: i32) -> (i32, i32) {
    %c0_i32 = arith.constant 0 : i32
    %c0_i32_0 = arith.constant 0 : i32
    %c0_i32_1 = arith.constant 0 : i32
    return %c0_i32, %c0_i32_0 : i32, i32
  }
  func.func @transform_3(%arg0: i32) -> (i32, i32) {
    %c0_i32 = arith.constant 0 : i32
    %c0_i32_0 = arith.constant 0 : i32
    %c0_i32_1 = arith.constant 0 : i32
    return %c0_i32, %c0_i32_0 : i32, i32
  }
  func.func @transform_4(%arg0: i32) -> (i32, i32, i32) {
    %c0_i32 = arith.constant 0 : i32
    %c0_i32_0 = arith.constant 0 : i32
    %c0_i32_1 = arith.constant 0 : i32
    %c0_i32_2 = arith.constant 0 : i32
    return %c0_i32, %c0_i32_0, %c0_i32_1 : i32, i32, i32
  }
  func.func @transform_5(%arg0: i32) -> (i32, i32) {
    %c0_i32 = arith.constant 0 : i32
    %c0_i32_0 = arith.constant 0 : i32
    %c0_i32_1 = arith.constant 0 : i32
    return %c0_i32, %c0_i32_0 : i32, i32
  }
  func.func @transform_6(%arg0: i32) -> (i32, i32) {
    %c0_i32 = arith.constant 0 : i32
    %c0_i32_0 = arith.constant 0 : i32
    %c0_i32_1 = arith.constant 0 : i32
    return %c0_i32, %c0_i32_0 : i32, i32
  }
  func.func @transform_7(%arg0: i32) -> (i32, i32) {
    %c0_i32 = arith.constant 0 : i32
    %c0_i32_0 = arith.constant 0 : i32
    %c0_i32_1 = arith.constant 0 : i32
    return %c0_i32, %c0_i32_0 : i32, i32
  }
  func.func @transform_8(%arg0: i32) -> (i32, i32) {
    %c0_i32 = arith.constant 0 : i32
    %c0_i32_0 = arith.constant 0 : i32
    %c0_i32_1 = arith.constant 0 : i32
    return %c0_i32, %c0_i32_0 : i32, i32
  }
  func.func @transform_9(%arg0: i32) -> (i32, i32) {
    %c0_i32 = arith.constant 0 : i32
    %c0_i32_0 = arith.constant 0 : i32
    %c0_i32_1 = arith.constant 0 : i32
    return %c0_i32, %c0_i32_0 : i32, i32
  }
  func.func @transform_10(%arg0: i32) -> (i32, i32) {
    %c0_i32 = arith.constant 0 : i32
    %c0_i32_0 = arith.constant 0 : i32
    %c0_i32_1 = arith.constant 0 : i32
    return %c0_i32, %c0_i32_0 : i32, i32
  }
  func.func @transform_11(%arg0: i32) -> (i32, i32) {
    %c0_i32 = arith.constant 0 : i32
    %c0_i32_0 = arith.constant 0 : i32
    %c0_i32_1 = arith.constant 0 : i32
    return %c0_i32, %c0_i32_0 : i32, i32
  }
  func.func @transform_12(%arg0: i32) -> (i32, i32) {
    %c0_i32 = arith.constant 0 : i32
    %c0_i32_0 = arith.constant 0 : i32
    %c0_i32_1 = arith.constant 0 : i32
    return %c0_i32, %c0_i32_0 : i32, i32
  }
}

</mosaic_0001>

<bundles_post_ra>
// kernel: swin_block_forward.1
= control target key start
LH: loop header
LB: loop body
LE: loop exit
PB: predicated region body
PF: predicated region fallthrough
CT: control target
= control target key end

     0   :  { %vm228_vm0 = vcmask 261120   ;;  %vm1217_vm1 = vcmask 64512   ;;  %s7679_s22 = smov 112   ;;  %s7680_s27 = smov 104   ;;  %s10709_s0 = inlined_call_operand.vmem [shape: f32[128,32], index: 0, kind: input, shape index: {}]   ;;  %s10710_s1 = inlined_call_operand.vmem [shape: f32[128,128], index: 1, kind: input, shape index: {}]   ;;  %s10711_s5 = inlined_call_operand.vmem [shape: f32[32,32], index: 5, kind: input, shape index: {}]   ;;  %s10712_s7 = inlined_call_operand.vmem [shape: f32[32,32], index: 7, kind: input, shape index: {}]   ;;  %s10713_s6 = inlined_call_operand.vmem [shape: f32[32,32], index: 6, kind: input, shape index: {}]   ;;  %s10714_s3 = inlined_call_operand.vmem [shape: f32[32,32], index: 3, kind: input, shape index: {}]   ;;  %s10715_s11 = inlined_call_operand.vmem [shape: f32[10,128], index: 11, kind: input, shape index: {}]   ;;  %s10716_s4 = inlined_call_operand.vmem [shape: f32[4,128,128], index: 4, kind: input, shape index: {}]   ;;  %s10717_s8 = inlined_call_operand.vmem [shape: f32[32,32], index: 8, kind: input, shape index: {}]   ;;  %s10718_s2 = inlined_call_operand.vmem [shape: f32[128,128], index: 2, kind: input, shape index: {}]   ;;  %s10719_s9 = inlined_call_operand.vmem [shape: f32[32,128], index: 9, kind: input, shape index: {}]   ;;  %s10720_s10 = inlined_call_operand.vmem [shape: f32[128,32], index: 10, kind: input, shape index: {}]   ;;  %s10721_s12 = inlined_call_operand.vmem [shape: f32[128,32], index: 12, kind: output, shape index: {}]  }
   0x1   :  { %v74_v0 = vld [vmem:[%s10709_s0 + $0x78] sm:$0xff]  ;;  %v73_v1 = vld [vmem:[%s10709_s0 + $0x70] sm:$0xff]  ;;  %v72_v2 = vld [vmem:[%s10709_s0 + $0x68] sm:$0xff] }
   0x2   :  { %6305 = vmatprep.subr.mxu0 %v74_v0  ;;  %v71_v3 = vld [vmem:[%s10709_s0 + $0x60] sm:$0xff]  ;;  %v70_v5 = vld [vmem:[%s10709_s0 + $0x58] sm:$0xff]  ;;  %v69_v6 = vld [vmem:[%s10709_s0 + $0x50] sm:$0xff] }
   0x3   :  { %6306 = vmatpush3.msra.mxu0 %v74_v0  ;;  %v43_v4 = vld [vmem:[%s10710_s1] sm:$0xff]  ;;  %v68_v7 = vld [vmem:[%s10709_s0 + $0x48] sm:$0xff]  ;;  %v223_v8 = vld [vmem:[%s10711_s5 + $0x18] sm:$0xff]  ;;  %v224_v0 = vlaneseq }
   0x4   :  { %6307 = vmatprep.subr.mxu0 %v73_v1  ;;  %6337 = vmatprep.mubr.f32.mxu0 %v43_v4  ;;  %v222_v9 = vld [vmem:[%s10711_s5 + $0x10] sm:$0xff]  ;;  %v67_v10 = vld [vmem:[%s10709_s0 + $0x40] sm:$0xff]  ;;  %v66_v11 = vld [vmem:[%s10709_s0 + $0x38] sm:$0xff] }
   0x5   :  { %6308 = vmatpush3.msra.mxu0 %v73_v1  ;;  %6361 = vmatprep.subr.mxu1 %v223_v8  ;;  %v65_v12 = vld [vmem:[%s10709_s0 + $0x30] sm:$0xff]  ;;  %v64_v13 = vld [vmem:[%s10709_s0 + $0x28] sm:$0xff]  ;;  %v63_v14 = vld [vmem:[%s10709_s0 + $0x20] sm:$0xff]  ;;  %v7948_v1 = vshrl.u32 %v224_v0, 7 }
   0x6   :  { %6309 = vmatprep.subr.mxu0 %v72_v2  ;;  %6362 = vmatpush3.msra.mxu1 %v223_v8  ;;  %v62_v15 = vld [vmem:[%s10709_s0 + $0x18] sm:$0xff]  ;;  %v61_v16 = vld [vmem:[%s10709_s0 + $0x10] sm:$0xff]  ;;  %v60_v17 = vld [vmem:[%s10709_s0 + $0x8] sm:$0xff] }
   0x7   :  { %6310 = vmatpush3.msra.mxu0 %v72_v2  ;;  %6363 = vmatprep.subr.mxu1 %v222_v9  ;;  %v59_v18 = vld [vmem:[%s10709_s0] sm:$0xff]  ;;  %v44_v19 = vld [vmem:[%s10710_s1 + $0x8] sm:$0xff]  ;;  %v574_v20 = vld [vmem:[%s10712_s7 + $0x18] sm:$0xff]  ;;  %10795 = vst [vmem:[#allocation2_spill] sm:$0xff] %v7948_v1  ;;  %v10722_v2 = vsub.s32 0, %v7948_v1 }
   0x8   :  { %6311 = vmatprep.subr.mxu0 %v71_v3  ;;  %6364 = vmatpush3.msra.mxu1 %v222_v9  ;;  %v45_v21 = vld [vmem:[%s10710_s1 + $0x10] sm:$0xff]  ;;  %v46_v23 = vld [vmem:[%s10710_s1 + $0x18] sm:$0xff]  ;;  %v47_v24 = vld [vmem:[%s10710_s1 + $0x20] sm:$0xff] }
   0x9   :  { %6312 = vmatpush3.msra.mxu0 %v71_v3  ;;  %v573_v22 = vld [vmem:[%s10712_s7 + $0x10] sm:$0xff]  ;;  %v48_v25 = vld [vmem:[%s10710_s1 + $0x28] sm:$0xff]  ;;  %v50_v27 = vld [vmem:[%s10710_s1 + $0x38] sm:$0xff] }
   0xa   :  { %6313 = vmatprep.subr.mxu0 %v70_v5  ;;  %v49_v26 = vld [vmem:[%s10710_s1 + $0x30] sm:$0xff]  ;;  %v51_v28 = vld [vmem:[%s10710_s1 + $0x40] sm:$0xff]  ;;  %v52_v29 = vld [vmem:[%s10710_s1 + $0x48] sm:$0xff] }
   0xb   :  { %6314 = vmatpush3.msra.mxu0 %v70_v5  ;;  %v53_v30 = vld [vmem:[%s10710_s1 + $0x50] sm:$0xff]  ;;  %v54_v31 = vld [vmem:[%s10710_s1 + $0x58] sm:$0xff]  ;;  %v55_v32 = vld [vmem:[%s10710_s1 + $0x60] sm:$0xff] }
   0xc   :  { %6315 = vmatprep.subr.mxu0 %v69_v6  ;;  %v56_v33 = vld [vmem:[%s10710_s1 + $0x68] sm:$0xff]  ;;  %v57_v34 = vld [vmem:[%s10710_s1 + $0x70] sm:$0xff]  ;;  %v58_v35 = vld [vmem:[%s10710_s1 + $0x78] sm:$0xff] }
   0xd   :  { %6316 = vmatpush3.msra.mxu0 %v69_v6  ;;  %v221_v36 = vld [vmem:[%s10711_s5 + $0x8] sm:$0xff]  ;;  %v220_v38 = vld [vmem:[%s10711_s5] sm:$0xff]  ;;  %v425_v40 = vld [vmem:[%s10713_s6 + $0x18] sm:$0xff] }
   0xe   :  { %6317 = vmatprep.subr.mxu0 %v68_v7  ;;  %v572_v37 = vld [vmem:[%s10712_s7 + $0x8] sm:$0xff]  ;;  %6365 = vmatprep.subr.mxu1 %v221_v36  ;;  %v571_v39 = vld [vmem:[%s10712_s7] sm:$0xff]  ;;  %v424_v43 = vld [vmem:[%s10713_s6 + $0x10] sm:$0xff] }
   0xf   :  { %6318 = vmatpush3.msra.mxu0 %v68_v7  ;;  %6366 = vmatpush3.msra.mxu1 %v221_v36  ;;  %v423_v46 = vld [vmem:[%s10713_s6 + $0x8] sm:$0xff]  ;;  %v422_v49 = vld [vmem:[%s10713_s6] sm:$0xff]  ;;  %v759_v52 = vld [vmem:[%s10714_s3 + $0x18] sm:$0xff] }
  0x10   :  { %6319 = vmatprep.subr.mxu0 %v67_v10  ;;  %6367 = vmatprep.subr.mxu1 %v220_v38  ;;  %v758_v61 = vld [vmem:[%s10714_s3 + $0x10] sm:$0xff]  ;;  %v757_v62 = vld [vmem:[%s10714_s3 + $0x8] sm:$0xff]  ;;  %v756_v63 = vld [vmem:[%s10714_s3] sm:$0xff]  ;;  %s7678_s3 = smov 120  }
  0x11   :  { %6320 = vmatpush3.msra.mxu0 %v67_v10  ;;  %6368 = vmatpush3.msra.mxu1 %v220_v38  ;;  %v7954_v3 = vld [vmem:[%s10715_s11] sm:$0xff] }
  0x12   :  { %6321 = vmatprep.subr.mxu0 %v66_v11  ;;  %6393 = vmatprep.subr.mxu1 %v425_v40  ;;  %v7959_v4 = vrot.slane %v7954_v3, %v10722_v2 }
  0x13   :  { %6322 = vmatpush3.msra.mxu0 %v66_v11 }
  0x14   :  { %6323 = vmatprep.subr.mxu0 %v65_v12 }
  0x15   :  { %6324 = vmatpush3.msra.mxu0 %v65_v12 }
  0x16   :  { %6325 = vmatprep.subr.mxu0 %v64_v13 }
  0x17   :  { %6326 = vmatpush3.msra.mxu0 %v64_v13 }
  0x18   :  { %6327 = vmatprep.subr.mxu0 %v63_v14 }
  0x19   :  { %6328 = vmatpush3.msra.mxu0 %v63_v14 }
  0x1a   :  { %6329 = vmatprep.subr.mxu0 %v62_v15 }
  0x1b   :  { %6330 = vmatpush3.msra.mxu0 %v62_v15 }
  0x1c   :  { %6331 = vmatprep.subr.mxu0 %v61_v16 }
  0x1d   :  { %6332 = vmatpush3.msra.mxu0 %v61_v16 }
  0x1e   :  { %6333 = vmatprep.subr.mxu0 %v60_v17 }
  0x1f   :  { %6334 = vmatpush3.msra.mxu0 %v60_v17 }
  0x20   :  { %6335 = vmatprep.subr.mxu0 %v59_v18 }
  0x21   :  { %6336 = vmatpush3.msra.mxu0 %v59_v18 }
  0x22   :  { %6338 = vmatmul.mubr.f32.vlgmr.msra.gmra.mxu0 %v44_v19  ;;  %6425 = vmatprep.subr.mxu0 %v574_v20 }
  0x23   :  { %6340 = vmatprep.mubr.f32.mxu0 %v45_v21  ;;  %6426 = vmatpush3.msra.mxu0 %v574_v20 }
  0x24   :  { %6427 = vmatprep.subr.mxu0 %v573_v22 }
  0x25   :  { %6428 = vmatpush3.msra.mxu0 %v573_v22 }
  0x26   :  { %6341 = vmatmul.mubr.f32.gmra.mxu0 %v46_v23  ;;  %6429 = vmatprep.subr.mxu0 %v572_v37 }
  0x27   :  { %6343 = vmatprep.mubr.f32.mxu0 %v47_v24  ;;  %6430 = vmatpush3.msra.mxu0 %v572_v37 }
  0x28   :  { %6431 = vmatprep.subr.mxu0 %v571_v39 }
  0x29   :  { %6432 = vmatpush3.msra.mxu0 %v571_v39 }
  0x2a   :  { %6344 = vmatmul.mubr.f32.gmra.mxu0 %v48_v25 }
  0x2b   :  { %6346 = vmatprep.mubr.f32.mxu0 %v49_v26 }
  0x2e   :  { %6347 = vmatmul.mubr.f32.gmra.mxu0 %v50_v27 }
  0x2f   :  { %6349 = vmatprep.mubr.f32.mxu0 %v51_v28 }
  0x32   :  { %6350 = vmatmul.mubr.f32.gmra.mxu0 %v52_v29 }
  0x33   :  { %6352 = vmatprep.mubr.f32.mxu0 %v53_v30 }
  0x36   :  { %6353 = vmatmul.mubr.f32.gmra.mxu0 %v54_v31 }
  0x37   :  { %6355 = vmatprep.mubr.f32.mxu0 %v55_v32 }
  0x3a   :  { %6356 = vmatmul.mubr.f32.gmra.mxu0 %v56_v33 }
  0x3b   :  { %6358 = vmatprep.mubr.f32.mxu0 %v57_v34 }
  0x3e   :  { %6359 = vmatmul.mubr.f32.gmra.mxu0 %v58_v35 }
  0xe2   :  { %v7869_v41 = vpop.f32.mrf.mxu0 }
  0xe4   :  { %v141_v42 = vpop.f32.mrf.mxu0 }
  0xe5   :  { %6369 = vmatprep.mubr.msk.f32.mxu1 %vm228_vm0, %v141_v42  ;;  %6433 = vmatprep.mubr.msk.f32.mxu0 %vm228_vm0, %v141_v42 }
  0xe6   :  { %v7876_v44 = vpop.f32.mrf.mxu0  ;;  %6370 = vmatmul.mubr.msk.f32.vlgmr.msra.gmra.mxu1 %vm228_vm0, %v7869_v41  ;;  %6434 = vmatmul.mubr.msk.f32.vlgmr.msra.gmra.mxu0 %vm228_vm0, %v7869_v41 }
  0xe7   :  { %6394 = vmatpush3.msra.mxu1 %v425_v40 }
  0xe8   :  { %v151_v45 = vpop.f32.mrf.mxu0  ;;  %6395 = vmatprep.subr.mxu1 %v424_v43 }
  0xe9   :  { %6372 = vmatprep.mubr.msk.f32.mxu1 %vm228_vm0, %v151_v45  ;;  %6436 = vmatprep.mubr.msk.f32.mxu0 %vm228_vm0, %v151_v45 }
  0xea   :  { %v6345_v47 = vpop.f32.mrf.mxu0  ;;  %6373 = vmatmul.mubr.msk.f32.gmra.mxu1 %vm228_vm0, %v7876_v44  ;;  %6437 = vmatmul.mubr.msk.f32.gmra.mxu0 %vm228_vm0, %v7876_v44 }
  0xeb   :  { %6396 = vmatpush3.msra.mxu1 %v424_v43 }
  0xec   :  { %v161_v48 = vpop.f32.mrf.mxu0  ;;  %6397 = vmatprep.subr.mxu1 %v423_v46 }
  0xed   :  { %6375 = vmatprep.mubr.msk.f32.mxu1 %vm228_vm0, %v161_v48  ;;  %6439 = vmatprep.mubr.msk.f32.mxu0 %vm228_vm0, %v161_v48 }
  0xee   :  { %v6348_v50 = vpop.f32.mrf.mxu0  ;;  %6376 = vmatmul.mubr.msk.f32.gmra.mxu1 %vm228_vm0, %v6345_v47  ;;  %6440 = vmatmul.mubr.msk.f32.gmra.mxu0 %vm228_vm0, %v6345_v47 }
  0xef   :  { %6398 = vmatpush3.msra.mxu1 %v423_v46 }
  0xf0   :  { %v171_v51 = vpop.f32.mrf.mxu0  ;;  %6399 = vmatprep.subr.mxu1 %v422_v49 }
  0xf1   :  { %6378 = vmatprep.mubr.msk.f32.mxu1 %vm228_vm0, %v171_v51  ;;  %6442 = vmatprep.mubr.msk.f32.mxu0 %vm228_vm0, %v171_v51 }
  0xf2   :  { %v6351_v53 = vpop.f32.mrf.mxu0  ;;  %6379 = vmatmul.mubr.msk.f32.gmra.mxu1 %vm228_vm0, %v6348_v50  ;;  %6443 = vmatmul.mubr.msk.f32.gmra.mxu0 %vm228_vm0, %v6348_v50 }
  0xf3   :  { %6400 = vmatpush3.msra.mxu1 %v422_v49 }
  0xf4   :  { %v181_v54 = vpop.f32.mrf.mxu0  ;;  %6457 = vmatprep.subr.mxu1 %v759_v52 }
  0xf5   :  { %6381 = vmatprep.mubr.msk.f32.mxu1 %vm228_vm0, %v181_v54  ;;  %6445 = vmatprep.mubr.msk.f32.mxu0 %vm228_vm0, %v181_v54 }
  0xf6   :  { %v6354_v55 = vpop.f32.mrf.mxu0  ;;  %6382 = vmatmul.mubr.msk.f32.gmra.mxu1 %vm228_vm0, %v6351_v53  ;;  %6446 = vmatmul.mubr.msk.f32.gmra.mxu0 %vm228_vm0, %v6351_v53 }
  0xf8   :  { %v191_v56 = vpop.f32.mrf.mxu0 }
  0xf9   :  { %6384 = vmatprep.mubr.msk.f32.mxu1 %vm228_vm0, %v191_v56  ;;  %6448 = vmatprep.mubr.msk.f32.mxu0 %vm228_vm0, %v191_v56 }
  0xfa   :  { %v6357_v57 = vpop.f32.mrf.mxu0  ;;  %6385 = vmatmul.mubr.msk.f32.gmra.mxu1 %vm228_vm0, %v6354_v55  ;;  %6449 = vmatmul.mubr.msk.f32.gmra.mxu0 %vm228_vm0, %v6354_v55 }
  0xfc   :  { %v201_v58 = vpop.f32.mrf.mxu0 }
  0xfd   :  { %6387 = vmatprep.mubr.msk.f32.mxu1 %vm228_vm0, %v201_v58  ;;  %6451 = vmatprep.mubr.msk.f32.mxu0 %vm228_vm0, %v201_v58 }
  0xfe   :  { %v6360_v59 = vpop.f32.mrf.mxu0  ;;  %6388 = vmatmul.mubr.msk.f32.gmra.mxu1 %vm228_vm0, %v6357_v57  ;;  %6452 = vmatmul.mubr.msk.f32.gmra.mxu0 %vm228_vm0, %v6357_v57 }
 0x100   :  { %v211_v60 = vpop.f32.mrf.mxu0 }
 0x101   :  { %6390 = vmatprep.mubr.msk.f32.mxu1 %vm228_vm0, %v211_v60  ;;  %6454 = vmatprep.mubr.msk.f32.mxu0 %vm228_vm0, %v211_v60 }
 0x102   :  { %6391 = vmatmul.mubr.msk.f32.gmra.mxu1 %vm228_vm0, %v6360_v59  ;;  %6455 = vmatmul.mubr.msk.f32.gmra.mxu0 %vm228_vm0, %v6360_v59 }
 0x103   :  { %6401 = vmatprep.mubr.msk.f32.mxu1 %vm228_vm0, %v141_v42 }
 0x106   :  { %6402 = vmatmul.mubr.msk.f32.vlgmr.msra.gmra.mxu1 %vm228_vm0, %v7869_v41 }
 0x107   :  { %6404 = vmatprep.mubr.msk.f32.mxu1 %vm228_vm0, %v151_v45  ;;  %6458 = vmatpush3.msra.mxu1 %v759_v52 }
 0x108   :  { %6459 = vmatprep.subr.mxu1 %v758_v61 }
 0x109   :  { %6460 = vmatpush3.msra.mxu1 %v758_v61 }
 0x10a   :  { %6405 = vmatmul.mubr.msk.f32.gmra.mxu1 %vm228_vm0, %v7876_v44  ;;  %6461 = vmatprep.subr.mxu1 %v757_v62 }
 0x10b   :  { %6407 = vmatprep.mubr.msk.f32.mxu1 %vm228_vm0, %v161_v48  ;;  %6462 = vmatpush3.msra.mxu1 %v757_v62 }
 0x10c   :  { %6463 = vmatprep.subr.mxu1 %v756_v63 }
 0x10d   :  { %6464 = vmatpush3.msra.mxu1 %v756_v63 }
 0x10e   :  { %6408 = vmatmul.mubr.msk.f32.gmra.mxu1 %vm228_vm0, %v6345_v47 }
 0x10f   :  { %6410 = vmatprep.mubr.msk.f32.mxu1 %vm228_vm0, %v171_v51 }
 0x112   :  { %6411 = vmatmul.mubr.msk.f32.gmra.mxu1 %vm228_vm0, %v6348_v50  ;;  %v10723_v50 = vsub.s32 1, %v7948_v1 }
 0x113   :  { %6413 = vmatprep.mubr.msk.f32.mxu1 %vm228_vm0, %v181_v54 }
 0x116   :  { %6414 = vmatmul.mubr.msk.f32.gmra.mxu1 %vm228_vm0, %v6351_v53 }
 0x117   :  { %6416 = vmatprep.mubr.msk.f32.mxu1 %vm228_vm0, %v191_v56 }
 0x11a   :  { %6417 = vmatmul.mubr.msk.f32.gmra.mxu1 %vm228_vm0, %v6354_v55 }
 0x11b   :  { %6419 = vmatprep.mubr.msk.f32.mxu1 %vm228_vm0, %v201_v58 }
 0x11e   :  { %6420 = vmatmul.mubr.msk.f32.gmra.mxu1 %vm228_vm0, %v6357_v57 }
 0x11f   :  { %6422 = vmatprep.mubr.msk.f32.mxu1 %vm228_vm0, %v211_v60 }
 0x122   :  { %6423 = vmatmul.mubr.msk.f32.gmra.mxu1 %vm228_vm0, %v6360_v59  ;;  %v8058_v59 = vrot.slane %v7954_v3, %v10723_v50 }
 0x1a6   :  { %v6371_v5 = vpop.f32.mrf.mxu1  ;;  %v7961_v6 = vpop.f32.mrf.mxu0 }
 0x1a7   :  { %v7964_v7 = vadd.f32 %v6371_v5, %v7959_v4 }
 0x1a8   :  { %v343_v8 = vpop.f32.mrf.mxu1  ;;  %v7966_v9 = vpop.f32.mrf.mxu0 }
 0x1a9   :  { %v7969_v10 = vadd.f32 %v343_v8, %v7959_v4  ;;  %v725_v14 = vmul.f32 %v7964_v7, %v7964_v7 }
 0x1aa   :  { %v6374_v11 = vpop.f32.mrf.mxu1  ;;  %v7971_v12 = vpop.f32.mrf.mxu0 }
 0x1ab   :  { %v724_v13 = vmul.f32 %v7969_v10, %v7969_v10  ;;  %v7978_v15 = vadd.f32 %v6374_v11, %v7959_v4 }
 0x1ac   :  { %v353_v16 = vpop.f32.mrf.mxu1  ;;  %v7980_v17 = vpop.f32.mrf.mxu0 }
 0x1ad   :  { %v7983_v18 = vadd.f32 %v353_v16, %v7959_v4  ;;  %6465 = vmatprep.mubr.msk.f32.mxu1 %vm228_vm0, %v724_v13  ;;  %v727_v22 = vmul.f32 %v7978_v15, %v7978_v15 }
 0x1ae   :  { %v6377_v19 = vpop.f32.mrf.mxu1  ;;  %v7986_v20 = vpop.f32.mrf.mxu0  ;;  %6466 = vmatmul.mubr.msk.f32.vlgmr.msra.gmra.mxu1 %vm228_vm0, %v725_v14 }
 0x1af   :  { %v726_v21 = vmul.f32 %v7983_v18, %v7983_v18  ;;  %v7994_v23 = vadd.f32 %v6377_v19, %v7959_v4 }
 0x1b0   :  { %v363_v24 = vpop.f32.mrf.mxu1  ;;  %v7996_v25 = vpop.f32.mrf.mxu0 }
 0x1b1   :  { %v7999_v26 = vadd.f32 %v363_v24, %v7959_v4  ;;  %6468 = vmatprep.mubr.msk.f32.mxu1 %vm228_vm0, %v726_v21  ;;  %v729_v30 = vmul.f32 %v7994_v23, %v7994_v23 }
 0x1b2   :  { %v6380_v27 = vpop.f32.mrf.mxu1  ;;  %v8002_v28 = vpop.f32.mrf.mxu0  ;;  %6469 = vmatmul.mubr.msk.f32.gmra.mxu1 %vm228_vm0, %v727_v22 }
 0x1b3   :  { %v728_v29 = vmul.f32 %v7999_v26, %v7999_v26  ;;  %v8010_v31 = vadd.f32 %v6380_v27, %v7959_v4 }
 0x1b4   :  { %v373_v32 = vpop.f32.mrf.mxu1  ;;  %v8012_v33 = vpop.f32.mrf.mxu0 }
 0x1b5   :  { %v8015_v34 = vadd.f32 %v373_v32, %v7959_v4  ;;  %6471 = vmatprep.mubr.msk.f32.mxu1 %vm228_vm0, %v728_v29  ;;  %v731_v38 = vmul.f32 %v8010_v31, %v8010_v31 }
 0x1b6   :  { %v6383_v35 = vpop.f32.mrf.mxu1  ;;  %v8018_v36 = vpop.f32.mrf.mxu0  ;;  %6472 = vmatmul.mubr.msk.f32.gmra.mxu1 %vm228_vm0, %v729_v30 }
 0x1b7   :  { %v730_v37 = vmul.f32 %v8015_v34, %v8015_v34  ;;  %v8026_v39 = vadd.f32 %v6383_v35, %v7959_v4 }
 0x1b8   :  { %v383_v40 = vpop.f32.mrf.mxu1  ;;  %v8028_v41 = vpop.f32.mrf.mxu0 }
 0x1b9   :  { %v8031_v42 = vadd.f32 %v383_v40, %v7959_v4  ;;  %6474 = vmatprep.mubr.msk.f32.mxu1 %vm228_vm0, %v730_v37  ;;  %v733_v46 = vmul.f32 %v8026_v39, %v8026_v39 }
 0x1ba   :  { %v6386_v43 = vpop.f32.mrf.mxu1  ;;  %v6450_v44 = vpop.f32.mrf.mxu0  ;;  %6475 = vmatmul.mubr.msk.f32.gmra.mxu1 %vm228_vm0, %v731_v38 }
 0x1bb   :  { %v732_v45 = vmul.f32 %v8031_v42, %v8031_v42  ;;  %v8040_v47 = vadd.f32 %v6386_v43, %v7959_v4  ;;  %v8111_v32 = vadd.f32 %v6450_v44, %v8058_v59  ;;  %v8132_v44 = vadd.f32 %v8018_v36, %v8058_v59 }
 0x1bc   :  { %v393_v48 = vpop.f32.mrf.mxu1  ;;  %v695_v49 = vpop.f32.mrf.mxu0 }
 0x1bd   :  { %v8044_v51 = vadd.f32 %v393_v48, %v7959_v4  ;;  %6477 = vmatprep.mubr.msk.f32.mxu1 %vm228_vm0, %v732_v45  ;;  %v735_v55 = vmul.f32 %v8040_v47, %v8040_v47  ;;  %10801 = vst [vmem:[#allocation8_spill] sm:$0xff] %v8111_v32  ;;  %v8122_v40 = vadd.f32 %v695_v49, %v8058_v59  ;;  %10803 = vst [vmem:[#allocation10_spill] sm:$0xff] %v8132_v44 }
 0x1be   :  { %v6389_v52 = vpop.f32.mrf.mxu1  ;;  %v6453_v53 = vpop.f32.mrf.mxu0  ;;  %6478 = vmatmul.mubr.msk.f32.gmra.mxu1 %vm228_vm0, %v733_v46  ;;  %v8144_v49 = vadd.f32 %v8028_v41, %v8058_v59 }
 0x1bf   :  { %v734_v54 = vmul.f32 %v8044_v51, %v8044_v51  ;;  %v8053_v56 = vadd.f32 %v6389_v52, %v7959_v4  ;;  %v8090_v22 = vadd.f32 %v6453_v53, %v8058_v59  ;;  %10802 = vst [vmem:[#allocation9_spill] sm:$0xff] %v8122_v40  ;;  %v8154_v52 = vadd.f32 %v8002_v28, %v8058_v59 }
 0x1c0   :  { %v403_v57 = vpop.f32.mrf.mxu1  ;;  %v705_v58 = vpop.f32.mrf.mxu0  ;;  %10804 = vst [vmem:[#allocation11_spill] sm:$0xff] %v8144_v49 }
 0x1c1   :  { %v8061_v60 = vadd.f32 %v403_v57, %v7959_v4  ;;  %6480 = vmatprep.mubr.msk.f32.mxu1 %vm228_vm0, %v734_v54  ;;  %v737_v5 = vmul.f32 %v8053_v56, %v8053_v56  ;;  %10799 = vst [vmem:[#allocation6_spill] sm:$0xff] %v8090_v22  ;;  %v8102_v29 = vadd.f32 %v705_v58, %v8058_v59  ;;  %10805 = vst [vmem:[#allocation12_spill] sm:$0xff] %v8154_v52 }
 0x1c2   :  { %v6392_v61 = vpop.f32.mrf.mxu1  ;;  %v6456_v62 = vpop.f32.mrf.mxu0  ;;  %6481 = vmatmul.mubr.msk.f32.gmra.mxu1 %vm228_vm0, %v735_v55  ;;  %v8166_v55 = vadd.f32 %v8012_v33, %v8058_v59  ;;  %v8176_v57 = vadd.f32 %v7986_v20, %v8058_v59 }
 0x1c3   :  { %v736_v63 = vmul.f32 %v8061_v60, %v8061_v60  ;;  %v8068_v0 = vadd.f32 %v6456_v62, %v8058_v59  ;;  %v8073_v8 = vadd.f32 %v6392_v61, %v7959_v4  ;;  %10800 = vst [vmem:[#allocation7_spill] sm:$0xff] %v8102_v29  ;;  %v8188_v62 = vadd.f32 %v7996_v25, %v8058_v59 }
 0x1c4   :  { %v413_v11 = vpop.f32.mrf.mxu1  ;;  %v715_v13 = vpop.f32.mrf.mxu0  ;;  %10806 = vst [vmem:[#allocation13_spill] sm:$0xff] %v8166_v55  ;;  %10807 = vst [vmem:[#allocation14_spill] sm:$0xff] %v8176_v57 }
 0x1c5   :  { %10796 = vst [vmem:[#allocation3_spill] sm:$0xff] %v8068_v0  ;;  %v8076_v14 = vadd.f32 %v413_v11, %v7959_v4  ;;  %v8079_v16 = vadd.f32 %v715_v13, %v8058_v59  ;;  %6483 = vmatprep.mubr.msk.f32.mxu1 %vm228_vm0, %v736_v63  ;;  %6569 = vmatprep.subr.mxu1 %v8068_v0  ;;  %10808 = vst [vmem:[#allocation15_spill] sm:$0xff] %v8188_v62 }
 0x1c6   :  { %v8083_v19 = vpop.f32.mrf.mxu1  ;;  %6484 = vmatmul.mubr.msk.f32.gmra.mxu1 %vm228_vm0, %v737_v5  ;;  %v739_v4 = vmul.f32 %v8073_v8, %v8073_v8  ;;  %v8198_v63 = vadd.f32 %v7971_v12, %v8058_v59  ;;  %v8210_v13 = vadd.f32 %v7980_v17, %v8058_v59 }
 0x1c7   :  { %10797 = vst [vmem:[#allocation4_spill] sm:$0xff] %v8076_v14  ;;  %10798 = vst [vmem:[#allocation5_spill] sm:$0xff] %v8079_v16  ;;  %v738_v21 = vmul.f32 %v8076_v14, %v8076_v14  ;;  %6570 = vmatpush3.msra.mxu1 %v8068_v0  ;;  %v741_v35 = vmul.f32 %v8083_v19, %v8083_v19 }
 0x1c8   :  { %6571 = vmatprep.subr.mxu1 %v8079_v16  ;;  %v8095_v24 = vpop.f32.mrf.mxu1  ;;  %10809 = vst [vmem:[#allocation16_spill] sm:$0xff] %v8198_v63  ;;  %10810 = vst [vmem:[#allocation17_spill] sm:$0xff] %v8210_v13 }
 0x1c9   :  { %v740_v27 = vmul.f32 %v8095_v24, %v8095_v24  ;;  %6572 = vmatpush3.msra.mxu1 %v8079_v16  ;;  %6486 = vmatprep.mubr.msk.f32.mxu1 %vm228_vm0, %v738_v21  ;;  %v8220_v21 = vadd.f32 %v7961_v6, %v8058_v59 }
 0x1ca   :  { %6573 = vmatprep.subr.mxu1 %v8090_v22  ;;  %v8105_v30 = vpop.f32.mrf.mxu1  ;;  %6487 = vmatmul.mubr.msk.f32.gmra.mxu1 %vm228_vm0, %v739_v4 }
 0x1cb   :  { %6574 = vmatpush3.msra.mxu1 %v8090_v22  ;;  %6489 = vmatprep.mubr.msk.f32.mxu1 %vm228_vm0, %v740_v27  ;;  %v743_v45 = vmul.f32 %v8105_v30, %v8105_v30  ;;  %10811 = vst [vmem:[#allocation18_spill] sm:$0xff] %v8220_v21 }
 0x1cc   :  { %6575 = vmatprep.subr.mxu1 %v8102_v29  ;;  %v8116_v37 = vpop.f32.mrf.mxu1 }
 0x1cd   :  { %v742_v38 = vmul.f32 %v8116_v37, %v8116_v37  ;;  %6576 = vmatpush3.msra.mxu1 %v8102_v29 }
 0x1ce   :  { %6577 = vmatprep.subr.mxu1 %v8111_v32  ;;  %v8125_v43 = vpop.f32.mrf.mxu1  ;;  %6490 = vmatmul.mubr.msk.f32.gmra.mxu1 %vm228_vm0, %v741_v35  ;;  %v8232_v35 = vadd.f32 %v7966_v9, %v8058_v59 }
 0x1cf   :  { %6578 = vmatpush3.msra.mxu1 %v8111_v32  ;;  %6492 = vmatprep.mubr.msk.f32.mxu1 %vm228_vm0, %v742_v38  ;;  %v745_v53 = vmul.f32 %v8125_v43, %v8125_v43 }
 0x1d0   :  { %6579 = vmatprep.subr.mxu1 %v8122_v40  ;;  %v8137_v46 = vpop.f32.mrf.mxu1  ;;  %10812 = vst [vmem:[#allocation19_spill] sm:$0xff] %v8232_v35 }
 0x1d1   :  { %v744_v48 = vmul.f32 %v8137_v46, %v8137_v46  ;;  %6580 = vmatpush3.msra.mxu1 %v8122_v40 }
 0x1d2   :  { %6581 = vmatprep.subr.mxu1 %v8132_v44  ;;  %v8147_v36 = vpop.f32.mrf.mxu1  ;;  %6493 = vmatmul.mubr.msk.f32.gmra.mxu1 %vm228_vm0, %v743_v45 }
 0x1d3   :  { %6582 = vmatpush3.msra.mxu1 %v8132_v44  ;;  %6495 = vmatprep.mubr.msk.f32.mxu1 %vm228_vm0, %v744_v48  ;;  %v747_v58 = vmul.f32 %v8147_v36, %v8147_v36 }
 0x1d4   :  { %6583 = vmatprep.subr.mxu1 %v8144_v49  ;;  %v8159_v41 = vpop.f32.mrf.mxu1 }
 0x1d5   :  { %v746_v54 = vmul.f32 %v8159_v41, %v8159_v41  ;;  %6584 = vmatpush3.msra.mxu1 %v8144_v49 }
 0x1d6   :  { %6585 = vmatprep.subr.mxu1 %v8154_v52  ;;  %v8169_v28 = vpop.f32.mrf.mxu1  ;;  %6496 = vmatmul.mubr.msk.f32.gmra.mxu1 %vm228_vm0, %v745_v53 }
 0x1d7   :  { %6586 = vmatpush3.msra.mxu1 %v8154_v52  ;;  %6498 = vmatprep.mubr.msk.f32.mxu1 %vm228_vm0, %v746_v54  ;;  %v749_v5 = vmul.f32 %v8169_v28, %v8169_v28 }
 0x1d8   :  { %6587 = vmatprep.subr.mxu1 %v8166_v55  ;;  %v8181_v33 = vpop.f32.mrf.mxu1 }
 0x1d9   :  { %v748_v61 = vmul.f32 %v8181_v33, %v8181_v33  ;;  %6588 = vmatpush3.msra.mxu1 %v8166_v55 }
 0x1da   :  { %6589 = vmatprep.subr.mxu1 %v8176_v57  ;;  %v8191_v20 = vpop.f32.mrf.mxu1  ;;  %6499 = vmatmul.mubr.msk.f32.gmra.mxu1 %vm228_vm0, %v747_v58 }
 0x1db   :  { %6590 = vmatpush3.msra.mxu1 %v8176_v57  ;;  %6501 = vmatprep.mubr.msk.f32.mxu1 %vm228_vm0, %v748_v61  ;;  %v751_v4 = vmul.f32 %v8191_v20, %v8191_v20 }
 0x1dc   :  { %6591 = vmatprep.subr.mxu1 %v8188_v62  ;;  %v8203_v25 = vpop.f32.mrf.mxu1 }
 0x1dd   :  { %v750_v11 = vmul.f32 %v8203_v25, %v8203_v25  ;;  %6592 = vmatpush3.msra.mxu1 %v8188_v62 }
 0x1de   :  { %6593 = vmatprep.subr.mxu1 %v8198_v63  ;;  %v8213_v12 = vpop.f32.mrf.mxu1  ;;  %6502 = vmatmul.mubr.msk.f32.gmra.mxu1 %vm228_vm0, %v749_v5 }
 0x1df   :  { %6594 = vmatpush3.msra.mxu1 %v8198_v63  ;;  %6504 = vmatprep.mubr.msk.f32.mxu1 %vm228_vm0, %v750_v11  ;;  %v753_v38 = vmul.f32 %v8213_v12, %v8213_v12 }
 0x1e0   :  { %6595 = vmatprep.subr.mxu1 %v8210_v13  ;;  %v8225_v17 = vpop.f32.mrf.mxu1 }
 0x1e1   :  { %v752_v27 = vmul.f32 %v8225_v17, %v8225_v17  ;;  %6596 = vmatpush3.msra.mxu1 %v8210_v13 }
 0x1e2   :  { %6597 = vmatprep.subr.mxu1 %v8220_v21  ;;  %v8235_v6 = vpop.f32.mrf.mxu1  ;;  %6505 = vmatmul.mubr.msk.f32.gmra.mxu1 %vm228_vm0, %v751_v4 }
 0x1e3   :  { %6598 = vmatpush3.msra.mxu1 %v8220_v21  ;;  %6507 = vmatprep.mubr.msk.f32.mxu1 %vm228_vm0, %v752_v27  ;;  %v755_v59 = vmul.f32 %v8235_v6, %v8235_v6 }
 0x1e4   :  { %6599 = vmatprep.subr.mxu1 %v8232_v35  ;;  %v8243_v45 = vpop.f32.mrf.mxu1 }
 0x1e5   :  { %v754_v9 = vmul.f32 %v8243_v45, %v8243_v45  ;;  %6600 = vmatpush3.msra.mxu1 %v8232_v35 }
 0x1e6   :  { %6508 = vmatmul.mubr.msk.f32.gmra.mxu1 %vm228_vm0, %v753_v38 }
 0x1e7   :  { %6510 = vmatprep.mubr.msk.f32.mxu1 %vm228_vm0, %v754_v9  ;;  %v1131_v9 = vsub.s32 2, %v7948_v1 }
 0x1ea   :  { %6511 = vmatmul.mubr.msk.f32.gmra.mxu1 %vm228_vm0, %v755_v59 }
 0x26e   :  { %v6467_v48 = vpop.f32.mrf.mxu1 }
 0x26f   :  { %v1082_v53 = vmax.f32 %v6467_v48, 1e-24  ;;  %v8261_v48 = vrot.slane %v7954_v3, %v1131_v9 }
 0x270   :  { %v922_v54 = vpop.f32.mrf.mxu1 }
 0x271   :  { %7244 = vrsqrt.f32 %v1082_v53  ;;  %v1081_v58 = vmax.f32 %v922_v54, 1e-24 }
 0x272   :  { %v6470_v61 = vpop.f32.mrf.mxu1 }
 0x273   :  { %7246 = vrsqrt.f32 %v1081_v58  ;;  %v1084_v5 = vmax.f32 %v6470_v61, 1e-24 }
 0x274   :  { %v8253_v11 = vpop.f32.mrf.mxu1 }
 0x275   :  { %7248 = vrsqrt.f32 %v1084_v5 }
 0x276   :  { %v6473_v4 = vpop.f32.mrf.mxu1 }
 0x277   :  { %v1086_v27 = vmax.f32 %v6473_v4, 1e-24 }
 0x278   :  { %v8255_v38 = vpop.f32.mrf.mxu1 }
 0x279   :  { %7250 = vrsqrt.f32 %v1086_v27 }
 0x27a   :  { %v6476_v2 = vpop.f32.mrf.mxu1 }
 0x27b   :  { %v1088_v59 = vmax.f32 %v6476_v2, 1e-24 }
 0x27c   :  { %v8258_v50 = vpop.f32.mrf.mxu1 }
 0x27d   :  { %7252 = vrsqrt.f32 %v1088_v59 }
 0x27e   :  { %v7245_v53 = vpop.eup %7244  ;;  %v6479_v54 = vpop.f32.mrf.mxu1 }
 0x27f   :  { %v1090_v58 = vmax.f32 %v6479_v54, 1e-24  ;;  %v1114_v61 = vmul.f32 %v7245_v53, %v7964_v7 }
 0x280   :  { %v7247_v5 = vpop.eup %7246  ;;  %v8264_v4 = vpop.f32.mrf.mxu1 }
 0x281   :  { %7254 = vrsqrt.f32 %v1090_v58  ;;  %v1113_v27 = vmul.f32 %v7247_v5, %v7969_v10  ;;  %v8268_v1 = vmul.f32 %v8261_v48, %v1114_v61 }
 0x282   :  { %v7249_v2 = vpop.eup %7248  ;;  %v6482_v35 = vpop.f32.mrf.mxu1 }
 0x283   :  { %v1092_v59 = vmax.f32 %v6482_v35, 1e-24  ;;  %v8271_v3 = vmul.f32 %v8261_v48, %v1113_v27  ;;  %v1116_v9 = vmul.f32 %v7249_v2, %v7978_v15 }
 0x284   :  { %v8274_v54 = vpop.f32.mrf.mxu1 }
 0x285   :  { %7256 = vrsqrt.f32 %v1092_v59  ;;  %6545 = vmatprep.mubr.msk.f32.mxu0 %vm1217_vm1, %v8271_v3  ;;  %v8279_v7 = vmul.f32 %v8261_v48, %v1116_v9 }
 0x286   :  { %v7251_v10 = vpop.eup %7250  ;;  %v6485_v53 = vpop.f32.mrf.mxu1 }
 0x287   :  { %v1094_v58 = vmax.f32 %v6485_v53, 1e-24  ;;  %v1118_v61 = vmul.f32 %v7251_v10, %v7994_v23 }
 0x288   :  { %v8282_v35 = vpop.f32.mrf.mxu1 }
 0x289   :  { %7258 = vrsqrt.f32 %v1094_v58  ;;  %v8285_v5 = vmul.f32 %v8261_v48, %v1118_v61 }
 0x28a   :  { %v7253_v15 = vpop.eup %7252  ;;  %v6488_v27 = vpop.f32.mrf.mxu1 }
 0x28b   :  { %10813 = vst [vmem:[#allocation20_spill] sm:$0xff] %v8285_v5  ;;  %v1096_v2 = vmax.f32 %v6488_v27, 1e-24  ;;  %v1120_v59 = vmul.f32 %v7253_v15, %v8010_v31 }
 0x28c   :  { %v8288_v21 = vpop.f32.mrf.mxu1 }
 0x28d   :  { %7260 = vrsqrt.f32 %v1096_v2  ;;  %v8291_v9 = vmul.f32 %v8261_v48, %v1120_v59 }
 0x28e   :  { %v7255_v53 = vpop.eup %7254  ;;  %v8293_v13 = vpop.f32.mrf.mxu1 }
 0x28f   :  { %10814 = vst [vmem:[#allocation21_spill] sm:$0xff] %v8291_v9  ;;  %v1122_v23 = vmul.f32 %v7255_v53, %v8026_v39 }
 0x290   :  { %v8296_v10 = vpop.f32.mrf.mxu1 }
 0x291   :  { %v8299_v58 = vmul.f32 %v8261_v48, %v1122_v23 }
 0x292   :  { %v7257_v61 = vpop.eup %7256  ;;  %v8301_v27 = vpop.f32.mrf.mxu1 }
 0x293   :  { %10815 = vst [vmem:[#allocation22_spill] sm:$0xff] %v8299_v58  ;;  %v1124_v31 = vmul.f32 %v7257_v61, %v8040_v47 }
 0x294   :  { %v1012_v15 = vpop.f32.mrf.mxu1 }
 0x295   :  { %v8305_v2 = vmul.f32 %v8261_v48, %v1124_v31 }
 0x296   :  { %v7259_v59 = vpop.eup %7258  ;;  %v6497_v63 = vpop.f32.mrf.mxu1 }
 0x297   :  { %10816 = vst [vmem:[#allocation23_spill] sm:$0xff] %v8305_v2  ;;  %v1126_v62 = vmul.f32 %v7259_v59, %v8053_v56 }
 0x298   :  { %v1022_v57 = vpop.f32.mrf.mxu1 }
 0x299   :  { %v8309_v39 = vmul.f32 %v8261_v48, %v1126_v62 }
 0x29a   :  { %v7261_v53 = vpop.eup %7260  ;;  %v6500_v23 = vpop.f32.mrf.mxu1 }
 0x29b   :  { %10817 = vst [vmem:[#allocation24_spill] sm:$0xff] %v8309_v39  ;;  %v1128_v55 = vmul.f32 %v7261_v53, %v8073_v8 }
 0x29c   :  { %v1032_v52 = vpop.f32.mrf.mxu1 }
 0x29d   :  { %v8313_v49 = vmul.f32 %v8261_v48, %v1128_v55  ;;  %v1155_v16 = vmax.f32 %v1032_v52, 1e-24 }
 0x29e   :  { %v6503_v47 = vpop.f32.mrf.mxu1 }
 0x29f   :  { %10818 = vst [vmem:[#allocation25_spill] sm:$0xff] %v8313_v49  ;;  %v1158_v49 = vmax.f32 %v6503_v47, 1e-24 }
 0x2a0   :  { %v1042_v61 = vpop.f32.mrf.mxu1 }
 0x2a1   :  { %v1157_v53 = vmax.f32 %v1042_v61, 1e-24  ;;  %v1154_v61 = vmax.f32 %v6497_v63, 1e-24 }
 0x2a2   :  { %v6506_v31 = vpop.f32.mrf.mxu1 }
 0x2a3   :  { %v1160_v55 = vmax.f32 %v6506_v31, 1e-24 }
 0x2a4   :  { %v1052_v40 = vpop.f32.mrf.mxu1 }
 0x2a5   :  { %v1159_v59 = vmax.f32 %v1052_v40, 1e-24 }
 0x2a6   :  { %v6509_v44 = vpop.f32.mrf.mxu1 }
 0x2a7   :  { %v1162_v22 = vmax.f32 %v6509_v44, 1e-24  ;;  %v1153_v44 = vmax.f32 %v1022_v57, 1e-24  ;;  %v1149_v57 = vmax.f32 %v8296_v10, 1e-24 }
 0x2a8   :  { %v1062_v32 = vpop.f32.mrf.mxu1  ;;  %v1150_v10 = vmax.f32 %v8293_v13, 1e-24 }
 0x2a9   :  { %7262 = vrsqrt.f32 %v1162_v22  ;;  %v1161_v56 = vmax.f32 %v1062_v32, 1e-24  ;;  %v1156_v22 = vmax.f32 %v6500_v23, 1e-24  ;;  %v1083_v23 = vmax.f32 %v8253_v11, 1e-24 }
 0x2aa   :  { %v6512_v62 = vpop.f32.mrf.mxu1 }
 0x2ab   :  { %7264 = vrsqrt.f32 %v1161_v56  ;;  %v1164_v0 = vmax.f32 %v6512_v62, 1e-24  ;;  %v1085_v56 = vmax.f32 %v8255_v38, 1e-24  ;;  %v1087_v62 = vmax.f32 %v8258_v50, 1e-24 }
 0x2ac   :  { %v1072_v29 = vpop.f32.mrf.mxu1  ;;  %v1089_v50 = vmax.f32 %v8264_v4, 1e-24  ;;  %v1091_v4 = vmax.f32 %v8274_v54, 1e-24 }
 0x2ad   :  { %7266 = vrsqrt.f32 %v1164_v0  ;;  %v1163_v8 = vmax.f32 %v1072_v29, 1e-24  ;;  %v1151_v29 = vmax.f32 %v1012_v15, 1e-24 }
 0x2ae   :  { %7268 = vrsqrt.f32 %v1159_v59 }
 0x2af   :  { %7270 = vrsqrt.f32 %v1163_v8 }
 0x2b0   :  { %7272 = vrsqrt.f32 %v1157_v53 }
 0x2b1   :  { %7274 = vrsqrt.f32 %v1160_v55  ;;  %v1093_v55 = vmax.f32 %v8282_v35, 1e-24 }
 0x2b2   :  { %7276 = vrsqrt.f32 %v1155_v16 }
 0x2b3   :  { %7278 = vrsqrt.f32 %v1158_v49 }
 0x2b4   :  { %7280 = vrsqrt.f32 %v1153_v44  ;;  %v1095_v44 = vmax.f32 %v8288_v21, 1e-24 }
 0x2b5   :  { %7282 = vrsqrt.f32 %v1156_v22 }
 0x2b6   :  { %v7263_v14 = vpop.eup %7262  ;;  %7284 = vrsqrt.f32 %v1151_v29 }
 0x2b7   :  { %v8316_v32 = vmul.f32 %v7263_v14, %v8213_v12  ;;  %v1152_v12 = vmax.f32 %v8301_v27, 1e-24  ;;  %7286 = vrsqrt.f32 %v1154_v61 }
 0x2b8   :  { %v7265_v40 = vpop.eup %7264  ;;  %7288 = vrsqrt.f32 %v1149_v57 }
 0x2b9   :  { %1775 = vrot.lane.b32.xlu1 %v8316_v32, %s7678_s3  ;;  %v8321_v47 = vmul.f32 %v7265_v40, %v8225_v17  ;;  %7290 = vrsqrt.f32 %v1152_v12  ;;  %v10825_v12 = vld [vmem:[#allocation4_spill] sm:$0xff] }
 0x2ba   :  { %v7267_v0 = vpop.eup %7266  ;;  %7292 = vrsqrt.f32 %v1150_v10  ;;  %v10828_v10 = vld [vmem:[#allocation5_spill] sm:$0xff] }
 0x2bb   :  { %v7269_v52 = vpop.eup %7268  ;;  %v8324_v16 = vmul.f32 %v7267_v0, %v8235_v6  ;;  %7294 = vrsqrt.f32 %v1083_v23  ;;  %v10832_v23 = vld [vmem:[#allocation6_spill] sm:$0xff] }
 0x2bc   :  { %v7271_v49 = vpop.eup %7270  ;;  %v8340_v17 = vmul.f32 %v7269_v52, %v8203_v25  ;;  %7296 = vrsqrt.f32 %v1085_v56  ;;  %v10835_v56 = vld [vmem:[#allocation11_spill] sm:$0xff] }
 0x2bd   :  { %1773 = vrot.lane.b32.xlu1 %v8321_v47, %s7678_s3  ;;  %1779 = vrot.lane.b32.xlu0 %v8324_v16, %s7678_s3  ;;  %v8331_v14 = vmul.f32 %v7271_v49, %v8243_v45  ;;  %v7273_v63 = vpop.eup %7272  ;;  %7298 = vrsqrt.f32 %v1087_v62  ;;  %v10838_v62 = vld [vmem:[#allocation14_spill] sm:$0xff] }
 0x2be   :  { %6513 = vmatprep.subr.msk.mxu0 %vm1217_vm1, %v8324_v16  ;;  %v7275_v6 = vpop.eup %7274  ;;  %v8352_v25 = vmul.f32 %v7273_v63, %v8181_v33  ;;  %7300 = vrsqrt.f32 %v1089_v50  ;;  %v10840_v50 = vld [vmem:[#allocation16_spill] sm:$0xff] }
 0x2bf   :  { %6514 = vmatpush3.xpose.msk.msra.mxu0 %vm1217_vm1, %v8324_v16  ;;  %v7277_v45 = vpop.eup %7276  ;;  %v8355_v27 = vmul.f32 %v7275_v6, %v8191_v20  ;;  %7302 = vrsqrt.f32 %v1091_v4 }
 0x2c0   :  { %6515 = vmatprep.subr.msk.mxu0 %vm1217_vm1, %v8331_v14  ;;  %v7279_v15 = vpop.eup %7278  ;;  %v8367_v33 = vmul.f32 %v7277_v45, %v8159_v41  ;;  %7304 = vrsqrt.f32 %v1093_v55 }
 0x2c1   :  { %1769 = vrot.lane.b32.xlu1 %v8340_v17, %s7678_s3  ;;  %1777 = vrot.lane.b32.xlu0 %v8331_v14, %s7678_s3  ;;  %v7281_v13 = vpop.eup %7280  ;;  %v8370_v20 = vmul.f32 %v7279_v15, %v8169_v28  ;;  %7306 = vrsqrt.f32 %v1095_v44  ;;  %v10829_v15 = vld [vmem:[#allocation7_spill] sm:$0xff] }
 0x2c2   :  { %v7283_v31 = vpop.eup %7282  ;;  %v8382_v41 = vmul.f32 %v7281_v13, %v8137_v46  ;;  %v10830_v13 = vld [vmem:[#allocation3_spill] sm:$0xff] }
 0x2c3   :  { %6516 = vmatpush3.xpose.msk.msra.mxu0 %vm1217_vm1, %v8331_v14  ;;  %v7285_v11 = vpop.eup %7284  ;;  %v8385_v28 = vmul.f32 %v7283_v31, %v8147_v36  ;;  %v10833_v31 = vld [vmem:[#allocation10_spill] sm:$0xff] }
 0x2c4   :  { %6517 = vmatprep.subr.msk.mxu0 %vm1217_vm1, %v8316_v32  ;;  %v7287_v59 = vpop.eup %7286  ;;  %v8397_v46 = vmul.f32 %v7285_v11, %v8116_v37  ;;  %v10834_v11 = vld [vmem:[#allocation9_spill] sm:$0xff] }
 0x2c5   :  { %1765 = vrot.lane.b32.xlu1 %v8352_v25, %s7678_s3  ;;  %1771 = vrot.lane.b32.xlu0 %v8355_v27, %s7678_s3  ;;  %v7289_v38 = vpop.eup %7288  ;;  %v8400_v36 = vmul.f32 %v7287_v59, %v8125_v43  ;;  %v10836_v59 = vld [vmem:[#allocation12_spill] sm:$0xff] }
 0x2c6   :  { %v7291_v8 = vpop.eup %7290  ;;  %v8412_v37 = vmul.f32 %v7289_v38, %v8095_v24  ;;  %v10837_v38 = vld [vmem:[#allocation13_spill] sm:$0xff] }
 0x2c7   :  { %6518 = vmatpush3.xpose.msk.msra.mxu0 %vm1217_vm1, %v8316_v32  ;;  %v8415_v43 = vmul.f32 %v7291_v8, %v8105_v30  ;;  %v7293_v53 = vpop.eup %7292  ;;  %v10839_v8 = vld [vmem:[#allocation15_spill] sm:$0xff] }
 0x2c8   :  { %6519 = vmatprep.subr.msk.mxu0 %vm1217_vm1, %v8321_v47  ;;  %v8427_v24 = vmul.f32 %v7293_v53, %v8083_v19  ;;  %v7295_v30 = vpop.eup %7294 }
 0x2c9   :  { %1761 = vrot.lane.b32.xlu1 %v8367_v33, %s7678_s3  ;;  %1767 = vrot.lane.b32.xlu0 %v8370_v20, %s7678_s3  ;;  %v1115_v54 = vmul.f32 %v7295_v30, %v7983_v18  ;;  %v7297_v19 = vpop.eup %7296 }
 0x2ca   :  { %v1117_v18 = vmul.f32 %v7297_v19, %v7999_v26  ;;  %v7299_v22 = vpop.eup %7298 }
 0x2cb   :  { %6520 = vmatpush3.xpose.msk.msra.mxu0 %vm1217_vm1, %v8321_v47  ;;  %v8449_v35 = vmul.f32 %v8261_v48, %v1115_v54  ;;  %v1119_v40 = vmul.f32 %v7299_v22, %v8015_v34  ;;  %v7301_v26 = vpop.eup %7300 }
 0x2cc   :  { %6521 = vmatprep.subr.msk.mxu0 %vm1217_vm1, %v8355_v27  ;;  %v8461_v21 = vmul.f32 %v8261_v48, %v1117_v18  ;;  %v1121_v29 = vmul.f32 %v7301_v26, %v8031_v42  ;;  %v7303_v52 = vpop.eup %7302 }
 0x2cd   :  { %1757 = vrot.lane.b32.xlu1 %v8382_v41, %s7678_s3  ;;  %1763 = vrot.lane.b32.xlu0 %v8385_v28, %s7678_s3  ;;  %10819 = vst [vmem:[#allocation26_spill] sm:$0xff] %v8449_v35  ;;  %v8473_v0 = vmul.f32 %v8261_v48, %v1119_v40  ;;  %v1123_v61 = vmul.f32 %v7303_v52, %v8044_v51  ;;  %v7305_v49 = vpop.eup %7304 }
 0x2ce   :  { %10820 = vst [vmem:[#allocation27_spill] sm:$0xff] %v8461_v21  ;;  %v8485_v34 = vmul.f32 %v8261_v48, %v1121_v29  ;;  %v1125_v57 = vmul.f32 %v7305_v49, %v8061_v60  ;;  %v7307_v63 = vpop.eup %7306  ;;  %v10826_v60 = vld [vmem:[#allocation25_spill] sm:$0xff] }
 0x2cf   :  { %6522 = vmatpush3.xpose.msk.msra.mxu0 %vm1217_vm1, %v8355_v27  ;;  %10821 = vst [vmem:[#allocation28_spill] sm:$0xff] %v8473_v0  ;;  %v8497_v42 = vmul.f32 %v8261_v48, %v1123_v61  ;;  %v1127_v6 = vmul.f32 %v7307_v63, %v10825_v12 }
 0x2d0   :  { %6523 = vmatprep.subr.msk.mxu0 %vm1217_vm1, %v8340_v17  ;;  %10822 = vst [vmem:[#allocation29_spill] sm:$0xff] %v8485_v34  ;;  %v8509_v51 = vmul.f32 %v8261_v48, %v1125_v57 }
 0x2d1   :  { %1753 = vrot.lane.b32.xlu1 %v8397_v46, %s7678_s3  ;;  %1759 = vrot.lane.b32.xlu0 %v8400_v36, %s7678_s3  ;;  %10823 = vst [vmem:[#allocation30_spill] sm:$0xff] %v8497_v42  ;;  %v8521_v45 = vmul.f32 %v8261_v48, %v1127_v6  ;;  %v10831_v48 = vld [vmem:[#allocation8_spill] sm:$0xff] }
 0x2d2   :  { %10824 = vst [vmem:[#allocation31_spill] sm:$0xff] %v8509_v51 }
 0x2d3   :  { %6524 = vmatpush3.xpose.msk.msra.mxu0 %vm1217_vm1, %v8340_v17  ;;  %10827 = vst [vmem:[#allocation4_spill] sm:$0xff] %v8521_v45 }
 0x2d4   :  { %6525 = vmatprep.subr.msk.mxu0 %vm1217_vm1, %v8370_v20 }
 0x2d5   :  { %1749 = vrot.lane.b32.xlu1 %v8412_v37, %s7678_s3  ;;  %1755 = vrot.lane.b32.xlu0 %v8415_v43, %s7678_s3 }
 0x2d7   :  { %6526 = vmatpush3.xpose.msk.msra.mxu0 %vm1217_vm1, %v8370_v20 }
 0x2d8   :  { %6527 = vmatprep.subr.msk.mxu0 %vm1217_vm1, %v8352_v25 }
 0x2d9   :  { %1719 = vrot.lane.b32.xlu1 %v8268_v1, %s7678_s3  ;;  %1751 = vrot.lane.b32.xlu0 %v8427_v24, %s7678_s3 }
 0x2db   :  { %6528 = vmatpush3.xpose.msk.msra.mxu0 %vm1217_vm1, %v8352_v25 }
 0x2dc   :  { %6529 = vmatprep.subr.msk.mxu0 %vm1217_vm1, %v8385_v28 }
 0x2dd   :  { %1723 = vrot.lane.b32.xlu1 %v8279_v7, %s7678_s3  ;;  %1717 = vrot.lane.b32.xlu0 %v8271_v3, %s7678_s3 }
 0x2df   :  { %6530 = vmatpush3.xpose.msk.msra.mxu0 %vm1217_vm1, %v8385_v28 }
 0x2e0   :  { %6531 = vmatprep.subr.msk.mxu0 %vm1217_vm1, %v8367_v33 }
 0x2e1   :  { %1727 = vrot.lane.b32.xlu1 %v8285_v5, %s7678_s3  ;;  %1721 = vrot.lane.b32.xlu0 %v8449_v35, %s7678_s3 }
 0x2e3   :  { %6532 = vmatpush3.xpose.msk.msra.mxu0 %vm1217_vm1, %v8367_v33 }
 0x2e4   :  { %6533 = vmatprep.subr.msk.mxu0 %vm1217_vm1, %v8400_v36 }
 0x2e5   :  { %1731 = vrot.lane.b32.xlu1 %v8291_v9, %s7678_s3  ;;  %1725 = vrot.lane.b32.xlu0 %v8461_v21, %s7678_s3 }
 0x2e7   :  { %6534 = vmatpush3.xpose.msk.msra.mxu0 %vm1217_vm1, %v8400_v36 }
 0x2e8   :  { %6535 = vmatprep.subr.msk.mxu0 %vm1217_vm1, %v8382_v41 }
 0x2e9   :  { %1735 = vrot.lane.b32.xlu1 %v8299_v58, %s7678_s3  ;;  %1729 = vrot.lane.b32.xlu0 %v8473_v0, %s7678_s3 }
 0x2eb   :  { %6536 = vmatpush3.xpose.msk.msra.mxu0 %vm1217_vm1, %v8382_v41 }
 0x2ec   :  { %6537 = vmatprep.subr.msk.mxu0 %vm1217_vm1, %v8415_v43 }
 0x2ed   :  { %1739 = vrot.lane.b32.xlu1 %v8305_v2, %s7678_s3  ;;  %1733 = vrot.lane.b32.xlu0 %v8485_v34, %s7678_s3 }
 0x2ef   :  { %6538 = vmatpush3.xpose.msk.msra.mxu0 %vm1217_vm1, %v8415_v43 }
 0x2f0   :  { %6539 = vmatprep.subr.msk.mxu0 %vm1217_vm1, %v8397_v46 }
 0x2f1   :  { %1743 = vrot.lane.b32.xlu1 %v8309_v39, %s7678_s3  ;;  %1737 = vrot.lane.b32.xlu0 %v8497_v42, %s7678_s3 }
 0x2f3   :  { %6540 = vmatpush3.xpose.msk.msra.mxu0 %vm1217_vm1, %v8397_v46 }
 0x2f4   :  { %6541 = vmatprep.subr.msk.mxu0 %vm1217_vm1, %v8427_v24 }
 0x2f5   :  { %1747 = vrot.lane.b32.xlu1 %v10826_v60, %s7678_s3  ;;  %1741 = vrot.lane.b32.xlu0 %v8509_v51, %s7678_s3 }
 0x2f7   :  { %6542 = vmatpush3.xpose.msk.msra.mxu0 %vm1217_vm1, %v8427_v24 }
 0x2f8   :  { %6543 = vmatprep.subr.msk.mxu0 %vm1217_vm1, %v8412_v37 }
 0x2f9   :  { %2130 = vrot.lane.b32.xlu1 %v10828_v10, %s7678_s3  ;;  %1745 = vrot.lane.b32.xlu0 %v8521_v45, %s7678_s3 }
 0x2fb   :  { %6544 = vmatpush3.xpose.msk.msra.mxu0 %vm1217_vm1, %v8412_v37 }
 0x2fd   :  { %2126 = vrot.lane.b32.xlu1 %v10829_v15, %s7678_s3  ;;  %2132 = vrot.lane.b32.xlu0 %v10830_v13, %s7678_s3  ;;  %v1211_v15 = vld [vmem:[%s10716_s4 + $0x50] sm:$0xff] }
 0x2fe   :  { %6546 = vmatmul.mubr.msk.f32.vlgmr.msra.gmra.mxu0 %vm1217_vm1, %v8268_v1 }
 0x2ff   :  { %6548 = vmatprep.mubr.msk.f32.mxu0 %vm1217_vm1, %v8449_v35 }
 0x301   :  { %2124 = vrot.lane.b32.xlu1 %v10831_v48, %s7678_s3  ;;  %2128 = vrot.lane.b32.xlu0 %v10832_v23, %s7678_s3 }
 0x302   :  { %6549 = vmatmul.mubr.msk.f32.gmra.mxu0 %vm1217_vm1, %v8279_v7 }
 0x303   :  { %6551 = vmatprep.mubr.msk.f32.mxu0 %vm1217_vm1, %v8461_v21 }
 0x305   :  { %2120 = vrot.lane.b32.xlu1 %v10833_v31, %s7678_s3  ;;  %2122 = vrot.lane.b32.xlu0 %v10834_v11, %s7678_s3 }
 0x306   :  { %6552 = vmatmul.mubr.msk.f32.gmra.mxu0 %vm1217_vm1, %v8285_v5 }
 0x307   :  { %6554 = vmatprep.mubr.msk.f32.mxu0 %vm1217_vm1, %v8473_v0 }
 0x309   :  { %2118 = vrot.lane.b32.xlu1 %v10835_v56, %s7678_s3  ;;  %2116 = vrot.lane.b32.xlu0 %v10836_v59, %s7678_s3 }
 0x30a   :  { %6555 = vmatmul.mubr.msk.f32.gmra.mxu0 %vm1217_vm1, %v8291_v9  ;;  %v1213_v9 = vld [vmem:[%s10716_s4 + $0x60] sm:$0xff] }
 0x30b   :  { %6557 = vmatprep.mubr.msk.f32.mxu0 %vm1217_vm1, %v8485_v34 }
 0x30d   :  { %2114 = vrot.lane.b32.xlu0 %v10837_v38, %s7678_s3 }
 0x30e   :  { %6558 = vmatmul.mubr.msk.f32.gmra.mxu0 %vm1217_vm1, %v8299_v58 }
 0x30f   :  { %6560 = vmatprep.mubr.msk.f32.mxu0 %vm1217_vm1, %v8497_v42  ;;  %v1212_v42 = vld [vmem:[%s10716_s4 + $0x58] sm:$0xff] }
 0x311   :  { %2112 = vrot.lane.b32.xlu0 %v10838_v62, %s7678_s3 }
 0x312   :  { %6561 = vmatmul.mubr.msk.f32.gmra.mxu0 %vm1217_vm1, %v8305_v2 }
 0x313   :  { %6563 = vmatprep.mubr.msk.f32.mxu0 %vm1217_vm1, %v8509_v51 }
 0x315   :  { %2110 = vrot.lane.b32.xlu0 %v10839_v8, %s7678_s3  ;;  %v1203_v8 = vld [vmem:[%s10716_s4 + $0x10] sm:$0xff] }
 0x316   :  { %6564 = vmatmul.mubr.msk.f32.gmra.mxu0 %vm1217_vm1, %v8309_v39 }
 0x317   :  { %6566 = vmatprep.mubr.msk.f32.mxu0 %vm1217_vm1, %v8521_v45  ;;  %v5546_v45 = vld [vmem:[%s10716_s4 + $0x88] sm:$0xff] }
 0x319   :  { %2108 = vrot.lane.b32.xlu0 %v10840_v50, %s7678_s3 }
 0x31a   :  { %6567 = vmatmul.mubr.msk.f32.gmra.mxu0 %vm1217_vm1, %v10826_v60 }
 0x32b   :  { %v1776_v53 = vpop.permute.xlu1 %1775 }
 0x32f   :  { %v1774_v4 = vpop.permute.xlu1 %1773  ;;  %v1780_v30 = vpop.permute.xlu0 %1779 }
 0x330   :  { %6625 = vmatprep.subr.msk.mxu0 %vm1217_vm1, %v1780_v30 }
 0x331   :  { %6626 = vmatpush3.xpose.msk.msra.mxu0 %vm1217_vm1, %v1780_v30 }
 0x333   :  { %v1770_v55 = vpop.permute.xlu1 %1769  ;;  %v1778_v54 = vpop.permute.xlu0 %1777 }
 0x334   :  { %6627 = vmatprep.subr.msk.mxu0 %vm1217_vm1, %v1778_v54 }
 0x335   :  { %6628 = vmatpush3.xpose.msk.msra.mxu0 %vm1217_vm1, %v1778_v54 }
 0x336   :  { %6629 = vmatprep.subr.msk.mxu0 %vm1217_vm1, %v1776_v53 }
 0x337   :  { %v1766_v19 = vpop.permute.xlu1 %1765  ;;  %v1772_v44 = vpop.permute.xlu0 %1771 }
 0x339   :  { %6630 = vmatpush3.xpose.msk.msra.mxu0 %vm1217_vm1, %v1776_v53 }
 0x33a   :  { %6631 = vmatprep.subr.msk.mxu0 %vm1217_vm1, %v1774_v4 }
 0x33b   :  { %v1762_v18 = vpop.permute.xlu1 %1761  ;;  %v1768_v22 = vpop.permute.xlu0 %1767 }
 0x33d   :  { %6632 = vmatpush3.xpose.msk.msra.mxu0 %vm1217_vm1, %v1774_v4 }
 0x33e   :  { %6633 = vmatprep.subr.msk.mxu0 %vm1217_vm1, %v1772_v44 }
 0x33f   :  { %v1758_v40 = vpop.permute.xlu1 %1757  ;;  %v1764_v26 = vpop.permute.xlu0 %1763 }
 0x341   :  { %6634 = vmatpush3.xpose.msk.msra.mxu0 %vm1217_vm1, %v1772_v44 }
 0x342   :  { %6635 = vmatprep.subr.msk.mxu0 %vm1217_vm1, %v1770_v55 }
 0x343   :  { %v1754_v29 = vpop.permute.xlu1 %1753  ;;  %v1760_v52 = vpop.permute.xlu0 %1759 }
 0x345   :  { %6636 = vmatpush3.xpose.msk.msra.mxu0 %vm1217_vm1, %v1770_v55 }
 0x346   :  { %6637 = vmatprep.subr.msk.mxu0 %vm1217_vm1, %v1768_v22 }
 0x347   :  { %v1750_v61 = vpop.permute.xlu1 %1749  ;;  %v1756_v49 = vpop.permute.xlu0 %1755 }
 0x349   :  { %6638 = vmatpush3.xpose.msk.msra.mxu0 %vm1217_vm1, %v1768_v22 }
 0x34a   :  { %6639 = vmatprep.subr.msk.mxu0 %vm1217_vm1, %v1766_v19 }
 0x34b   :  { %v1720_v57 = vpop.permute.xlu1 %1719  ;;  %v1752_v63 = vpop.permute.xlu0 %1751 }
 0x34d   :  { %6640 = vmatpush3.xpose.msk.msra.mxu0 %vm1217_vm1, %v1766_v19 }
 0x34e   :  { %6641 = vmatprep.subr.msk.mxu0 %vm1217_vm1, %v1764_v26 }
 0x34f   :  { %v1724_v12 = vpop.permute.xlu1 %1723  ;;  %v1718_v6 = vpop.permute.xlu0 %1717 }
 0x350   :  { %6657 = vmatprep.mubr.msk.f32.mxu0 %vm1217_vm1, %v1718_v6 }
 0x351   :  { %6642 = vmatpush3.xpose.msk.msra.mxu0 %vm1217_vm1, %v1764_v26 }
 0x352   :  { %6643 = vmatprep.subr.msk.mxu0 %vm1217_vm1, %v1762_v18 }
 0x353   :  { %v1728_v53 = vpop.permute.xlu1 %1727  ;;  %v1722_v4 = vpop.permute.xlu0 %1721 }
 0x355   :  { %6644 = vmatpush3.xpose.msk.msra.mxu0 %vm1217_vm1, %v1762_v18 }
 0x356   :  { %6645 = vmatprep.subr.msk.mxu0 %vm1217_vm1, %v1760_v52 }
 0x357   :  { %v1732_v30 = vpop.permute.xlu1 %1731  ;;  %v1726_v55 = vpop.permute.xlu0 %1725 }
 0x359   :  { %6646 = vmatpush3.xpose.msk.msra.mxu0 %vm1217_vm1, %v1760_v52 }
 0x35a   :  { %6647 = vmatprep.subr.msk.mxu0 %vm1217_vm1, %v1758_v40 }
 0x35b   :  { %v1736_v54 = vpop.permute.xlu1 %1735  ;;  %v1730_v19 = vpop.permute.xlu0 %1729 }
 0x35d   :  { %6648 = vmatpush3.xpose.msk.msra.mxu0 %vm1217_vm1, %v1758_v40 }
 0x35e   :  { %6649 = vmatprep.subr.msk.mxu0 %vm1217_vm1, %v1756_v49 }
 0x35f   :  { %v1740_v44 = vpop.permute.xlu1 %1739  ;;  %v1734_v22 = vpop.permute.xlu0 %1733 }
 0x361   :  { %6650 = vmatpush3.xpose.msk.msra.mxu0 %vm1217_vm1, %v1756_v49 }
 0x362   :  { %6651 = vmatprep.subr.msk.mxu0 %vm1217_vm1, %v1754_v29 }
 0x363   :  { %v1744_v18 = vpop.permute.xlu1 %1743  ;;  %v1738_v26 = vpop.permute.xlu0 %1737 }
 0x365   :  { %6652 = vmatpush3.xpose.msk.msra.mxu0 %vm1217_vm1, %v1754_v29 }
 0x366   :  { %6653 = vmatprep.subr.msk.mxu0 %vm1217_vm1, %v1752_v63 }
 0x367   :  { %v1748_v52 = vpop.permute.xlu1 %1747  ;;  %v1742_v6 = vpop.permute.xlu0 %1741 }
 0x369   :  { %6654 = vmatpush3.xpose.msk.msra.mxu0 %vm1217_vm1, %v1752_v63 }
 0x36a   :  { %6655 = vmatprep.subr.msk.mxu0 %vm1217_vm1, %v1750_v61 }
 0x36b   :  { %v8617_v40 = vpop.permute.xlu1 %2130  ;;  %v1746_v50 = vpop.permute.xlu0 %1745 }
 0x36d   :  { %6656 = vmatpush3.xpose.msk.msra.mxu0 %vm1217_vm1, %v1750_v61 }
 0x36f   :  { %v8620_v49 = vpop.permute.xlu1 %2126  ;;  %v8622_v62 = vpop.permute.xlu0 %2132 }
 0x370   :  { %6658 = vmatmul.mubr.msk.f32.vlgmr.msra.gmra.mxu0 %vm1217_vm1, %v1720_v57  ;;  %6681 = vmatprep.subr.mxu0 %v8622_v62 }
 0x371   :  { %7209 = vmatprep.subr.mxu1 %v8622_v62  ;;  %6660 = vmatprep.mubr.msk.f32.mxu0 %vm1217_vm1, %v1722_v4 }
 0x372   :  { %6682 = vmatpush3.msra.mxu0 %v8622_v62 }
 0x373   :  { %6683 = vmatprep.subr.mxu0 %v8617_v40  ;;  %v8630_v29 = vpop.permute.xlu1 %2124  ;;  %v8632_v63 = vpop.permute.xlu0 %2128 }
 0x374   :  { %6684 = vmatpush3.msra.mxu0 %v8617_v40 }
 0x375   :  { %6661 = vmatmul.mubr.msk.f32.gmra.mxu0 %vm1217_vm1, %v1724_v12  ;;  %6685 = vmatprep.subr.mxu0 %v8632_v63 }
 0x376   :  { %6663 = vmatprep.mubr.msk.f32.mxu0 %vm1217_vm1, %v1726_v55  ;;  %6686 = vmatpush3.msra.mxu0 %v8632_v63 }
 0x377   :  { %6687 = vmatprep.subr.mxu0 %v8620_v49  ;;  %v8640_v61 = vpop.permute.xlu0 %2122  ;;  %v8642_v57 = vpop.permute.xlu1 %2120 }
 0x378   :  { %6688 = vmatpush3.msra.mxu0 %v8620_v49 }
 0x379   :  { %6664 = vmatmul.mubr.msk.f32.gmra.mxu0 %vm1217_vm1, %v1728_v53  ;;  %6689 = vmatprep.subr.mxu0 %v8630_v29 }
 0x37a   :  { %6666 = vmatprep.mubr.msk.f32.mxu0 %vm1217_vm1, %v1730_v19  ;;  %6690 = vmatpush3.msra.mxu0 %v8630_v29  ;;  %v1202_v19 = vld [vmem:[%s10716_s4 + $0x8] sm:$0xff] }
 0x37b   :  { %6691 = vmatprep.subr.mxu0 %v8640_v61  ;;  %v8650_v12 = vpop.permute.xlu0 %2116  ;;  %v8655_v4 = vpop.permute.xlu1 %2118 }
 0x37c   :  { %6692 = vmatpush3.msra.mxu0 %v8640_v61 }
 0x37d   :  { %6667 = vmatmul.mubr.msk.f32.gmra.mxu0 %vm1217_vm1, %v1732_v30  ;;  %6693 = vmatprep.subr.mxu0 %v8642_v57 }
 0x37e   :  { %6669 = vmatprep.mubr.msk.f32.mxu0 %vm1217_vm1, %v1734_v22  ;;  %6694 = vmatpush3.msra.mxu0 %v8642_v57  ;;  %v1201_v22 = vld [vmem:[%s10716_s4] sm:$0xff] }
 0x37f   :  { %6695 = vmatprep.subr.mxu0 %v8655_v4  ;;  %v8660_v53 = vpop.permute.xlu0 %2114 }
 0x380   :  { %6696 = vmatpush3.msra.mxu0 %v8655_v4 }
 0x381   :  { %6670 = vmatmul.mubr.msk.f32.gmra.mxu0 %vm1217_vm1, %v1736_v54  ;;  %6697 = vmatprep.subr.mxu0 %v8650_v12 }
 0x382   :  { %6672 = vmatprep.mubr.msk.f32.mxu0 %vm1217_vm1, %v1738_v26  ;;  %6698 = vmatpush3.msra.mxu0 %v8650_v12  ;;  %v1204_v26 = vld [vmem:[%s10716_s4 + $0x18] sm:$0xff] }
 0x383   :  { %6699 = vmatprep.subr.mxu0 %v8660_v53  ;;  %v8668_v30 = vpop.permute.xlu0 %2112 }
 0x384   :  { %6700 = vmatpush3.msra.mxu0 %v8660_v53 }
 0x385   :  { %6673 = vmatmul.mubr.msk.f32.gmra.mxu0 %vm1217_vm1, %v1740_v44  ;;  %6701 = vmatprep.subr.mxu0 %v8668_v30 }
 0x386   :  { %6675 = vmatprep.mubr.msk.f32.mxu0 %vm1217_vm1, %v1742_v6  ;;  %6702 = vmatpush3.msra.mxu0 %v8668_v30 }
 0x387   :  { %v8675_v55 = vpop.permute.xlu0 %2110 }
 0x388   :  { %6703 = vmatprep.subr.mxu0 %v8675_v55 }
 0x389   :  { %6676 = vmatmul.mubr.msk.f32.gmra.mxu0 %vm1217_vm1, %v1744_v18 }
 0x38a   :  { %6678 = vmatprep.mubr.msk.f32.mxu0 %vm1217_vm1, %v1746_v50  ;;  %6704 = vmatpush3.msra.mxu0 %v8675_v55 }
 0x38b   :  { %v8681_v54 = vpop.permute.xlu0 %2108 }
 0x38c   :  { %6705 = vmatprep.subr.mxu0 %v8681_v54 }
 0x38d   :  { %6679 = vmatmul.mubr.msk.f32.gmra.mxu0 %vm1217_vm1, %v1748_v52 }
 0x38e   :  { %6706 = vmatpush3.msra.mxu0 %v8681_v54 }
 0x3be   :  { %v6547_v44 = vpop.f32.mrf.mxu0 }
 0x3bf   :  { %v1386_v50 = vadd.f32 %v6547_v44, %v1202_v19  ;;  %v1206_v19 = vld [vmem:[%s10716_s4 + $0x28] sm:$0xff] }
 0x3c0   :  { %v1380_v18 = vpop.f32.mrf.mxu0 }
 0x3c1   :  { %v1461_v6 = vmul.f32 1.442695, %v1386_v50  ;;  %v1381_v59 = vadd.f32 %v1380_v18, %v1201_v22  ;;  %v1205_v22 = vld [vmem:[%s10716_s4 + $0x20] sm:$0xff] }
 0x3c2   :  { %v6550_v52 = vpop.f32.mrf.mxu0 }
 0x3c3   :  { %7308 = vpow2.f32 %v1461_v6  ;;  %v1459_v31 = vmul.f32 1.442695, %v1381_v59  ;;  %v1396_v38 = vadd.f32 %v6550_v52, %v1204_v26  ;;  %v1207_v52 = vld [vmem:[%s10716_s4 + $0x30] sm:$0xff] }
 0x3c4   :  { %v1390_v48 = vpop.f32.mrf.mxu0 }
 0x3c5   :  { %7310 = vpow2.f32 %v1459_v31  ;;  %v1465_v56 = vmul.f32 1.442695, %v1396_v38  ;;  %v1391_v23 = vadd.f32 %v1390_v48, %v1203_v8  ;;  %v1208_v31 = vld [vmem:[%s10716_s4 + $0x38] sm:$0xff] }
 0x3c6   :  { %v6553_v44 = vpop.f32.mrf.mxu0 }
 0x3c7   :  { %v1463_v50 = vmul.f32 1.442695, %v1391_v23  ;;  %7312 = vpow2.f32 %v1465_v56  ;;  %v1406_v11 = vadd.f32 %v6553_v44, %v1206_v19 }
 0x3c8   :  { %v1400_v18 = vpop.f32.mrf.mxu0 }
 0x3c9   :  { %v1401_v6 = vadd.f32 %v1400_v18, %v1205_v22  ;;  %7314 = vpow2.f32 %v1463_v50  ;;  %v1469_v38 = vmul.f32 1.442695, %v1406_v11  ;;  %v1210_v11 = vld [vmem:[%s10716_s4 + $0x48] sm:$0xff] }
 0x3ca   :  { %v6556_v59 = vpop.f32.mrf.mxu0 }
 0x3cb   :  { %v1467_v48 = vmul.f32 1.442695, %v1401_v6  ;;  %v1416_v8 = vadd.f32 %v6556_v59, %v1208_v31  ;;  %v1209_v59 = vld [vmem:[%s10716_s4 + $0x40] sm:$0xff] }
 0x3cc   :  { %v1410_v26 = vpop.f32.mrf.mxu0 }
 0x3cd   :  { %7316 = vpow2.f32 %v1467_v48  ;;  %v1473_v56 = vmul.f32 1.442695, %v1416_v8  ;;  %v1411_v19 = vadd.f32 %v1410_v26, %v1207_v52 }
 0x3ce   :  { %7318 = vpow2.f32 %v1469_v38  ;;  %v6559_v22 = vpop.f32.mrf.mxu0 }
 0x3cf   :  { %7320 = vpow2.f32 %v1473_v56  ;;  %v1471_v50 = vmul.f32 1.442695, %v1411_v19  ;;  %v1426_v18 = vadd.f32 %v6559_v22, %v1210_v11 }
 0x3d0   :  { %v8710_v23 = vpop.eup %7308  ;;  %v1420_v31 = vpop.f32.mrf.mxu0 }
 0x3d1   :  { %1493 = vadd.xlane.f32.xlu0 %v8710_v23  ;;  %7322 = vpow2.f32 %v1471_v50  ;;  %v1477_v38 = vmul.f32 1.442695, %v1426_v18  ;;  %v1421_v8 = vadd.f32 %v1420_v31, %v1209_v59  ;;  %v10841_v18 = vld [vmem:[#allocation17_spill] sm:$0xff]  ;;  %v10842_v31 = vld [vmem:[#allocation18_spill] sm:$0xff] }
 0x3d2   :  { %v8713_v44 = vpop.eup %7310  ;;  %v6562_v59 = vpop.f32.mrf.mxu0 }
 0x3d3   :  { %1491 = vadd.xlane.f32.xlu1 %v8713_v44  ;;  %7324 = vpow2.f32 %v1477_v38  ;;  %v1475_v52 = vmul.f32 1.442695, %v1421_v8  ;;  %v1436_v0 = vadd.f32 %v6562_v59, %v1212_v42 }
 0x3d4   :  { %v8719_v6 = vpop.eup %7312  ;;  %v1430_v38 = vpop.f32.mrf.mxu0 }
 0x3d5   :  { %7326 = vpow2.f32 %v1475_v52  ;;  %v1481_v5 = vmul.f32 1.442695, %v1436_v0 }
 0x3d6   :  { %v8725_v48 = vpop.eup %7314  ;;  %v6565_v8 = vpop.f32.mrf.mxu0 }
 0x3d7   :  { %1497 = vadd.xlane.f32.xlu1 %v8719_v6 }
 0x3d8   :  { %v1440_v52 = vpop.f32.mrf.mxu0 }
 0x3da   :  { %v8727_v26 = vpop.eup %7316  ;;  %v6568_v13 = vpop.f32.mrf.mxu0 }
 0x3db   :  { %1499 = vadd.xlane.f32.xlu0 %v8727_v26  ;;  %1495 = vadd.xlane.f32.xlu1 %v8725_v48  ;;  %v8731_v56 = vpop.eup %7318 }
 0x3dc   :  { %v8734_v19 = vpop.eup %7320  ;;  %v8753_v10 = vpop.f32.mrf.mxu0 }
 0x3de   :  { %v8737_v11 = vpop.eup %7322 }
 0x3df   :  { %1501 = vadd.xlane.f32.xlu1 %v8731_v56 }
 0x3e0   :  { %v8740_v22 = vpop.eup %7324 }
 0x3e2   :  { %v8743_v50 = vpop.eup %7326 }
 0x3e3   :  { %1505 = vadd.xlane.f32.xlu1 %v8734_v19 }
 0x3e7   :  { %1503 = vadd.xlane.f32.xlu1 %v8737_v11 }
 0x3eb   :  { %1509 = vadd.xlane.f32.xlu1 %v8740_v22 }
 0x3ef   :  { %1507 = vadd.xlane.f32.xlu1 %v8743_v50 }
 0x3f1   :  { %2106 = vrot.lane.b32.xlu0 %v10841_v18, %s7678_s3  ;;  %v1431_v18 = vadd.f32 %v1430_v38, %v1211_v15 }
 0x3f3   :  { %v1479_v58 = vmul.f32 1.442695, %v1431_v18 }
 0x3f5   :  { %2104 = vrot.lane.b32.xlu0 %v10842_v31, %s7678_s3  ;;  %v5545_v31 = vld [vmem:[%s10716_s4 + $0x80] sm:$0xff] }
 0x430   :  { %v6659_v51 = vpop.f32.mrf.mxu0 }
 0x431   :  { %v1917_v60 = vadd.f32 %v6659_v51, %v5546_v45  ;;  %v1441_v51 = vadd.f32 %v1440_v52, %v1213_v9  ;;  %v1214_v45 = vld [vmem:[%s10716_s4 + $0x68] sm:$0xff]  ;;  %v5548_v9 = vld [vmem:[%s10716_s4 + $0x98] sm:$0xff] }
 0x432   :  { %v1911_v39 = vpop.f32.mrf.mxu0 }
 0x433   :  { %v1992_v34 = vmul.f32 1.442695, %v1917_v60  ;;  %v1912_v2 = vadd.f32 %v5545_v31, %v1911_v39  ;;  %v1446_v39 = vadd.f32 %v6565_v8, %v1214_v45  ;;  %v1483_v42 = vmul.f32 1.442695, %v1441_v51 }
 0x435   :  { %7328 = vpow2.f32 %v1992_v34  ;;  %v1990_v21 = vmul.f32 1.442695, %v1912_v2  ;;  %v6662_v35 = vpop.f32.mrf.mxu0  ;;  %v1216_v2 = vld [vmem:[%s10716_s4 + $0x78] sm:$0xff]  ;;  %v1485_v60 = vmul.f32 1.442695, %v1446_v39 }
 0x436   :  { %v1927_v31 = vadd.f32 %v6662_v35, %v5548_v9  ;;  %v5550_v35 = vld [vmem:[%s10716_s4 + $0xa8] sm:$0xff] }
 0x437   :  { %7330 = vpow2.f32 %v1990_v21  ;;  %v1921_v15 = vpop.f32.mrf.mxu0  ;;  %v1456_v21 = vadd.f32 %v6568_v13, %v1216_v2  ;;  %v5547_v13 = vld [vmem:[%s10716_s4 + $0x90] sm:$0xff] }
 0x438   :  { %7332 = vpow2.f32 %v1479_v58  ;;  %v1996_v8 = vmul.f32 1.442695, %v1927_v31  ;;  %v1922_v52 = vadd.f32 %v5547_v13, %v1921_v15  ;;  %v5551_v15 = vld [vmem:[%s10716_s4 + $0xb0] sm:$0xff] }
 0x439   :  { %7334 = vpow2.f32 %v1481_v5  ;;  %v6665_v34 = vpop.f32.mrf.mxu0  ;;  %v1489_v0 = vmul.f32 1.442695, %v1456_v21 }
 0x43a   :  { %7336 = vpow2.f32 %v1483_v42  ;;  %v1994_v39 = vmul.f32 1.442695, %v1922_v52  ;;  %v1937_v42 = vadd.f32 %v6665_v34, %v5550_v35  ;;  %v5552_v35 = vld [vmem:[%s10716_s4 + $0xb8] sm:$0xff] }
 0x43b   :  { %v1931_v58 = vpop.f32.mrf.mxu0  ;;  %7338 = vpow2.f32 %v1485_v60  ;;  %v5549_v60 = vld [vmem:[%s10716_s4 + $0xa0] sm:$0xff] }
 0x43c   :  { %7340 = vpow2.f32 %v1489_v0  ;;  %v2000_v9 = vmul.f32 1.442695, %v1937_v42  ;;  %v1932_v0 = vadd.f32 %v5549_v60, %v1931_v58  ;;  %v5554_v58 = vld [vmem:[%s10716_s4 + $0xc8] sm:$0xff] }
 0x43d   :  { %v6668_v38 = vpop.f32.mrf.mxu0  ;;  %7342 = vpow2.f32 %v1996_v8 }
 0x43e   :  { %7344 = vpow2.f32 %v1994_v39  ;;  %v1998_v8 = vmul.f32 1.442695, %v1932_v0 }
 0x43f   :  { %v1941_v45 = vpop.f32.mrf.mxu0  ;;  %7346 = vpow2.f32 %v2000_v9  ;;  %v10850_v9 = vld [vmem:[#allocation19_spill] sm:$0xff] }
 0x440   :  { %v1942_v13 = vadd.f32 %v5551_v15, %v1941_v45  ;;  %7348 = vpow2.f32 %v1998_v8  ;;  %v1947_v45 = vadd.f32 %v6668_v38, %v5552_v35 }
 0x441   :  { %v6671_v21 = vpop.f32.mrf.mxu0 }
 0x442   :  { %v8773_v18 = vpop.eup %7328  ;;  %v1957_v60 = vadd.f32 %v6671_v21, %v5554_v58  ;;  %v1215_v58 = vld [vmem:[%s10716_s4 + $0x70] sm:$0xff] }
 0x443   :  { %10843 = vst [vmem:[#allocation32_spill] sm:$0xff] %v8773_v18  ;;  %2024 = vadd.xlane.f32.xlu1 %v8773_v18  ;;  %v1951_v34 = vpop.f32.mrf.mxu0 }
 0x444   :  { %v8779_v5 = vpop.eup %7330  ;;  %v2008_v8 = vmul.f32 1.442695, %v1957_v60  ;;  %v1451_v60 = vadd.f32 %v8753_v10, %v1215_v58 }
 0x445   :  { %2022 = vadd.xlane.f32.xlu0 %v8779_v5  ;;  %v8782_v59 = vpop.eup %7332 }
 0x446   :  { %10844 = vst [vmem:[#allocation33_spill] sm:$0xff] %v8782_v59  ;;  %v8788_v51 = vpop.eup %7334  ;;  %v1487_v58 = vmul.f32 1.442695, %v1451_v60 }
 0x447   :  { %1511 = vadd.xlane.f32.xlu1 %v8782_v59  ;;  %10845 = vst [vmem:[#allocation34_spill] sm:$0xff] %v8788_v51  ;;  %v8794_v2 = vpop.eup %7336 }
 0x448   :  { %10846 = vst [vmem:[#allocation35_spill] sm:$0xff] %v8794_v2  ;;  %v8803_v31 = vpop.eup %7338 }
 0x449   :  { %10847 = vst [vmem:[#allocation36_spill] sm:$0xff] %v8803_v31  ;;  %v8806_v52 = vpop.eup %7340 }
 0x44a   :  { %10848 = vst [vmem:[#allocation37_spill] sm:$0xff] %v8806_v52  ;;  %v8815_v39 = vpop.eup %7342 }
 0x44b   :  { %1513 = vadd.xlane.f32.xlu1 %v8788_v51  ;;  %v6674_v51 = vpop.f32.mrf.mxu0  ;;  %10849 = vst [vmem:[#allocation38_spill] sm:$0xff] %v8815_v39  ;;  %v8823_v38 = vpop.eup %7344 }
 0x44c   :  { %10851 = vst [vmem:[#allocation39_spill] sm:$0xff] %v8823_v38 }
 0x44d   :  { %v1961_v15 = vpop.f32.mrf.mxu0 }
 0x44f   :  { %1515 = vadd.xlane.f32.xlu1 %v8794_v2  ;;  %v2002_v2 = vmul.f32 1.442695, %v1942_v13  ;;  %v2004_v13 = vmul.f32 1.442695, %v1947_v45  ;;  %v6677_v35 = vpop.f32.mrf.mxu0  ;;  %v5558_v45 = vld [vmem:[%s10716_s4 + $0xe8] sm:$0xff] }
 0x451   :  { %7350 = vpow2.f32 %v2002_v2 }
 0x453   :  { %1517 = vadd.xlane.f32.xlu1 %v8803_v31 }
 0x457   :  { %1521 = vadd.xlane.f32.xlu1 %v8806_v52  ;;  %v5556_v52 = vld [vmem:[%s10716_s4 + $0xd8] sm:$0xff] }
 0x458   :  { %v1967_v2 = vadd.f32 %v6674_v51, %v5556_v52  ;;  %v5553_v51 = vld [vmem:[%s10716_s4 + $0xc0] sm:$0xff] }
 0x45a   :  { %v1494_v42 = vpop.xlane.xlu0 %1493  ;;  %v2012_v52 = vmul.f32 1.442695, %v1967_v2 }
 0x45b   :  { %2102 = vrot.lane.b32.xlu0 %v10850_v9, %s7678_s3  ;;  %2028 = vadd.xlane.f32.xlu1 %v8815_v39  ;;  %7352 = vrcp.f32 %v1494_v42  ;;  %v8829_v42 = vpop.eup %7346 }
 0x45c   :  { %v1492_v0 = vpop.xlane.xlu1 %1491  ;;  %10852 = vst [vmem:[#allocation40_spill] sm:$0xff] %v8829_v42  ;;  %v8839_v39 = vpop.eup %7348 }
 0x45d   :  { %7354 = vrcp.f32 %v1492_v0  ;;  %v1971_v0 = vpop.f32.mrf.mxu0  ;;  %10853 = vst [vmem:[#allocation41_spill] sm:$0xff] %v8839_v39 }
 0x45e   :  { %7356 = vpow2.f32 %v2004_v13  ;;  %v8845_v10 = vpop.eup %7350 }
 0x45f   :  { %2026 = vadd.xlane.f32.xlu1 %v8823_v38  ;;  %7358 = vpow2.f32 %v2008_v8  ;;  %v1977_v8 = vadd.f32 %v6677_v35, %v5558_v45  ;;  %v1952_v38 = vadd.f32 %v5553_v51, %v1951_v34  ;;  %v6680_v31 = vpop.f32.mrf.mxu0  ;;  %v5555_v35 = vld [vmem:[%s10716_s4 + $0xd0] sm:$0xff] }
 0x460   :  { %v1498_v21 = vpop.xlane.xlu1 %1497 }
 0x461   :  { %7360 = vrcp.f32 %v1498_v21  ;;  %v2016_v45 = vmul.f32 1.442695, %v1977_v8 }
 0x463   :  { %2032 = vadd.xlane.f32.xlu1 %v8829_v42  ;;  %v5560_v42 = vld [vmem:[%s10716_s4 + $0xf8] sm:$0xff] }
 0x464   :  { %v1500_v9 = vpop.xlane.xlu0 %1499  ;;  %v1496_v13 = vpop.xlane.xlu1 %1495  ;;  %v1987_v51 = vadd.f32 %v6680_v31, %v5560_v42 }
 0x465   :  { %7362 = vrcp.f32 %v1500_v9 }
 0x466   :  { %7364 = vrcp.f32 %v1496_v13  ;;  %v2006_v13 = vmul.f32 1.442695, %v1952_v38  ;;  %v2020_v38 = vmul.f32 1.442695, %v1987_v51 }
 0x467   :  { %2030 = vadd.xlane.f32.xlu1 %v8839_v39  ;;  %7366 = vpow2.f32 %v2012_v52  ;;  %v1962_v52 = vadd.f32 %v5555_v35, %v1961_v15  ;;  %v5557_v39 = vld [vmem:[%s10716_s4 + $0xe0] sm:$0xff] }
 0x468   :  { %v8847_v2 = vpop.permute.xlu0 %2106  ;;  %v1502_v21 = vpop.xlane.xlu1 %1501 }
 0x469   :  { %v7353_v9 = vpop.eup %7352  ;;  %7368 = vrcp.f32 %v1502_v21  ;;  %6707 = vmatprep.subr.mxu0 %v8847_v2  ;;  %v2010_v42 = vmul.f32 1.442695, %v1962_v52 }
 0x46a   :  { %v7355_v34 = vpop.eup %7354  ;;  %6708 = vmatpush3.msra.mxu0 %v8847_v2  ;;  %7370 = vpow2.f32 %v1487_v58  ;;  %v1540_v18 = vmul.f32 %v7353_v9, %v8710_v23  ;;  %v1981_v58 = vpop.f32.mrf.mxu0 }
 0x46b   :  { %2034 = vadd.xlane.f32.xlu1 %v8845_v10  ;;  %v1539_v60 = vmul.f32 %v7355_v34, %v8713_v44  ;;  %v8863_v31 = vpop.eup %7356  ;;  %7372 = vpow2.f32 %v2016_v45  ;;  %v1972_v44 = vadd.f32 %v5557_v39, %v1971_v0 }
 0x46c   :  { %v8859_v59 = vpop.permute.xlu0 %2104  ;;  %v1506_v21 = vpop.xlane.xlu1 %1505  ;;  %7374 = vpow2.f32 %v2006_v13 }
 0x46d   :  { %6601 = vmatprep.mubr.f32.mxu1 %v1539_v60  ;;  %6709 = vmatprep.subr.mxu0 %v8859_v59  ;;  %v8868_v15 = vpop.eup %7358  ;;  %7376 = vrcp.f32 %v1506_v21  ;;  %v2014_v0 = vmul.f32 1.442695, %v1972_v44  ;;  %v10861_v44 = vld [vmem:[#allocation29_spill] sm:$0xff] }
 0x46e   :  { %6602 = vmatmul.mubr.f32.vlgmr.msra.gmra.mxu1 %v1540_v18  ;;  %6710 = vmatpush3.msra.mxu0 %v8859_v59  ;;  %v7361_v8 = vpop.eup %7360  ;;  %v5559_v18 = vld [vmem:[%s10716_s4 + $0xf0] sm:$0xff] }
 0x46f   :  { %7225 = vmatpush3.msra.mxu1 %v8622_v62  ;;  %2036 = vadd.xlane.f32.xlu1 %v8863_v31  ;;  %v1982_v9 = vadd.f32 %v5559_v18, %v1981_v58  ;;  %v10863_v58 = vld [vmem:[#allocation30_spill] sm:$0xff] }
 0x470   :  { %7210 = vmatprep.subr.mxu1 %v8617_v40  ;;  %v1504_v23 = vpop.xlane.xlu1 %1503 }
 0x471   :  { %7226 = vmatpush3.msra.mxu1 %v8617_v40  ;;  %7378 = vrcp.f32 %v1504_v23  ;;  %v1542_v40 = vmul.f32 %v7361_v8, %v8719_v6  ;;  %v2018_v60 = vmul.f32 1.442695, %v1982_v9  ;;  %v10862_v23 = vld [vmem:[#allocation24_spill] sm:$0xff]  ;;  %v1197_v9 = vld [vmem:[%s10717_s8] sm:$0xff] }
 0x472   :  { %v7363_v39 = vpop.eup %7362  ;;  %7380 = vpow2.f32 %v2020_v38  ;;  %7211 = vmatprep.subr.mxu1 %v8632_v63  ;;  %v10860_v38 = vld [vmem:[#allocation23_spill] sm:$0xff] }
 0x473   :  { %v7365_v62 = vpop.eup %7364  ;;  %7227 = vmatpush3.msra.mxu1 %v8632_v63  ;;  %2040 = vadd.xlane.f32.xlu1 %v8868_v15  ;;  %7382 = vpow2.f32 %v2010_v42  ;;  %v1543_v63 = vmul.f32 %v7363_v39, %v8727_v26  ;;  %v10864_v39 = vld [vmem:[#allocation25_spill] sm:$0xff] }
 0x474   :  { %7212 = vmatprep.subr.mxu1 %v8620_v49  ;;  %v1510_v35 = vpop.xlane.xlu1 %1509  ;;  %v1541_v34 = vmul.f32 %v7365_v62, %v8725_v48  ;;  %v8880_v45 = vpop.eup %7366  ;;  %7384 = vpow2.f32 %v2014_v0  ;;  %v8997_v0 = vld [vmem:[%s10717_s8 + $0x8] sm:$0xff] }
 0x475   :  { %7228 = vmatpush3.msra.mxu1 %v8620_v49  ;;  %7386 = vrcp.f32 %v1510_v35  ;;  %v10865_v35 = vld [vmem:[#allocation31_spill] sm:$0xff] }
 0x476   :  { %v7369_v51 = vpop.eup %7368  ;;  %6604 = vmatprep.mubr.f32.mxu1 %v1541_v34  ;;  %7213 = vmatprep.subr.mxu1 %v8630_v29 }
 0x477   :  { %6605 = vmatmul.mubr.f32.gmra.mxu1 %v1542_v40  ;;  %2044 = vadd.xlane.f32.xlu1 %v8880_v45  ;;  %v1544_v13 = vmul.f32 %v7369_v51, %v8731_v56  ;;  %v8889_v48 = vpop.eup %7370  ;;  %v10866_v40 = vld [vmem:[#allocation4_spill] sm:$0xff] }
 0x478   :  { %7229 = vmatpush3.msra.mxu1 %v8630_v29  ;;  %6607 = vmatprep.mubr.f32.mxu1 %v1543_v63  ;;  %v1508_v49 = vpop.xlane.xlu1 %1507  ;;  %v8894_v6 = vpop.eup %7372 }
 0x479   :  { %7214 = vmatprep.subr.mxu1 %v8640_v61  ;;  %7388 = vrcp.f32 %v1508_v49  ;;  %v8897_v26 = vpop.eup %7374 }
 0x47a   :  { %7230 = vmatpush3.msra.mxu1 %v8640_v61  ;;  %1519 = vadd.xlane.f32.xlu0 %v8889_v48  ;;  %7390 = vpow2.f32 %v2018_v60  ;;  %v7377_v29 = vpop.eup %7376 }
 0x47b   :  { %7215 = vmatprep.subr.mxu1 %v8642_v57  ;;  %6608 = vmatmul.mubr.f32.gmra.mxu1 %v1544_v13  ;;  %v1546_v21 = vmul.f32 %v7377_v29, %v8734_v19  ;;  %v10867_v29 = vld [vmem:[#allocation32_spill] sm:$0xff] }
 0x47c   :  { %7231 = vmatpush3.msra.mxu1 %v8642_v57  ;;  %2048 = vadd.xlane.f32.xlu1 %v8894_v6 }
 0x47d   :  { %7216 = vmatprep.subr.mxu1 %v8655_v4 }
 0x47e   :  { %v7379_v56 = vpop.eup %7378  ;;  %7232 = vmatpush3.msra.mxu1 %v8655_v4  ;;  %2038 = vadd.xlane.f32.xlu0 %v8897_v26 }
 0x47f   :  { %v8904_v61 = vpop.eup %7380  ;;  %7217 = vmatprep.subr.mxu1 %v8650_v12  ;;  %v1545_v52 = vmul.f32 %v7379_v56, %v8737_v11 }
 0x480   :  { %7233 = vmatpush3.msra.mxu1 %v8650_v12  ;;  %2052 = vadd.xlane.f32.xlu1 %v8904_v61  ;;  %v8910_v57 = vpop.eup %7382 }
 0x481   :  { %7218 = vmatprep.subr.mxu1 %v8660_v53  ;;  %6610 = vmatprep.mubr.f32.mxu1 %v1545_v52  ;;  %v8917_v4 = vpop.eup %7384  ;;  %v10868_v52 = vld [vmem:[#allocation33_spill] sm:$0xff] }
 0x482   :  { %7234 = vmatpush3.msra.mxu1 %v8660_v53  ;;  %2042 = vadd.xlane.f32.xlu0 %v8910_v57  ;;  %v7387_v12 = vpop.eup %7386 }
 0x483   :  { %7219 = vmatprep.subr.mxu1 %v8668_v30  ;;  %6611 = vmatmul.mubr.f32.gmra.mxu1 %v1546_v21 }
 0x484   :  { %7235 = vmatpush3.msra.mxu1 %v8668_v30  ;;  %v1548_v30 = vmul.f32 %v7387_v12, %v8740_v22  ;;  %v10856_v22 = vld [vmem:[#allocation21_spill] sm:$0xff] }
 0x485   :  { %7220 = vmatprep.subr.mxu1 %v8675_v55 }
 0x486   :  { %v7389_v11 = vpop.eup %7388  ;;  %7236 = vmatpush3.msra.mxu1 %v8675_v55  ;;  %2046 = vadd.xlane.f32.xlu0 %v8917_v4  ;;  %v10854_v55 = vld [vmem:[#allocation20_spill] sm:$0xff] }
 0x487   :  { %7221 = vmatprep.subr.mxu1 %v8681_v54  ;;  %v1547_v53 = vmul.f32 %v7389_v11, %v8743_v50  ;;  %v8926_v19 = vpop.eup %7390  ;;  %v10857_v50 = vld [vmem:[#allocation27_spill] sm:$0xff] }
 0x488   :  { %7237 = vmatpush3.msra.mxu1 %v8681_v54  ;;  %v10855_v54 = vld [vmem:[#allocation26_spill] sm:$0xff] }
 0x489   :  { %7222 = vmatprep.subr.mxu1 %v8847_v2  ;;  %6613 = vmatprep.mubr.f32.mxu1 %v1547_v53 }
 0x48a   :  { %7238 = vmatpush3.msra.mxu1 %v8847_v2  ;;  %2050 = vadd.xlane.f32.xlu0 %v8926_v19  ;;  %v10859_v2 = vld [vmem:[#allocation28_spill] sm:$0xff] }
 0x48b   :  { %7223 = vmatprep.subr.mxu1 %v8859_v59  ;;  %6614 = vmatmul.mubr.f32.gmra.mxu1 %v1548_v30 }
 0x48c   :  { %7239 = vmatpush3.msra.mxu1 %v8859_v59  ;;  %v10858_v59 = vld [vmem:[#allocation22_spill] sm:$0xff] }
 0x491   :  { %2758 = vrot.lane.b32.xlu1 %v8331_v14, %s7679_s22 }
 0x495   :  { %2756 = vrot.lane.b32.xlu1 %v8316_v32, %s7679_s22 }
 0x499   :  { %2754 = vrot.lane.b32.xlu1 %v8321_v47, %s7679_s22 }
 0x49d   :  { %2750 = vrot.lane.b32.xlu1 %v8340_v17, %s7679_s22 }
 0x4a0   :  { %2760 = vrot.lane.b32.xlu0 %v8324_v16, %s7679_s22 }
 0x4a1   :  { %2746 = vrot.lane.b32.xlu1 %v8352_v25, %s7679_s22 }
 0x4a4   :  { %2752 = vrot.lane.b32.xlu0 %v8355_v27, %s7679_s22 }
 0x4a5   :  { %2742 = vrot.lane.b32.xlu1 %v8367_v33, %s7679_s22 }
 0x4a8   :  { %2748 = vrot.lane.b32.xlu0 %v8370_v20, %s7679_s22 }
 0x4a9   :  { %2738 = vrot.lane.b32.xlu1 %v8382_v41, %s7679_s22 }
 0x4ac   :  { %2744 = vrot.lane.b32.xlu0 %v8385_v28, %s7679_s22 }
 0x4ad   :  { %2734 = vrot.lane.b32.xlu1 %v8397_v46, %s7679_s22 }
 0x4b0   :  { %2740 = vrot.lane.b32.xlu0 %v8400_v36, %s7679_s22 }
 0x4b1   :  { %2730 = vrot.lane.b32.xlu1 %v8412_v37, %s7679_s22 }
 0x4b4   :  { %2736 = vrot.lane.b32.xlu0 %v8415_v43, %s7679_s22 }
 0x4b5   :  { %2700 = vrot.lane.b32.xlu1 %v8268_v1, %s7679_s22 }
 0x4b8   :  { %2732 = vrot.lane.b32.xlu0 %v8427_v24, %s7679_s22 }
 0x4b9   :  { %2704 = vrot.lane.b32.xlu1 %v8279_v7, %s7679_s22 }
 0x4bc   :  { %2698 = vrot.lane.b32.xlu0 %v8271_v3, %s7679_s22 }
 0x4bd   :  { %2708 = vrot.lane.b32.xlu1 %v10854_v55, %s7679_s22 }
 0x4c0   :  { %2702 = vrot.lane.b32.xlu0 %v10855_v54, %s7679_s22 }
 0x4c1   :  { %2712 = vrot.lane.b32.xlu1 %v10856_v22, %s7679_s22 }
 0x4c4   :  { %2706 = vrot.lane.b32.xlu0 %v10857_v50, %s7679_s22 }
 0x4c5   :  { %2716 = vrot.lane.b32.xlu1 %v10858_v59, %s7679_s22 }
 0x4c8   :  { %2710 = vrot.lane.b32.xlu0 %v10859_v2, %s7679_s22 }
 0x4c9   :  { %2720 = vrot.lane.b32.xlu1 %v10860_v38, %s7679_s22 }
 0x4cc   :  { %2714 = vrot.lane.b32.xlu0 %v10861_v44, %s7679_s22  ;;  %v2025_v42 = vpop.xlane.xlu1 %2024 }
 0x4cd   :  { %2724 = vrot.lane.b32.xlu1 %v10862_v23, %s7679_s22  ;;  %7392 = vrcp.f32 %v2025_v42  ;;  %v10871_v42 = vld [vmem:[#allocation36_spill] sm:$0xff] }
 0x4ce   :  { %v2023_v8 = vpop.xlane.xlu0 %2022 }
 0x4cf   :  { %7394 = vrcp.f32 %v2023_v8 }
 0x4d0   :  { %2718 = vrot.lane.b32.xlu0 %v10863_v58, %s7679_s22  ;;  %v1512_v18 = vpop.xlane.xlu1 %1511 }
 0x4d1   :  { %2728 = vrot.lane.b32.xlu1 %v10864_v39, %s7679_s22  ;;  %7396 = vrcp.f32 %v1512_v18  ;;  %v10873_v18 = vld [vmem:[#allocation39_spill] sm:$0xff] }
 0x4d2   :  { %v2103_v62 = vpop.permute.xlu0 %2102 }
 0x4d3   :  { %6711 = vmatprep.subr.mxu0 %v2103_v62  ;;  %7224 = vmatprep.subr.mxu1 %v2103_v62 }
 0x4d4   :  { %2722 = vrot.lane.b32.xlu0 %v10865_v35, %s7679_s22  ;;  %6712 = vmatpush3.msra.mxu0 %v2103_v62  ;;  %v1514_v34 = vpop.xlane.xlu1 %1513 }
 0x4d5   :  { %3546 = vrot.lane.b32.xlu1 %v8331_v14, %s7680_s27  ;;  %7240 = vmatpush3.msra.mxu1 %v2103_v62  ;;  %7398 = vrcp.f32 %v1514_v34  ;;  %v10875_v34 = vld [vmem:[#allocation38_spill] sm:$0xff] }
 0x4d6   :  { %6737 = vmatprep.subr.mxu1 %v8997_v0  ;;  %6763 = vmatprep.subr.mxu0 %v1197_v9 }
 0x4d8   :  { %2726 = vrot.lane.b32.xlu0 %v10866_v40, %s7679_s22  ;;  %v1516_v51 = vpop.xlane.xlu1 %1515 }
 0x4d9   :  { %3542 = vrot.lane.b32.xlu1 %v8321_v47, %s7680_s27  ;;  %7400 = vrcp.f32 %v1516_v51 }
 0x4da   :  { %v7393_v63 = vpop.eup %7392 }
 0x4db   :  { %v2071_v56 = vmul.f32 %v7393_v63, %v10867_v29 }
 0x4dc   :  { %v7395_v13 = vpop.eup %7394  ;;  %3548 = vrot.lane.b32.xlu0 %v8324_v16, %s7680_s27  ;;  %v1518_v60 = vpop.xlane.xlu1 %1517 }
 0x4dd   :  { %3538 = vrot.lane.b32.xlu1 %v8340_v17, %s7680_s27  ;;  %7402 = vrcp.f32 %v1518_v60  ;;  %v2070_v14 = vmul.f32 %v7395_v13, %v8779_v5  ;;  %v10869_v17 = vld [vmem:[#allocation34_spill] sm:$0xff] }
 0x4de   :  { %v7397_v49 = vpop.eup %7396 }
 0x4df   :  { %6713 = vmatprep.mubr.f32.mxu0 %v2070_v14  ;;  %v1549_v21 = vmul.f32 %v7397_v49, %v10868_v52  ;;  %v10877_v14 = vld [vmem:[#allocation7_spill] sm:$0xff] }
 0x4e0   :  { %3544 = vrot.lane.b32.xlu0 %v8316_v32, %s7680_s27  ;;  %6714 = vmatmul.mubr.f32.vlgmr.msra.gmra.mxu0 %v2071_v56  ;;  %v1522_v47 = vpop.xlane.xlu1 %1521  ;;  %v10870_v32 = vld [vmem:[#allocation35_spill] sm:$0xff]  ;;  %v10878_v56 = vld [vmem:[#allocation40_spill] sm:$0xff] }
 0x4e1   :  { %3534 = vrot.lane.b32.xlu1 %v8352_v25, %s7680_s27  ;;  %6616 = vmatprep.mubr.f32.mxu1 %v1549_v21  ;;  %7404 = vrcp.f32 %v1522_v47  ;;  %v10879_v21 = vld [vmem:[#allocation3_spill] sm:$0xff] }
 0x4e2   :  { %v7399_v16 = vpop.eup %7398  ;;  %6764 = vmatpush3.msra.mxu0 %v1197_v9  ;;  %v10874_v9 = vld [vmem:[#allocation5_spill] sm:$0xff] }
 0x4e3   :  { %v1550_v12 = vmul.f32 %v7399_v16, %v10869_v17  ;;  %v10880_v17 = vld [vmem:[#allocation9_spill] sm:$0xff] }
 0x4e4   :  { %3540 = vrot.lane.b32.xlu0 %v8355_v27, %s7680_s27  ;;  %v2029_v5 = vpop.xlane.xlu1 %2028 }
 0x4e5   :  { %3530 = vrot.lane.b32.xlu1 %v8367_v33, %s7680_s27  ;;  %6617 = vmatmul.mubr.f32.gmra.mxu1 %v1550_v12 }
 0x4e6   :  { %v7401_v11 = vpop.eup %7400 }
 0x4e7   :  { %v1551_v53 = vmul.f32 %v7401_v11, %v10870_v32  ;;  %v10881_v32 = vld [vmem:[#allocation6_spill] sm:$0xff] }
 0x4e8   :  { %3536 = vrot.lane.b32.xlu0 %v8370_v20, %s7680_s27  ;;  %v2027_v25 = vpop.xlane.xlu1 %2026 }
 0x4e9   :  { %3526 = vrot.lane.b32.xlu1 %v8382_v41, %s7680_s27  ;;  %6619 = vmatprep.mubr.f32.mxu1 %v1551_v53  ;;  %7406 = vrcp.f32 %v2027_v25  ;;  %v10882_v25 = vld [vmem:[#allocation11_spill] sm:$0xff] }
 0x4ea   :  { %v7403_v30 = vpop.eup %7402 }
 0x4eb   :  { %v1552_v8 = vmul.f32 %v7403_v30, %v10871_v42 }
 0x4ec   :  { %3532 = vrot.lane.b32.xlu0 %v8385_v28, %s7680_s27  ;;  %v2033_v27 = vpop.xlane.xlu1 %2032 }
 0x4ed   :  { %3522 = vrot.lane.b32.xlu1 %v8397_v46, %s7680_s27  ;;  %6620 = vmatmul.mubr.f32.gmra.mxu1 %v1552_v8 }
 0x4f0   :  { %3528 = vrot.lane.b32.xlu0 %v8400_v36, %s7680_s27  ;;  %v2031_v33 = vpop.xlane.xlu1 %2030 }
 0x4f1   :  { %3518 = vrot.lane.b32.xlu1 %v8412_v37, %s7680_s27 }
 0x4f4   :  { %3524 = vrot.lane.b32.xlu0 %v8415_v43, %s7680_s27  ;;  %v2035_v20 = vpop.xlane.xlu1 %2034 }
 0x4f5   :  { %3488 = vrot.lane.b32.xlu1 %v8268_v1, %s7680_s27 }
 0x4f8   :  { %3520 = vrot.lane.b32.xlu0 %v8427_v24, %s7680_s27  ;;  %v2037_v41 = vpop.xlane.xlu1 %2036  ;;  %v7405_v24 = vpop.eup %7404 }
 0x4f9   :  { %3492 = vrot.lane.b32.xlu1 %v8279_v7, %s7680_s27 }
 0x4fc   :  { %3486 = vrot.lane.b32.xlu0 %v8271_v3, %s7680_s27  ;;  %v2041_v28 = vpop.xlane.xlu1 %2040 }
 0x4fd   :  { %3496 = vrot.lane.b32.xlu1 %v10854_v55, %s7680_s27 }
 0x500   :  { %3490 = vrot.lane.b32.xlu0 %v10855_v54, %s7680_s27  ;;  %v2045_v46 = vpop.xlane.xlu1 %2044  ;;  %v7407_v54 = vpop.eup %7406 }
 0x501   :  { %3500 = vrot.lane.b32.xlu1 %v10856_v22, %s7680_s27 }
 0x503   :  { %v1520_v1 = vpop.xlane.xlu0 %1519 }
 0x504   :  { %7408 = vrcp.f32 %v1520_v1  ;;  %3494 = vrot.lane.b32.xlu0 %v10857_v50, %s7680_s27 }
 0x505   :  { %3504 = vrot.lane.b32.xlu1 %v10858_v59, %s7680_s27  ;;  %v2049_v3 = vpop.xlane.xlu1 %2048  ;;  %7410 = vrcp.f32 %v2029_v5 }
 0x506   :  { %7412 = vrcp.f32 %v2031_v33 }
 0x507   :  { %v2039_v7 = vpop.xlane.xlu0 %2038  ;;  %7414 = vrcp.f32 %v2033_v27  ;;  %v10883_v27 = vld [vmem:[#allocation8_spill] sm:$0xff] }
 0x508   :  { %3498 = vrot.lane.b32.xlu0 %v10859_v2, %s7680_s27  ;;  %7416 = vrcp.f32 %v2035_v20 }
 0x509   :  { %3508 = vrot.lane.b32.xlu1 %v10860_v38, %s7680_s27  ;;  %v2053_v36 = vpop.xlane.xlu1 %2052  ;;  %7418 = vrcp.f32 %v2037_v41  ;;  %v10872_v38 = vld [vmem:[#allocation37_spill] sm:$0xff] }
 0x50a   :  { %7420 = vrcp.f32 %v2039_v7 }
 0x50b   :  { %v2043_v37 = vpop.xlane.xlu0 %2042  ;;  %7422 = vrcp.f32 %v2041_v28 }
 0x50c   :  { %3502 = vrot.lane.b32.xlu0 %v10861_v44, %s7680_s27  ;;  %v1554_v44 = vmul.f32 %v7405_v24, %v10872_v38  ;;  %7424 = vrcp.f32 %v2043_v37 }
 0x50d   :  { %3512 = vrot.lane.b32.xlu1 %v10862_v23, %s7680_s27  ;;  %v9069_v43 = vpop.permute.xlu1 %2758  ;;  %7426 = vrcp.f32 %v2045_v46 }
 0x50f   :  { %v2047_v55 = vpop.xlane.xlu0 %2046 }
 0x510   :  { %3506 = vrot.lane.b32.xlu0 %v10863_v58, %s7680_s27  ;;  %v2072_v58 = vmul.f32 %v7407_v54, %v10873_v18  ;;  %7428 = vrcp.f32 %v2047_v55 }
 0x511   :  { %v7409_v22 = vpop.eup %7408  ;;  %3516 = vrot.lane.b32.xlu1 %v10864_v39, %s7680_s27  ;;  %v9075_v50 = vpop.permute.xlu1 %2756  ;;  %7430 = vrcp.f32 %v2049_v3 }
 0x512   :  { %v1553_v59 = vmul.f32 %v7409_v22, %v8889_v48  ;;  %v7411_v23 = vpop.eup %7410 }
 0x513   :  { %v2051_v2 = vpop.xlane.xlu0 %2050  ;;  %v7413_v62 = vpop.eup %7412  ;;  %v2073_v51 = vmul.f32 %v7411_v23, %v10875_v34 }
 0x514   :  { %3510 = vrot.lane.b32.xlu0 %v10865_v35, %s7680_s27  ;;  %6622 = vmatprep.mubr.f32.mxu1 %v1553_v59  ;;  %v7415_v63 = vpop.eup %7414  ;;  %v10876_v35 = vld [vmem:[#allocation41_spill] sm:$0xff]  ;;  %7432 = vrcp.f32 %v2051_v2 }
 0x515   :  { %3095 = vrot.lane.b32.xlu1 %v10874_v9, %s7679_s22  ;;  %v9084_v39 = vpop.permute.xlu1 %2754  ;;  %6623 = vmatmul.mubr.f32.gmra.mxu1 %v1554_v44  ;;  %v2074_v13 = vmul.f32 %v7413_v62, %v10876_v35  ;;  %v7417_v60 = vpop.eup %7416  ;;  %7434 = vrcp.f32 %v2053_v36  ;;  %v10889_v44 = vld [vmem:[#allocation14_spill] sm:$0xff] }
 0x516   :  { %6716 = vmatprep.mubr.f32.mxu1 %v2072_v58  ;;  %v7419_v52 = vpop.eup %7418  ;;  %v2076_v47 = vmul.f32 %v7417_v60, %v8845_v10  ;;  %v10891_v58 = vld [vmem:[#allocation16_spill] sm:$0xff] }
 0x517   :  { %v9086_v48 = vpop.permute.xlu0 %2760  ;;  %v7421_v16 = vpop.eup %7420  ;;  %v2077_v5 = vmul.f32 %v7419_v52, %v8863_v31 }
 0x518   :  { %3514 = vrot.lane.b32.xlu0 %v10866_v40, %s7680_s27  ;;  %v2075_v40 = vmul.f32 %v7415_v63, %v10878_v56  ;;  %v7423_v11 = vpop.eup %7422  ;;  %v2078_v53 = vmul.f32 %v7421_v16, %v8897_v26  ;;  %v10884_v26 = vld [vmem:[#allocation13_spill] sm:$0xff] }
 0x519   :  { %3091 = vrot.lane.b32.xlu1 %v10877_v14, %s7679_s22  ;;  %v9094_v49 = vpop.permute.xlu1 %2750  ;;  %6717 = vmatmul.mubr.f32.vlgmr.msra.gmra.mxu1 %v2073_v51  ;;  %v7425_v10 = vpop.eup %7424  ;;  %v2079_v8 = vmul.f32 %v7423_v11, %v8868_v15  ;;  %v10885_v15 = vld [vmem:[#allocation10_spill] sm:$0xff] }
 0x51a   :  { %6738 = vmatpush3.msra.mxu1 %v8997_v0  ;;  %6719 = vmatprep.mubr.f32.mxu1 %v2074_v13  ;;  %v7427_v31 = vpop.eup %7426  ;;  %v2080_v33 = vmul.f32 %v7425_v10, %v8910_v57  ;;  %v10886_v57 = vld [vmem:[#allocation15_spill] sm:$0xff] }
 0x51b   :  { %6789 = vmatprep.subr.msk.mxu1 %vm1217_vm1, %v9086_v48  ;;  %v9099_v29 = vpop.permute.xlu0 %2752  ;;  %v2081_v46 = vmul.f32 %v7427_v31, %v8880_v45  ;;  %v10887_v45 = vld [vmem:[#allocation12_spill] sm:$0xff] }
 0x51c   :  { %3097 = vrot.lane.b32.xlu0 %v10879_v21, %s7679_s22 }
 0x51d   :  { %3087 = vrot.lane.b32.xlu1 %v10880_v17, %s7679_s22  ;;  %v9107_v0 = vpop.permute.xlu1 %2746  ;;  %6720 = vmatmul.mubr.f32.gmra.mxu1 %v2075_v40  ;;  %v7429_v20 = vpop.eup %7428 }
 0x51e   :  { %6722 = vmatprep.mubr.f32.mxu1 %v2076_v47  ;;  %v7431_v1 = vpop.eup %7430  ;;  %v2082_v3 = vmul.f32 %v7429_v20, %v8917_v4  ;;  %v10888_v4 = vld [vmem:[#allocation17_spill] sm:$0xff] }
 0x51f   :  { %v9109_v12 = vpop.permute.xlu0 %2748  ;;  %v2083_v24 = vmul.f32 %v7431_v1, %v8894_v6 }
 0x520   :  { %3093 = vrot.lane.b32.xlu0 %v10881_v32, %s7679_s22 }
 0x521   :  { %3083 = vrot.lane.b32.xlu1 %v10882_v25, %s7679_s22  ;;  %v9117_v30 = vpop.permute.xlu1 %2742  ;;  %6723 = vmatmul.mubr.f32.gmra.mxu1 %v2077_v5  ;;  %v7433_v7 = vpop.eup %7432 }
 0x522   :  { %6725 = vmatprep.mubr.f32.mxu1 %v2078_v53  ;;  %v2084_v55 = vmul.f32 %v7433_v7, %v8926_v19  ;;  %v7435_v54 = vpop.eup %7434  ;;  %v10890_v19 = vld [vmem:[#allocation19_spill] sm:$0xff] }
 0x523   :  { %v9119_v42 = vpop.permute.xlu0 %2744  ;;  %v2085_v6 = vmul.f32 %v7435_v54, %v8904_v61  ;;  %v10892_v61 = vld [vmem:[#allocation18_spill] sm:$0xff] }
 0x524   :  { %3089 = vrot.lane.b32.xlu0 %v10883_v27, %s7679_s22 }
 0x525   :  { %3079 = vrot.lane.b32.xlu1 %v10884_v26, %s7679_s22  ;;  %v9127_v41 = vpop.permute.xlu1 %2738  ;;  %6726 = vmatmul.mubr.f32.gmra.mxu1 %v2079_v8 }
 0x526   :  { %6728 = vmatprep.mubr.f32.mxu1 %v2080_v33 }
 0x527   :  { %v9129_v28 = vpop.permute.xlu0 %2740 }
 0x528   :  { %3085 = vrot.lane.b32.xlu0 %v10885_v15, %s7679_s22 }
 0x529   :  { %3075 = vrot.lane.b32.xlu1 %v10886_v57, %s7679_s22  ;;  %v9137_v36 = vpop.permute.xlu1 %2734  ;;  %6729 = vmatmul.mubr.f32.gmra.mxu1 %v2081_v46 }
 0x52a   :  { %6731 = vmatprep.mubr.f32.mxu1 %v2082_v3 }
 0x52b   :  { %v9139_v37 = vpop.permute.xlu0 %2736 }
 0x52c   :  { %3081 = vrot.lane.b32.xlu0 %v10887_v45, %s7679_s22 }
 0x52d   :  { %3071 = vrot.lane.b32.xlu1 %v10888_v4, %s7679_s22  ;;  %v9147_v22 = vpop.permute.xlu1 %2730  ;;  %6732 = vmatmul.mubr.f32.gmra.mxu1 %v2083_v24 }
 0x52e   :  { %v6603_v59 = vpop.f32.mrf.mxu1  ;;  %6734 = vmatprep.mubr.f32.mxu1 %v2084_v55 }
 0x52f   :  { %v9149_v2 = vpop.permute.xlu0 %2732 }
 0x530   :  { %v1621_v38 = vpop.f32.mrf.mxu1  ;;  %3077 = vrot.lane.b32.xlu0 %v10889_v44, %s7679_s22 }
 0x531   :  { %6765 = vmatprep.mubr.msk.f32.mxu0 %vm1217_vm1, %v1621_v38  ;;  %3067 = vrot.lane.b32.xlu1 %v10890_v19, %s7679_s22  ;;  %v9157_v23 = vpop.permute.xlu1 %2700 }
 0x532   :  { %6735 = vmatmul.mubr.f32.gmra.mxu1 %v2085_v6  ;;  %6766 = vmatmul.mubr.msk.f32.vlgmr.msra.gmra.mxu0 %vm1217_vm1, %v6603_v59 }
 0x533   :  { %v9160_v18 = vpop.permute.xlu0 %2698 }
 0x534   :  { %3073 = vrot.lane.b32.xlu0 %v10891_v58, %s7679_s22 }
 0x535   :  { %v9164_v62 = vpop.permute.xlu1 %2704 }
 0x537   :  { %v6606_v34 = vpop.f32.mrf.mxu1  ;;  %v9166_v51 = vpop.permute.xlu0 %2702 }
 0x538   :  { %3069 = vrot.lane.b32.xlu0 %v10892_v61, %s7679_s22 }
 0x539   :  { %v1631_v63 = vpop.f32.mrf.mxu1  ;;  %v9170_v35 = vpop.permute.xlu1 %2708 }
 0x53a   :  { %6768 = vmatprep.mubr.msk.f32.mxu0 %vm1217_vm1, %v1631_v63 }
 0x53b   :  { %v6609_v13 = vpop.f32.mrf.mxu1  ;;  %6769 = vmatmul.mubr.msk.f32.gmra.mxu0 %vm1217_vm1, %v6606_v34  ;;  %v9174_v60 = vpop.permute.xlu0 %2706 }
 0x53d   :  { %v1641_v56 = vpop.f32.mrf.mxu1  ;;  %v9176_v40 = vpop.permute.xlu1 %2712 }
 0x53e   :  { %6771 = vmatprep.mubr.msk.f32.mxu0 %vm1217_vm1, %v1641_v56 }
 0x53f   :  { %6772 = vmatmul.mubr.msk.f32.gmra.mxu0 %vm1217_vm1, %v6609_v13  ;;  %v9180_v52 = vpop.permute.xlu0 %2710 }
 0x541   :  { %v9182_v47 = vpop.permute.xlu1 %2716 }
 0x543   :  { %v6612_v16 = vpop.f32.mrf.mxu1  ;;  %v9184_v5 = vpop.permute.xlu0 %2714 }
 0x545   :  { %v1651_v11 = vpop.f32.mrf.mxu1  ;;  %v9186_v53 = vpop.permute.xlu1 %2720 }
 0x546   :  { %6774 = vmatprep.mubr.msk.f32.mxu0 %vm1217_vm1, %v1651_v11 }
 0x547   :  { %6775 = vmatmul.mubr.msk.f32.gmra.mxu0 %vm1217_vm1, %v6612_v16  ;;  %v9190_v10 = vpop.permute.xlu0 %2718 }
 0x549   :  { %v9192_v8 = vpop.permute.xlu1 %2724 }
 0x54b   :  { %v6615_v31 = vpop.f32.mrf.mxu1  ;;  %v9194_v33 = vpop.permute.xlu0 %2722 }
 0x54d   :  { %v1661_v20 = vpop.f32.mrf.mxu1  ;;  %v9196_v46 = vpop.permute.xlu1 %2728 }
 0x54e   :  { %6777 = vmatprep.mubr.msk.f32.mxu0 %vm1217_vm1, %v1661_v20 }
 0x54f   :  { %6778 = vmatmul.mubr.msk.f32.gmra.mxu0 %vm1217_vm1, %v6615_v31  ;;  %v9200_v1 = vpop.permute.xlu0 %2726 }
 0x551   :  { %v9202_v3 = vpop.permute.xlu1 %3546 }
 0x553   :  { %v9204_v7 = vpop.permute.xlu0 %3548 }
 0x555   :  { %v9206_v24 = vpop.permute.xlu1 %3542 }
 0x557   :  { %v9208_v55 = vpop.permute.xlu0 %3544 }
 0x559   :  { %v9210_v54 = vpop.permute.xlu1 %3538 }
 0x55b   :  { %v9212_v59 = vpop.permute.xlu0 %3540 }
 0x55d   :  { %v9214_v38 = vpop.permute.xlu1 %3534 }
 0x55f   :  { %v9216_v6 = vpop.permute.xlu0 %3536 }
 0x561   :  { %v9218_v34 = vpop.permute.xlu1 %3530 }
 0x563   :  { %v9220_v63 = vpop.permute.xlu0 %3532 }
 0x565   :  { %v9222_v13 = vpop.permute.xlu1 %3526 }
 0x567   :  { %v9224_v56 = vpop.permute.xlu0 %3528 }
 0x569   :  { %v9226_v16 = vpop.permute.xlu1 %3522 }
 0x56b   :  { %v9228_v11 = vpop.permute.xlu0 %3524 }
 0x56d   :  { %v9230_v31 = vpop.permute.xlu1 %3518 }
 0x56f   :  { %v9232_v20 = vpop.permute.xlu0 %3520 }
 0x571   :  { %v9234_v61 = vpop.permute.xlu1 %3488 }
 0x573   :  { %v9236_v58 = vpop.permute.xlu0 %3486 }
 0x575   :  { %v9238_v19 = vpop.permute.xlu1 %3492 }
 0x577   :  { %v9240_v44 = vpop.permute.xlu0 %3490 }
 0x579   :  { %v9242_v4 = vpop.permute.xlu1 %3496 }
 0x57a   :  { %10893 = vst [vmem:[#allocation20_spill] sm:$0xff] %v9242_v4 }
 0x57b   :  { %v9244_v45 = vpop.permute.xlu0 %3494 }
 0x57d   :  { %v9246_v57 = vpop.permute.xlu1 %3500 }
 0x57e   :  { %10894 = vst [vmem:[#allocation26_spill] sm:$0xff] %v9246_v57 }
 0x57f   :  { %v9248_v15 = vpop.permute.xlu0 %3498 }
 0x580   :  { %10895 = vst [vmem:[#allocation21_spill] sm:$0xff] %v9248_v15 }
 0x581   :  { %v9250_v26 = vpop.permute.xlu1 %3504 }
 0x582   :  { %10896 = vst [vmem:[#allocation27_spill] sm:$0xff] %v9250_v26 }
 0x583   :  { %v9252_v27 = vpop.permute.xlu0 %3502 }
 0x584   :  { %10897 = vst [vmem:[#allocation22_spill] sm:$0xff] %v9252_v27 }
 0x585   :  { %v9254_v25 = vpop.permute.xlu1 %3508 }
 0x586   :  { %10898 = vst [vmem:[#allocation28_spill] sm:$0xff] %v9254_v25 }
 0x587   :  { %v9256_v32 = vpop.permute.xlu0 %3506 }
 0x588   :  { %10899 = vst [vmem:[#allocation23_spill] sm:$0xff] %v9256_v32 }
 0x589   :  { %v9258_v17 = vpop.permute.xlu1 %3512 }
 0x58a   :  { %10900 = vst [vmem:[#allocation29_spill] sm:$0xff] %v9258_v17 }
 0x58b   :  { %v9260_v21 = vpop.permute.xlu0 %3510 }
 0x58c   :  { %10901 = vst [vmem:[#allocation24_spill] sm:$0xff] %v9260_v21 }
 0x58d   :  { %v9262_v14 = vpop.permute.xlu1 %3516 }
 0x58e   :  { %10902 = vst [vmem:[#allocation30_spill] sm:$0xff] %v9262_v14 }
 0x58f   :  { %v9264_v9 = vpop.permute.xlu0 %3514 }
 0x590   :  { %10903 = vst [vmem:[#allocation25_spill] sm:$0xff] %v9264_v9 }
 0x591   :  { %v3096_v4 = vpop.permute.xlu1 %3095 }
 0x593   :  { %v3098_v57 = vpop.permute.xlu0 %3097 }
 0x594   :  { %6845 = vmatprep.subr.mxu0 %v3098_v57 }
 0x595   :  { %v3092_v15 = vpop.permute.xlu1 %3091  ;;  %6846 = vmatpush3.msra.mxu0 %v3098_v57 }
 0x596   :  { %6847 = vmatprep.subr.mxu0 %v3096_v4 }
 0x597   :  { %v3094_v26 = vpop.permute.xlu0 %3093  ;;  %6848 = vmatpush3.msra.mxu0 %v3096_v4 }
 0x598   :  { %6849 = vmatprep.subr.mxu0 %v3094_v26 }
 0x599   :  { %v3088_v25 = vpop.permute.xlu1 %3087  ;;  %6850 = vmatpush3.msra.mxu0 %v3094_v26 }
 0x59a   :  { %6851 = vmatprep.subr.mxu0 %v3092_v15 }
 0x59b   :  { %v3090_v32 = vpop.permute.xlu0 %3089  ;;  %6852 = vmatpush3.msra.mxu0 %v3092_v15 }
 0x59c   :  { %6853 = vmatprep.subr.mxu0 %v3090_v32 }
 0x59d   :  { %v3084_v17 = vpop.permute.xlu1 %3083  ;;  %6854 = vmatpush3.msra.mxu0 %v3090_v32 }
 0x59e   :  { %6855 = vmatprep.subr.mxu0 %v3088_v25 }
 0x59f   :  { %v3086_v14 = vpop.permute.xlu0 %3085  ;;  %6856 = vmatpush3.msra.mxu0 %v3088_v25 }
 0x5a0   :  { %v6715_v9 = vpop.f32.mrf.mxu0  ;;  %6857 = vmatprep.subr.mxu0 %v3086_v14 }
 0x5a1   :  { %v3080_v21 = vpop.permute.xlu1 %3079  ;;  %6858 = vmatpush3.msra.mxu0 %v3086_v14 }
 0x5a2   :  { %v2216_v57 = vpop.f32.mrf.mxu0  ;;  %6859 = vmatprep.subr.mxu0 %v3084_v17 }
 0x5a3   :  { %v3082_v27 = vpop.permute.xlu0 %3081  ;;  %6739 = vmatprep.mubr.msk.f32.mxu1 %vm1217_vm1, %v2216_v57  ;;  %6860 = vmatpush3.msra.mxu0 %v3084_v17 }
 0x5a4   :  { %6740 = vmatmul.mubr.msk.f32.vlgmr.msra.gmra.mxu1 %vm1217_vm1, %v6715_v9  ;;  %6861 = vmatprep.subr.mxu0 %v3082_v27 }
 0x5a5   :  { %6790 = vmatpush3.xpose.msk.msra.mxu1 %vm1217_vm1, %v9086_v48  ;;  %v6618_v32 = vpop.f32.mrf.mxu1  ;;  %6862 = vmatpush3.msra.mxu0 %v3082_v27  ;;  %v3076_v26 = vpop.permute.xlu1 %3075 }
 0x5a6   :  { %6791 = vmatprep.subr.msk.mxu1 %vm1217_vm1, %v9069_v43  ;;  %6863 = vmatprep.subr.mxu0 %v3080_v21 }
 0x5a7   :  { %v3078_v14 = vpop.permute.xlu0 %3077  ;;  %v1671_v25 = vpop.f32.mrf.mxu1  ;;  %6864 = vmatpush3.msra.mxu0 %v3080_v21 }
 0x5a8   :  { %6780 = vmatprep.mubr.msk.f32.mxu0 %vm1217_vm1, %v1671_v25  ;;  %6865 = vmatprep.subr.mxu0 %v3078_v14 }
 0x5a9   :  { %6792 = vmatpush3.xpose.msk.msra.mxu1 %vm1217_vm1, %v9069_v43  ;;  %6781 = vmatmul.mubr.msk.f32.gmra.mxu0 %vm1217_vm1, %v6618_v32  ;;  %v3072_v48 = vpop.permute.xlu1 %3071 }
 0x5aa   :  { %6793 = vmatprep.subr.msk.mxu1 %vm1217_vm1, %v9075_v50  ;;  %6866 = vmatpush3.msra.mxu0 %v3078_v14 }
 0x5ab   :  { %6867 = vmatprep.subr.mxu0 %v3076_v26  ;;  %v3074_v9 = vpop.permute.xlu0 %3073 }
 0x5ac   :  { %6868 = vmatpush3.msra.mxu0 %v3076_v26 }
 0x5ad   :  { %6794 = vmatpush3.xpose.msk.msra.mxu1 %vm1217_vm1, %v9075_v50  ;;  %6869 = vmatprep.subr.mxu0 %v3074_v9  ;;  %v6621_v21 = vpop.f32.mrf.mxu1  ;;  %v3068_v50 = vpop.permute.xlu1 %3067 }
 0x5ae   :  { %6795 = vmatprep.subr.msk.mxu1 %vm1217_vm1, %v9084_v39  ;;  %6870 = vmatpush3.msra.mxu0 %v3074_v9 }
 0x5af   :  { %6871 = vmatprep.subr.mxu0 %v3072_v48  ;;  %v3070_v43 = vpop.permute.xlu0 %3069  ;;  %v1681_v17 = vpop.f32.mrf.mxu1 }
 0x5b0   :  { %6872 = vmatpush3.msra.mxu0 %v3072_v48  ;;  %6783 = vmatprep.mubr.msk.f32.mxu0 %vm1217_vm1, %v1681_v17  ;;  %v5626_v17 = vld [vmem:[%s10716_s4 + $0x108] sm:$0xff] }
 0x5b1   :  { %6796 = vmatpush3.xpose.msk.msra.mxu1 %vm1217_vm1, %v9084_v39  ;;  %6873 = vmatprep.subr.mxu0 %v3070_v43 }
 0x5b2   :  { %6784 = vmatmul.mubr.msk.f32.gmra.mxu0 %vm1217_vm1, %v6621_v21  ;;  %6797 = vmatprep.subr.msk.mxu1 %vm1217_vm1, %v9099_v29 }
 0x5b3   :  { %6874 = vmatpush3.msra.mxu0 %v3070_v43 }
 0x5b4   :  { %6875 = vmatprep.subr.mxu0 %v3068_v50 }
 0x5b5   :  { %6876 = vmatpush3.msra.mxu0 %v3068_v50  ;;  %6798 = vmatpush3.xpose.msk.msra.mxu1 %vm1217_vm1, %v9099_v29 }
 0x5b6   :  { %6799 = vmatprep.subr.msk.mxu1 %vm1217_vm1, %v9094_v49 }
 0x5b9   :  { %6800 = vmatpush3.xpose.msk.msra.mxu1 %vm1217_vm1, %v9094_v49 }
 0x5ba   :  { %6801 = vmatprep.subr.msk.mxu1 %vm1217_vm1, %v9109_v12 }
 0x5bd   :  { %6802 = vmatpush3.xpose.msk.msra.mxu1 %vm1217_vm1, %v9109_v12 }
 0x5be   :  { %6803 = vmatprep.subr.msk.mxu1 %vm1217_vm1, %v9107_v0 }
 0x5c1   :  { %6804 = vmatpush3.xpose.msk.msra.mxu1 %vm1217_vm1, %v9107_v0 }
 0x5c2   :  { %6805 = vmatprep.subr.msk.mxu1 %vm1217_vm1, %v9119_v42 }
 0x5c5   :  { %6806 = vmatpush3.xpose.msk.msra.mxu1 %vm1217_vm1, %v9119_v42 }
 0x5c6   :  { %6807 = vmatprep.subr.msk.mxu1 %vm1217_vm1, %v9117_v30 }
 0x5c9   :  { %6808 = vmatpush3.xpose.msk.msra.mxu1 %vm1217_vm1, %v9117_v30 }
 0x5ca   :  { %6809 = vmatprep.subr.msk.mxu1 %vm1217_vm1, %v9129_v28 }
 0x5cd   :  { %6810 = vmatpush3.xpose.msk.msra.mxu1 %vm1217_vm1, %v9129_v28 }
 0x5ce   :  { %6811 = vmatprep.subr.msk.mxu1 %vm1217_vm1, %v9127_v41 }
 0x5d1   :  { %6812 = vmatpush3.xpose.msk.msra.mxu1 %vm1217_vm1, %v9127_v41 }
 0x5d2   :  { %6813 = vmatprep.subr.msk.mxu1 %vm1217_vm1, %v9139_v37 }
 0x5d5   :  { %6814 = vmatpush3.xpose.msk.msra.mxu1 %vm1217_vm1, %v9139_v37  ;;  %v6624_v39 = vpop.f32.mrf.mxu1 }
 0x5d6   :  { %6815 = vmatprep.subr.msk.mxu1 %vm1217_vm1, %v9137_v36 }
 0x5d7   :  { %v1691_v49 = vpop.f32.mrf.mxu1 }
 0x5d8   :  { %6786 = vmatprep.mubr.msk.f32.mxu0 %vm1217_vm1, %v1691_v49 }
 0x5d9   :  { %6816 = vmatpush3.xpose.msk.msra.mxu1 %vm1217_vm1, %v9137_v36  ;;  %v6718_v29 = vpop.f32.mrf.mxu1  ;;  %6787 = vmatmul.mubr.msk.f32.gmra.mxu0 %vm1217_vm1, %v6624_v39  ;;  %v5625_v39 = vld [vmem:[%s10716_s4 + $0x100] sm:$0xff] }
 0x5da   :  { %6817 = vmatprep.subr.msk.mxu1 %vm1217_vm1, %v9149_v2 }
 0x5db   :  { %v2226_v0 = vpop.f32.mrf.mxu1 }
 0x5dc   :  { %6742 = vmatprep.mubr.msk.f32.mxu1 %vm1217_vm1, %v2226_v0  ;;  %v5628_v0 = vld [vmem:[%s10716_s4 + $0x118] sm:$0xff] }
 0x5dd   :  { %6818 = vmatpush3.xpose.msk.msra.mxu1 %vm1217_vm1, %v9149_v2  ;;  %v6721_v12 = vpop.f32.mrf.mxu1 }
 0x5de   :  { %6743 = vmatmul.mubr.msk.f32.gmra.mxu1 %vm1217_vm1, %v6718_v29  ;;  %6819 = vmatprep.subr.msk.mxu1 %vm1217_vm1, %v9147_v22 }
 0x5df   :  { %v2236_v30 = vpop.f32.mrf.mxu1 }
 0x5e0   :  { %6745 = vmatprep.mubr.msk.f32.mxu1 %vm1217_vm1, %v2236_v30 }
 0x5e1   :  { %6820 = vmatpush3.xpose.msk.msra.mxu1 %vm1217_vm1, %v9147_v22  ;;  %v6724_v42 = vpop.f32.mrf.mxu1 }
 0x5e2   :  { %6746 = vmatmul.mubr.msk.f32.gmra.mxu1 %vm1217_vm1, %v6721_v12  ;;  %6927 = vmatprep.subr.msk.mxu1 %vm1217_vm1, %v9204_v7 }
 0x5e3   :  { %v2246_v27 = vpop.f32.mrf.mxu1 }
 0x5e4   :  { %6748 = vmatprep.mubr.msk.f32.mxu1 %vm1217_vm1, %v2246_v27  ;;  %v5627_v27 = vld [vmem:[%s10716_s4 + $0x110] sm:$0xff] }
 0x5e5   :  { %v6727_v41 = vpop.f32.mrf.mxu1 }
 0x5e6   :  { %6749 = vmatmul.mubr.msk.f32.gmra.mxu1 %vm1217_vm1, %v6724_v42 }
 0x5e7   :  { %v2256_v28 = vpop.f32.mrf.mxu1 }
 0x5e8   :  { %6751 = vmatprep.mubr.msk.f32.mxu1 %vm1217_vm1, %v2256_v28 }
 0x5e9   :  { %v6730_v15 = vpop.f32.mrf.mxu1 }
 0x5ea   :  { %6752 = vmatmul.mubr.msk.f32.gmra.mxu1 %vm1217_vm1, %v6727_v41 }
 0x5eb   :  { %v2266_v36 = vpop.f32.mrf.mxu1 }
 0x5ec   :  { %6754 = vmatprep.mubr.msk.f32.mxu1 %vm1217_vm1, %v2266_v36  ;;  %v5630_v36 = vld [vmem:[%s10716_s4 + $0x128] sm:$0xff] }
 0x5ed   :  { %v6733_v37 = vpop.f32.mrf.mxu1 }
 0x5ee   :  { %6755 = vmatmul.mubr.msk.f32.gmra.mxu1 %vm1217_vm1, %v6730_v15 }
 0x5ef   :  { %v2276_v4 = vpop.f32.mrf.mxu1 }
 0x5f0   :  { %6757 = vmatprep.mubr.msk.f32.mxu1 %vm1217_vm1, %v2276_v4 }
 0x5f2   :  { %v6736_v22 = vpop.f32.mrf.mxu1  ;;  %6758 = vmatmul.mubr.msk.f32.gmra.mxu1 %vm1217_vm1, %v6733_v37 }
 0x5f4   :  { %v2286_v2 = vpop.f32.mrf.mxu1 }
 0x5f5   :  { %6760 = vmatprep.mubr.msk.f32.mxu1 %vm1217_vm1, %v2286_v2  ;;  %v5629_v2 = vld [vmem:[%s10716_s4 + $0x120] sm:$0xff] }
 0x5f6   :  { %6761 = vmatmul.mubr.msk.f32.gmra.mxu1 %vm1217_vm1, %v6736_v22 }
 0x5f7   :  { %6821 = vmatprep.mubr.msk.f32.mxu1 %vm1217_vm1, %v9160_v18  ;;  %v10905_v18 = vld [vmem:[#allocation21_spill] sm:$0xff] }
 0x5fa   :  { %6822 = vmatmul.mubr.msk.f32.vlgmr.msra.gmra.mxu1 %vm1217_vm1, %v9157_v23  ;;  %v10904_v23 = vld [vmem:[#allocation20_spill] sm:$0xff] }
 0x5fb   :  { %6928 = vmatpush3.xpose.msk.msra.mxu1 %vm1217_vm1, %v9204_v7  ;;  %6824 = vmatprep.mubr.msk.f32.mxu1 %vm1217_vm1, %v9166_v51  ;;  %v10908_v51 = vld [vmem:[#allocation27_spill] sm:$0xff] }
 0x5fc   :  { %6929 = vmatprep.subr.msk.mxu1 %vm1217_vm1, %v9202_v3 }
 0x5fe   :  { %6825 = vmatmul.mubr.msk.f32.gmra.mxu1 %vm1217_vm1, %v9164_v62  ;;  %v10907_v62 = vld [vmem:[#allocation22_spill] sm:$0xff] }
 0x5ff   :  { %6930 = vmatpush3.xpose.msk.msra.mxu1 %vm1217_vm1, %v9202_v3  ;;  %6827 = vmatprep.mubr.msk.f32.mxu1 %vm1217_vm1, %v9174_v60  ;;  %v10914_v60 = vld [vmem:[#allocation30_spill] sm:$0xff] }
 0x600   :  { %6931 = vmatprep.subr.msk.mxu1 %vm1217_vm1, %v9208_v55 }
 0x602   :  { %6828 = vmatmul.mubr.msk.f32.gmra.mxu1 %vm1217_vm1, %v9170_v35  ;;  %v10913_v35 = vld [vmem:[#allocation25_spill] sm:$0xff] }
 0x603   :  { %6932 = vmatpush3.xpose.msk.msra.mxu1 %vm1217_vm1, %v9208_v55  ;;  %6830 = vmatprep.mubr.msk.f32.mxu1 %vm1217_vm1, %v9180_v52 }
 0x604   :  { %6933 = vmatprep.subr.msk.mxu1 %vm1217_vm1, %v9206_v24 }
 0x606   :  { %6831 = vmatmul.mubr.msk.f32.gmra.mxu1 %vm1217_vm1, %v9176_v40  ;;  %v9478_v40 = vpop.f32.mrf.mxu0 }
 0x607   :  { %6934 = vmatpush3.xpose.msk.msra.mxu1 %vm1217_vm1, %v9206_v24  ;;  %6833 = vmatprep.mubr.msk.f32.mxu1 %vm1217_vm1, %v9184_v5 }
 0x608   :  { %6935 = vmatprep.subr.msk.mxu1 %vm1217_vm1, %v9212_v59  ;;  %v9480_v52 = vpop.f32.mrf.mxu0 }
 0x60a   :  { %6834 = vmatmul.mubr.msk.f32.gmra.mxu1 %vm1217_vm1, %v9182_v47  ;;  %v9482_v47 = vpop.f32.mrf.mxu0 }
 0x60b   :  { %6936 = vmatpush3.xpose.msk.msra.mxu1 %vm1217_vm1, %v9212_v59  ;;  %6836 = vmatprep.mubr.msk.f32.mxu1 %vm1217_vm1, %v9190_v10 }
 0x60c   :  { %6937 = vmatprep.subr.msk.mxu1 %vm1217_vm1, %v9210_v54  ;;  %v9484_v5 = vpop.f32.mrf.mxu0 }
 0x60e   :  { %6837 = vmatmul.mubr.msk.f32.gmra.mxu1 %vm1217_vm1, %v9186_v53  ;;  %v9486_v53 = vpop.f32.mrf.mxu0 }
 0x60f   :  { %6938 = vmatpush3.xpose.msk.msra.mxu1 %vm1217_vm1, %v9210_v54  ;;  %6839 = vmatprep.mubr.msk.f32.mxu1 %vm1217_vm1, %v9194_v33 }
 0x610   :  { %6939 = vmatprep.subr.msk.mxu1 %vm1217_vm1, %v9216_v6 }
 0x612   :  { %6840 = vmatmul.mubr.msk.f32.gmra.mxu1 %vm1217_vm1, %v9192_v8  ;;  %v9490_v8 = vpop.f32.mrf.mxu0 }
 0x613   :  { %6940 = vmatpush3.xpose.msk.msra.mxu1 %vm1217_vm1, %v9216_v6  ;;  %6842 = vmatprep.mubr.msk.f32.mxu1 %vm1217_vm1, %v9200_v1 }
 0x614   :  { %6941 = vmatprep.subr.msk.mxu1 %vm1217_vm1, %v9214_v38 }
 0x616   :  { %6843 = vmatmul.mubr.msk.f32.gmra.mxu1 %vm1217_vm1, %v9196_v46  ;;  %v9494_v46 = vpop.f32.mrf.mxu0 }
 0x617   :  { %6942 = vmatpush3.xpose.msk.msra.mxu1 %vm1217_vm1, %v9214_v38  ;;  %6959 = vmatprep.mubr.msk.f32.mxu1 %vm1217_vm1, %v9236_v58  ;;  %v10906_v58 = vld [vmem:[#allocation26_spill] sm:$0xff] }
 0x618   :  { %6943 = vmatprep.subr.msk.mxu1 %vm1217_vm1, %v9220_v63  ;;  %v9500_v7 = vpop.f32.mrf.mxu0 }
 0x61a   :  { %v9504_v55 = vpop.f32.mrf.mxu0 }
 0x61b   :  { %6944 = vmatpush3.xpose.msk.msra.mxu1 %vm1217_vm1, %v9220_v63 }
 0x61c   :  { %6945 = vmatprep.subr.msk.mxu1 %vm1217_vm1, %v9218_v34  ;;  %v9510_v38 = vpop.f32.mrf.mxu0 }
 0x61d   :  { %10915 = vst [vmem:[#allocation31_spill] sm:$0xff] %v9510_v38 }
 0x61f   :  { %6946 = vmatpush3.xpose.msk.msra.mxu1 %vm1217_vm1, %v9218_v34 }
 0x620   :  { %6947 = vmatprep.subr.msk.mxu1 %vm1217_vm1, %v9224_v56 }
 0x623   :  { %6948 = vmatpush3.xpose.msk.msra.mxu1 %vm1217_vm1, %v9224_v56 }
 0x624   :  { %6949 = vmatprep.subr.msk.mxu1 %vm1217_vm1, %v9222_v13 }
 0x627   :  { %6950 = vmatpush3.xpose.msk.msra.mxu1 %vm1217_vm1, %v9222_v13 }
 0x628   :  { %6951 = vmatprep.subr.msk.mxu1 %vm1217_vm1, %v9228_v11 }
 0x62b   :  { %6952 = vmatpush3.xpose.msk.msra.mxu1 %vm1217_vm1, %v9228_v11 }
 0x62c   :  { %6953 = vmatprep.subr.msk.mxu1 %vm1217_vm1, %v9226_v16 }
 0x62f   :  { %6954 = vmatpush3.xpose.msk.msra.mxu1 %vm1217_vm1, %v9226_v16 }
 0x630   :  { %6955 = vmatprep.subr.msk.mxu1 %vm1217_vm1, %v9232_v20 }
 0x633   :  { %6956 = vmatpush3.xpose.msk.msra.mxu1 %vm1217_vm1, %v9232_v20 }
 0x634   :  { %6957 = vmatprep.subr.msk.mxu1 %vm1217_vm1, %v9230_v31 }
 0x637   :  { %6958 = vmatpush3.xpose.msk.msra.mxu1 %vm1217_vm1, %v9230_v31 }
 0x63a   :  { %6960 = vmatmul.mubr.msk.f32.vlgmr.msra.gmra.mxu1 %vm1217_vm1, %v9234_v61  ;;  %v10912_v61 = vld [vmem:[#allocation29_spill] sm:$0xff] }
 0x63b   :  { %6962 = vmatprep.mubr.msk.f32.mxu1 %vm1217_vm1, %v9240_v44  ;;  %v10909_v44 = vld [vmem:[#allocation23_spill] sm:$0xff] }
 0x63e   :  { %6963 = vmatmul.mubr.msk.f32.gmra.mxu1 %vm1217_vm1, %v9238_v19  ;;  %v10910_v19 = vld [vmem:[#allocation28_spill] sm:$0xff] }
 0x63f   :  { %6965 = vmatprep.mubr.msk.f32.mxu1 %vm1217_vm1, %v9244_v45  ;;  %v10911_v45 = vld [vmem:[#allocation24_spill] sm:$0xff] }
 0x642   :  { %6966 = vmatmul.mubr.msk.f32.gmra.mxu1 %vm1217_vm1, %v10904_v23 }
 0x643   :  { %6968 = vmatprep.mubr.msk.f32.mxu1 %vm1217_vm1, %v10905_v18 }
 0x646   :  { %6969 = vmatmul.mubr.msk.f32.gmra.mxu1 %vm1217_vm1, %v10906_v58 }
 0x647   :  { %6971 = vmatprep.mubr.msk.f32.mxu1 %vm1217_vm1, %v10907_v62  ;;  %v5632_v62 = vld [vmem:[%s10716_s4 + $0x138] sm:$0xff] }
 0x64a   :  { %6972 = vmatmul.mubr.msk.f32.gmra.mxu1 %vm1217_vm1, %v10908_v51 }
 0x64b   :  { %6974 = vmatprep.mubr.msk.f32.mxu1 %vm1217_vm1, %v10909_v44 }
 0x64e   :  { %6975 = vmatmul.mubr.msk.f32.gmra.mxu1 %vm1217_vm1, %v10910_v19 }
 0x64f   :  { %6977 = vmatprep.mubr.msk.f32.mxu1 %vm1217_vm1, %v10911_v45  ;;  %v5631_v45 = vld [vmem:[%s10716_s4 + $0x130] sm:$0xff] }
 0x652   :  { %6978 = vmatmul.mubr.msk.f32.gmra.mxu1 %vm1217_vm1, %v10912_v61 }
 0x653   :  { %6980 = vmatprep.mubr.msk.f32.mxu1 %vm1217_vm1, %v10913_v35 }
 0x656   :  { %6981 = vmatmul.mubr.msk.f32.gmra.mxu1 %vm1217_vm1, %v10914_v60 }
 0x664   :  { %v9488_v10 = vpop.f32.mrf.mxu1 }
 0x666   :  { %v9492_v33 = vpop.f32.mrf.mxu1 }
 0x669   :  { %v9514_v34 = vpop.f32.mrf.mxu0 }
 0x66a   :  { %10916 = vst [vmem:[#allocation4_spill] sm:$0xff] %v9514_v34 }
 0x66b   :  { %v2652_v56 = vpop.f32.mrf.mxu0 }
 0x672   :  { %v6785_v11 = vpop.f32.mrf.mxu0 }
 0x674   :  { %v2662_v26 = vpop.f32.mrf.mxu0 }
 0x699   :  { %v6788_v9 = vpop.f32.mrf.mxu0 }
 0x69e   :  { %v9496_v1 = vpop.f32.mrf.mxu1 }
 0x6a0   :  { %v9498_v3 = vpop.f32.mrf.mxu1 }
 0x6a2   :  { %v9502_v24 = vpop.f32.mrf.mxu1 }
 0x6a4   :  { %v9506_v54 = vpop.f32.mrf.mxu1 }
 0x6a6   :  { %v9508_v59 = vpop.f32.mrf.mxu1 }
 0x6a8   :  { %v9512_v6 = vpop.f32.mrf.mxu1 }
 0x6aa   :  { %v9516_v63 = vpop.f32.mrf.mxu1 }
 0x6ac   :  { %v9518_v13 = vpop.f32.mrf.mxu1 }
 0x6ad   :  { %10917 = vst [vmem:[#allocation32_spill] sm:$0xff] %v9518_v13 }
 0x6ae   :  { %v9520_v16 = vpop.f32.mrf.mxu1 }
 0x6af   :  { %10918 = vst [vmem:[#allocation33_spill] sm:$0xff] %v9520_v16 }
 0x6b0   :  { %v2459_v31 = vpop.f32.mrf.mxu1 }
 0x6b1   :  { %v9522_v20 = vadd.f32 %v2652_v56, %v2459_v31  ;;  %v5634_v56 = vld [vmem:[%s10716_s4 + $0x148] sm:$0xff] }
 0x6b2   :  { %v6759_v57 = vpop.f32.mrf.mxu1 }
 0x6b3   :  { %10919 = vst [vmem:[#allocation34_spill] sm:$0xff] %v9522_v20  ;;  %v9524_v32 = vadd.f32 %v6785_v11, %v6759_v57 }
 0x6b4   :  { %v2469_v14 = vpop.f32.mrf.mxu1 }
 0x6b5   :  { %10920 = vst [vmem:[#allocation35_spill] sm:$0xff] %v9524_v32  ;;  %v9526_v25 = vadd.f32 %v2662_v26, %v2469_v14  ;;  %v5633_v26 = vld [vmem:[%s10716_s4 + $0x140] sm:$0xff] }
 0x6b6   :  { %v6762_v48 = vpop.f32.mrf.mxu1 }
 0x6b7   :  { %10921 = vst [vmem:[#allocation36_spill] sm:$0xff] %v9526_v25  ;;  %v9528_v21 = vadd.f32 %v6788_v9, %v6762_v48 }
 0x6b8   :  { %v9530_v43 = vpop.f32.mrf.mxu1 }
 0x6b9   :  { %10922 = vst [vmem:[#allocation37_spill] sm:$0xff] %v9528_v21  ;;  %10923 = vst [vmem:[#allocation39_spill] sm:$0xff] %v9530_v43  ;;  %v5696_v43 = vld [vmem:[%s10716_s4 + $0x1b8] sm:$0xff] }
 0x6ba   :  { %v6823_v50 = vpop.f32.mrf.mxu1 }
 0x6bb   :  { %v2898_v49 = vadd.f32 %v6823_v50, %v5626_v17  ;;  %v5636_v50 = vld [vmem:[%s10716_s4 + $0x158] sm:$0xff] }
 0x6bc   :  { %v2892_v29 = vpop.f32.mrf.mxu1 }
 0x6bd   :  { %v2973_v12 = vmul.f32 1.442695, %v2898_v49  ;;  %v2893_v30 = vadd.f32 %v5625_v39, %v2892_v29 }
 0x6be   :  { %v6826_v42 = vpop.f32.mrf.mxu1 }
 0x6bf   :  { %7436 = vpow2.f32 %v2973_v12  ;;  %v2971_v41 = vmul.f32 1.442695, %v2893_v30  ;;  %v2908_v28 = vadd.f32 %v6826_v42, %v5628_v0  ;;  %v5635_v12 = vld [vmem:[%s10716_s4 + $0x150] sm:$0xff] }
 0x6c0   :  { %v2902_v15 = vpop.f32.mrf.mxu1 }
 0x6c1   :  { %7438 = vpow2.f32 %v2971_v41  ;;  %v2977_v37 = vmul.f32 1.442695, %v2908_v28  ;;  %v2903_v4 = vadd.f32 %v5627_v27, %v2902_v15  ;;  %v5638_v28 = vld [vmem:[%s10716_s4 + $0x168] sm:$0xff] }
 0x6c2   :  { %v6829_v22 = vpop.f32.mrf.mxu1 }
 0x6c3   :  { %7440 = vpow2.f32 %v2977_v37  ;;  %v2975_v23 = vmul.f32 1.442695, %v2903_v4  ;;  %v2918_v18 = vadd.f32 %v6829_v22, %v5630_v36  ;;  %v5637_v22 = vld [vmem:[%s10716_s4 + $0x160] sm:$0xff] }
 0x6c4   :  { %v2912_v58 = vpop.f32.mrf.mxu1 }
 0x6c5   :  { %7442 = vpow2.f32 %v2975_v23  ;;  %v2981_v51 = vmul.f32 1.442695, %v2918_v18  ;;  %v2913_v44 = vadd.f32 %v5629_v2, %v2912_v58 }
 0x6c6   :  { %v6832_v19 = vpop.f32.mrf.mxu1 }
 0x6c7   :  { %7444 = vpow2.f32 %v2981_v51  ;;  %v2979_v61 = vmul.f32 1.442695, %v2913_v44  ;;  %v2928_v35 = vadd.f32 %v6832_v19, %v5632_v62  ;;  %v5640_v62 = vld [vmem:[%s10716_s4 + $0x178] sm:$0xff] }
 0x6c8   :  { %v2922_v60 = vpop.f32.mrf.mxu1 }
 0x6c9   :  { %7446 = vpow2.f32 %v2979_v61  ;;  %v2985_v11 = vmul.f32 1.442695, %v2928_v35  ;;  %v2923_v31 = vadd.f32 %v5631_v45, %v2922_v60  ;;  %v5639_v61 = vld [vmem:[%s10716_s4 + $0x170] sm:$0xff] }
 0x6ca   :  { %v6835_v57 = vpop.f32.mrf.mxu1 }
 0x6cb   :  { %7448 = vpow2.f32 %v2985_v11  ;;  %v2983_v14 = vmul.f32 1.442695, %v2923_v31  ;;  %v2938_v9 = vadd.f32 %v6835_v57, %v5634_v56 }
 0x6cc   :  { %v9562_v48 = vpop.eup %7436  ;;  %v2932_v17 = vpop.f32.mrf.mxu1 }
 0x6cd   :  { %7450 = vpow2.f32 %v2983_v14  ;;  %v2989_v39 = vmul.f32 1.442695, %v2938_v9  ;;  %v2933_v49 = vadd.f32 %v5633_v26, %v2932_v17  ;;  %3005 = vadd.xlane.f32.xlu1 %v9562_v48 }
 0x6ce   :  { %v9568_v29 = vpop.eup %7438  ;;  %v6838_v0 = vpop.f32.mrf.mxu1 }
 0x6cf   :  { %7452 = vpow2.f32 %v2989_v39  ;;  %v2987_v30 = vmul.f32 1.442695, %v2933_v49  ;;  %v2948_v42 = vadd.f32 %v6838_v0, %v5636_v50  ;;  %3003 = vadd.xlane.f32.xlu0 %v9568_v29 }
 0x6d0   :  { %v9574_v27 = vpop.eup %7440  ;;  %v2942_v41 = vpop.f32.mrf.mxu1 }
 0x6d1   :  { %7454 = vpow2.f32 %v2987_v30  ;;  %v2993_v15 = vmul.f32 1.442695, %v2948_v42  ;;  %v2943_v36 = vadd.f32 %v5635_v12, %v2942_v41  ;;  %3009 = vadd.xlane.f32.xlu1 %v9574_v27  ;;  %v9631_v42 = vld [vmem:[%s10717_s8 + $0x10] sm:$0xff]  ;;  %v10924_v41 = vld [vmem:[#allocation5_spill] sm:$0xff] }
 0x6d2   :  { %v9580_v37 = vpop.eup %7442  ;;  %v6841_v4 = vpop.f32.mrf.mxu1  ;;  %6901 = vmatprep.subr.mxu0 %v9631_v42 }
 0x6d3   :  { %7456 = vpow2.f32 %v2993_v15  ;;  %v2991_v2 = vmul.f32 1.442695, %v2943_v36  ;;  %v2958_v23 = vadd.f32 %v6841_v4, %v5638_v28  ;;  %3007 = vadd.xlane.f32.xlu0 %v9580_v37  ;;  %v10925_v28 = vld [vmem:[#allocation7_spill] sm:$0xff]  ;;  %v10927_v36 = vld [vmem:[#allocation9_spill] sm:$0xff] }
 0x6d4   :  { %v9586_v18 = vpop.eup %7444  ;;  %v2952_v58 = vpop.f32.mrf.mxu1  ;;  %v10926_v15 = vld [vmem:[#allocation3_spill] sm:$0xff] }
 0x6d5   :  { %7458 = vpow2.f32 %v2991_v2  ;;  %v2997_v51 = vmul.f32 1.442695, %v2958_v23  ;;  %v2953_v44 = vadd.f32 %v5637_v22, %v2952_v58  ;;  %3013 = vadd.xlane.f32.xlu1 %v9586_v18  ;;  %v10928_v22 = vld [vmem:[#allocation6_spill] sm:$0xff]  ;;  %v10929_v2 = vld [vmem:[#allocation11_spill] sm:$0xff]  ;;  %v10930_v58 = vld [vmem:[#allocation8_spill] sm:$0xff] }
 0x6d6   :  { %v9592_v19 = vpop.eup %7446  ;;  %v6844_v45 = vpop.f32.mrf.mxu1 }
 0x6d7   :  { %7460 = vpow2.f32 %v2997_v51  ;;  %v2995_v35 = vmul.f32 1.442695, %v2953_v44  ;;  %v2968_v60 = vadd.f32 %v6844_v45, %v5640_v62  ;;  %3011 = vadd.xlane.f32.xlu0 %v9592_v19  ;;  %v10931_v62 = vld [vmem:[#allocation13_spill] sm:$0xff]  ;;  %v10932_v44 = vld [vmem:[#allocation10_spill] sm:$0xff]  ;;  %v10933_v45 = vld [vmem:[#allocation15_spill] sm:$0xff] }
 0x6d8   :  { %v9598_v56 = vpop.eup %7448  ;;  %v2962_v11 = vpop.f32.mrf.mxu1 }
 0x6d9   :  { %7462 = vpow2.f32 %v2995_v35  ;;  %v3001_v31 = vmul.f32 1.442695, %v2968_v60  ;;  %v2963_v57 = vadd.f32 %v5639_v61, %v2962_v11  ;;  %3017 = vadd.xlane.f32.xlu1 %v9598_v56  ;;  %v10934_v35 = vld [vmem:[#allocation12_spill] sm:$0xff]  ;;  %v10935_v60 = vld [vmem:[#allocation17_spill] sm:$0xff] }
 0x6da   :  { %v9601_v26 = vpop.eup %7450 }
 0x6db   :  { %7464 = vpow2.f32 %v3001_v31  ;;  %v2999_v14 = vmul.f32 1.442695, %v2963_v57  ;;  %3015 = vadd.xlane.f32.xlu0 %v9601_v26  ;;  %v10936_v31 = vld [vmem:[#allocation14_spill] sm:$0xff]  ;;  %v10937_v57 = vld [vmem:[#allocation19_spill] sm:$0xff] }
 0x6dc   :  { %v9604_v9 = vpop.eup %7452 }
 0x6dd   :  { %7466 = vpow2.f32 %v2999_v14  ;;  %3021 = vadd.xlane.f32.xlu1 %v9604_v9 }
 0x6de   :  { %v9607_v17 = vpop.eup %7454 }
 0x6df   :  { %3019 = vadd.xlane.f32.xlu0 %v9607_v17 }
 0x6e0   :  { %v9610_v50 = vpop.eup %7456 }
 0x6e1   :  { %3025 = vadd.xlane.f32.xlu1 %v9610_v50 }
 0x6e2   :  { %v9613_v39 = vpop.eup %7458 }
 0x6e3   :  { %3023 = vadd.xlane.f32.xlu0 %v9613_v39 }
 0x6e4   :  { %v9616_v49 = vpop.eup %7460 }
 0x6e5   :  { %3029 = vadd.xlane.f32.xlu1 %v9616_v49 }
 0x6e6   :  { %v9619_v0 = vpop.eup %7462 }
 0x6e7   :  { %3027 = vadd.xlane.f32.xlu0 %v9619_v0 }
 0x6e8   :  { %v9622_v12 = vpop.eup %7464 }
 0x6e9   :  { %3033 = vadd.xlane.f32.xlu1 %v9622_v12 }
 0x6ea   :  { %v9625_v30 = vpop.eup %7466 }
 0x6eb   :  { %3031 = vadd.xlane.f32.xlu0 %v9625_v30 }
 0x6fa   :  { %3883 = vrot.lane.b32.xlu1 %v10924_v41, %s7680_s27  ;;  %v6961_v4 = vpop.f32.mrf.mxu1  ;;  %v10938_v41 = vld [vmem:[#allocation16_spill] sm:$0xff] }
 0x6fc   :  { %v3680_v23 = vpop.f32.mrf.mxu1 }
 0x6fe   :  { %3879 = vrot.lane.b32.xlu1 %v10925_v28, %s7680_s27  ;;  %v6964_v51 = vpop.f32.mrf.mxu1 }
 0x700   :  { %v3690_v61 = vpop.f32.mrf.mxu1 }
 0x701   :  { %3885 = vrot.lane.b32.xlu0 %v10926_v15, %s7680_s27  ;;  %v10939_v15 = vld [vmem:[#allocation18_spill] sm:$0xff] }
 0x702   :  { %3875 = vrot.lane.b32.xlu1 %v10927_v36, %s7680_s27  ;;  %v6967_v11 = vpop.f32.mrf.mxu1 }
 0x704   :  { %v3700_v14 = vpop.f32.mrf.mxu1 }
 0x705   :  { %3881 = vrot.lane.b32.xlu0 %v10928_v22, %s7680_s27  ;;  %v5690_v22 = vld [vmem:[%s10716_s4 + $0x188] sm:$0xff] }
 0x706   :  { %3871 = vrot.lane.b32.xlu1 %v10929_v2, %s7680_s27  ;;  %v6970_v28 = vpop.f32.mrf.mxu1  ;;  %v5689_v2 = vld [vmem:[%s10716_s4 + $0x180] sm:$0xff] }
 0x708   :  { %v3710_v36 = vpop.f32.mrf.mxu1 }
 0x709   :  { %3877 = vrot.lane.b32.xlu0 %v10930_v58, %s7680_s27 }
 0x70a   :  { %3867 = vrot.lane.b32.xlu1 %v10931_v62, %s7680_s27  ;;  %v6973_v58 = vpop.f32.mrf.mxu1  ;;  %v3686_v62 = vadd.f32 %v6961_v4, %v5690_v22  ;;  %v5693_v4 = vld [vmem:[%s10716_s4 + $0x1a0] sm:$0xff] }
 0x70d   :  { %3873 = vrot.lane.b32.xlu0 %v10932_v44, %s7680_s27  ;;  %v5692_v44 = vld [vmem:[%s10716_s4 + $0x198] sm:$0xff] }
 0x70e   :  { %3863 = vrot.lane.b32.xlu1 %v10933_v45, %s7680_s27  ;;  %v3681_v45 = vadd.f32 %v5689_v2, %v3680_v23 }
 0x711   :  { %3869 = vrot.lane.b32.xlu0 %v10934_v35, %s7680_s27  ;;  %v5691_v35 = vld [vmem:[%s10716_s4 + $0x190] sm:$0xff] }
 0x712   :  { %3859 = vrot.lane.b32.xlu1 %v10935_v60, %s7680_s27  ;;  %v3720_v60 = vpop.f32.mrf.mxu1  ;;  %v3691_v21 = vadd.f32 %v5691_v35, %v3690_v61  ;;  %v3716_v35 = vadd.f32 %v6970_v28, %v5696_v43 }
 0x714   :  { %v6976_v22 = vpop.f32.mrf.mxu1 }
 0x715   :  { %3865 = vrot.lane.b32.xlu0 %v10936_v31, %s7680_s27  ;;  %v3761_v31 = vmul.f32 1.442695, %v3686_v62  ;;  %v3701_v62 = vadd.f32 %v5693_v4, %v3700_v14  ;;  %v5700_v4 = vld [vmem:[%s10716_s4 + $0x1d8] sm:$0xff] }
 0x716   :  { %3855 = vrot.lane.b32.xlu1 %v10937_v57, %s7680_s27  ;;  %v3696_v57 = vadd.f32 %v6964_v51, %v5692_v44  ;;  %v3763_v51 = vmul.f32 1.442695, %v3691_v21  ;;  %v5695_v44 = vld [vmem:[%s10716_s4 + $0x1b0] sm:$0xff]  ;;  %v3730_v61 = vpop.f32.mrf.mxu1  ;;  %v5697_v21 = vld [vmem:[%s10716_s4 + $0x1c0] sm:$0xff] }
 0x717   :  { %7468 = vpow2.f32 %v3761_v31  ;;  %v5698_v31 = vld [vmem:[%s10716_s4 + $0x1c8] sm:$0xff]  ;;  %v3721_v28 = vadd.f32 %v5697_v21, %v3720_v60 }
 0x718   :  { %v3765_v23 = vmul.f32 1.442695, %v3696_v57  ;;  %v3711_v57 = vadd.f32 %v5695_v44, %v3710_v36  ;;  %v6979_v14 = vpop.f32.mrf.mxu1 }
 0x719   :  { %3861 = vrot.lane.b32.xlu0 %v10938_v41, %s7680_s27  ;;  %v5694_v41 = vld [vmem:[%s10716_s4 + $0x1a8] sm:$0xff]  ;;  %v3775_v44 = vmul.f32 1.442695, %v3721_v28 }
 0x71a   :  { %v3706_v2 = vadd.f32 %v6967_v11, %v5694_v41  ;;  %v3767_v11 = vmul.f32 1.442695, %v3701_v62  ;;  %v3773_v41 = vmul.f32 1.442695, %v3716_v35  ;;  %v3771_v43 = vmul.f32 1.442695, %v3711_v57  ;;  %v3740_v36 = vpop.f32.mrf.mxu1 }
 0x71b   :  { %v5701_v35 = vld [vmem:[%s10716_s4 + $0x1e0] sm:$0xff] }
 0x71d   :  { %3857 = vrot.lane.b32.xlu0 %v10939_v15, %s7680_s27  ;;  %v3759_v15 = vmul.f32 1.442695, %v3681_v45  ;;  %v3769_v45 = vmul.f32 1.442695, %v3706_v2 }
 0x71f   :  { %7470 = vpow2.f32 %v3759_v15  ;;  %v3726_v15 = vadd.f32 %v6973_v58, %v5698_v31  ;;  %v5702_v58 = vld [vmem:[%s10716_s4 + $0x1e8] sm:$0xff]  ;;  %v6982_v31 = vpop.f32.mrf.mxu1 }
 0x720   :  { %7472 = vpow2.f32 %v3765_v23  ;;  %v5699_v23 = vld [vmem:[%s10716_s4 + $0x1d0] sm:$0xff] }
 0x721   :  { %7474 = vpow2.f32 %v3763_v51  ;;  %v3777_v2 = vmul.f32 1.442695, %v3726_v15  ;;  %v3736_v51 = vadd.f32 %v6976_v22, %v5700_v4  ;;  %v3750_v4 = vpop.f32.mrf.mxu1 }
 0x722   :  { %7476 = vpow2.f32 %v3769_v45  ;;  %v3731_v45 = vadd.f32 %v5699_v23, %v3730_v61  ;;  %v5704_v61 = vld [vmem:[%s10716_s4 + $0x1f8] sm:$0xff] }
 0x723   :  { %7478 = vpow2.f32 %v3767_v11  ;;  %v3781_v22 = vmul.f32 1.442695, %v3736_v51  ;;  %v3746_v11 = vadd.f32 %v6979_v14, %v5702_v58  ;;  %v5703_v14 = vld [vmem:[%s10716_s4 + $0x1f0] sm:$0xff]  ;;  %v3756_v28 = vadd.f32 %v6982_v31, %v5704_v61 }
 0x724   :  { %7480 = vpow2.f32 %v3773_v41  ;;  %v9702_v62 = vpop.eup %7468  ;;  %v3779_v21 = vmul.f32 1.442695, %v3731_v45  ;;  %v3741_v41 = vadd.f32 %v5701_v35, %v3740_v36  ;;  %v3751_v51 = vadd.f32 %v5703_v14, %v3750_v4 }
 0x725   :  { %7482 = vpow2.f32 %v3771_v43  ;;  %v3785_v43 = vmul.f32 1.442695, %v3746_v11  ;;  %v3789_v58 = vmul.f32 1.442695, %v3756_v28 }
 0x726   :  { %7484 = vpow2.f32 %v3777_v2  ;;  %v3783_v2 = vmul.f32 1.442695, %v3741_v41  ;;  %v3787_v45 = vmul.f32 1.442695, %v3751_v51 }
 0x727   :  { %7486 = vpow2.f32 %v3775_v44 }
 0x728   :  { %7488 = vpow2.f32 %v3781_v22 }
 0x729   :  { %7490 = vpow2.f32 %v3779_v21 }
 0x72a   :  { %7492 = vpow2.f32 %v3785_v43 }
 0x72b   :  { %7494 = vpow2.f32 %v3783_v2 }
 0x72c   :  { %v9708_v60 = vpop.eup %7470  ;;  %7496 = vpow2.f32 %v3789_v58 }
 0x72d   :  { %v9714_v57 = vpop.eup %7472  ;;  %7498 = vpow2.f32 %v3787_v45 }
 0x72e   :  { %v9720_v15 = vpop.eup %7474 }
 0x72f   :  { %v9726_v23 = vpop.eup %7476 }
 0x730   :  { %v9729_v36 = vpop.eup %7478 }
 0x731   :  { %v9732_v44 = vpop.eup %7480 }
 0x732   :  { %v9735_v35 = vpop.eup %7482 }
 0x733   :  { %v9738_v31 = vpop.eup %7484 }
 0x734   :  { %v9741_v22 = vpop.eup %7486 }
 0x735   :  { %v9744_v11 = vpop.eup %7488 }
 0x736   :  { %v9747_v61 = vpop.eup %7490 }
 0x737   :  { %v9750_v21 = vpop.eup %7492 }
 0x738   :  { %v9753_v41 = vpop.eup %7494 }
 0x739   :  { %v9756_v4 = vpop.eup %7496 }
 0x73a   :  { %3793 = vadd.xlane.f32.xlu1 %v9702_v62  ;;  %v9759_v43 = vpop.eup %7498 }
 0x73c   :  { %3791 = vadd.xlane.f32.xlu0 %v9708_v60 }
 0x73e   :  { %3797 = vadd.xlane.f32.xlu1 %v9714_v57 }
 0x740   :  { %3795 = vadd.xlane.f32.xlu0 %v9720_v15 }
 0x742   :  { %3801 = vadd.xlane.f32.xlu1 %v9726_v23 }
 0x744   :  { %3799 = vadd.xlane.f32.xlu0 %v9729_v36 }
 0x746   :  { %3805 = vadd.xlane.f32.xlu1 %v9732_v44 }
 0x748   :  { %3803 = vadd.xlane.f32.xlu0 %v9735_v35 }
 0x74a   :  { %3809 = vadd.xlane.f32.xlu1 %v9738_v31 }
 0x74c   :  { %3807 = vadd.xlane.f32.xlu0 %v9741_v22 }
 0x74e   :  { %3813 = vadd.xlane.f32.xlu1 %v9744_v11 }
 0x750   :  { %3811 = vadd.xlane.f32.xlu0 %v9747_v61 }
 0x752   :  { %3817 = vadd.xlane.f32.xlu1 %v9750_v21 }
 0x754   :  { %3815 = vadd.xlane.f32.xlu0 %v9753_v41 }
 0x756   :  { %3821 = vadd.xlane.f32.xlu1 %v9756_v4  ;;  %v3006_v14 = vpop.xlane.xlu1 %3005 }
 0x757   :  { %7500 = vrcp.f32 %v3006_v14 }
 0x758   :  { %v3004_v28 = vpop.xlane.xlu0 %3003  ;;  %3819 = vadd.xlane.f32.xlu0 %v9759_v43 }
 0x759   :  { %7502 = vrcp.f32 %v3004_v28 }
 0x75a   :  { %v3010_v2 = vpop.xlane.xlu1 %3009 }
 0x75b   :  { %7504 = vrcp.f32 %v3010_v2 }
 0x75c   :  { %v3008_v51 = vpop.xlane.xlu0 %3007 }
 0x75d   :  { %7506 = vrcp.f32 %v3008_v51 }
 0x75e   :  { %v3014_v58 = vpop.xlane.xlu1 %3013 }
 0x75f   :  { %7508 = vrcp.f32 %v3014_v58 }
 0x760   :  { %v3012_v45 = vpop.xlane.xlu0 %3011 }
 0x761   :  { %7510 = vrcp.f32 %v3012_v45 }
 0x762   :  { %v3018_v25 = vpop.xlane.xlu1 %3017 }
 0x763   :  { %7512 = vrcp.f32 %v3018_v25 }
 0x764   :  { %v3016_v32 = vpop.xlane.xlu0 %3015  ;;  %v7501_v20 = vpop.eup %7500 }
 0x765   :  { %7514 = vrcp.f32 %v3016_v32  ;;  %v3052_v28 = vmul.f32 %v7501_v20, %v9562_v48 }
 0x766   :  { %v7503_v34 = vpop.eup %7502  ;;  %v3022_v16 = vpop.xlane.xlu1 %3021 }
 0x767   :  { %v3051_v14 = vmul.f32 %v7503_v34, %v9568_v29  ;;  %7516 = vrcp.f32 %v3022_v16 }
 0x768   :  { %v3020_v38 = vpop.xlane.xlu0 %3019  ;;  %v7505_v2 = vpop.eup %7504 }
 0x769   :  { %7518 = vrcp.f32 %v3020_v38  ;;  %6877 = vmatprep.mubr.f32.mxu0 %v3051_v14  ;;  %v3054_v25 = vmul.f32 %v7505_v2, %v9574_v27 }
 0x76a   :  { %v7507_v51 = vpop.eup %7506  ;;  %6878 = vmatmul.mubr.f32.vlgmr.msra.gmra.mxu0 %v3052_v28  ;;  %v3026_v58 = vpop.xlane.xlu1 %3025 }
 0x76b   :  { %v3053_v45 = vmul.f32 %v7507_v51, %v9580_v37  ;;  %6902 = vmatpush3.msra.mxu0 %v9631_v42  ;;  %7520 = vrcp.f32 %v3026_v58 }
 0x76c   :  { %v3024_v32 = vpop.xlane.xlu0 %3023  ;;  %v7509_v13 = vpop.eup %7508 }
 0x76d   :  { %7522 = vrcp.f32 %v3024_v32  ;;  %6880 = vmatprep.mubr.f32.mxu0 %v3053_v45  ;;  %v3056_v48 = vmul.f32 %v7509_v13, %v9586_v18 }
 0x76e   :  { %v7511_v34 = vpop.eup %7510  ;;  %6881 = vmatmul.mubr.f32.gmra.mxu0 %v3054_v25  ;;  %v3030_v16 = vpop.xlane.xlu1 %3029 }
 0x76f   :  { %v3055_v38 = vmul.f32 %v7511_v34, %v9592_v19  ;;  %7524 = vrcp.f32 %v3030_v16 }
 0x770   :  { %v3028_v20 = vpop.xlane.xlu0 %3027  ;;  %v7513_v29 = vpop.eup %7512 }
 0x771   :  { %7526 = vrcp.f32 %v3028_v20  ;;  %6883 = vmatprep.mubr.f32.mxu0 %v3055_v38  ;;  %v3058_v28 = vmul.f32 %v7513_v29, %v9598_v56 }
 0x772   :  { %v7515_v37 = vpop.eup %7514  ;;  %6884 = vmatmul.mubr.f32.gmra.mxu0 %v3056_v48  ;;  %v3034_v42 = vpop.xlane.xlu1 %3033 }
 0x773   :  { %v3057_v27 = vmul.f32 %v7515_v37, %v9601_v26  ;;  %7528 = vrcp.f32 %v3034_v42 }
 0x774   :  { %v3032_v14 = vpop.xlane.xlu0 %3031  ;;  %v7517_v2 = vpop.eup %7516 }
 0x775   :  { %7530 = vrcp.f32 %v3032_v14  ;;  %6886 = vmatprep.mubr.f32.mxu0 %v3057_v27  ;;  %v3060_v18 = vmul.f32 %v7517_v2, %v9604_v9 }
 0x776   :  { %v7519_v19 = vpop.eup %7518  ;;  %6887 = vmatmul.mubr.f32.gmra.mxu0 %v3058_v28 }
 0x777   :  { %v3059_v51 = vmul.f32 %v7519_v19, %v9607_v17 }
 0x778   :  { %v3886_v13 = vpop.permute.xlu0 %3885  ;;  %v7521_v58 = vpop.eup %7520 }
 0x779   :  { %6889 = vmatprep.mubr.f32.mxu0 %v3059_v51  ;;  %6983 = vmatprep.subr.mxu0 %v3886_v13  ;;  %v3062_v32 = vmul.f32 %v7521_v58, %v9610_v50  ;;  %v9791_v51 = vpop.f32.mrf.mxu0 }
 0x77a   :  { %v7523_v45 = vpop.eup %7522  ;;  %6890 = vmatmul.mubr.f32.gmra.mxu0 %v3060_v18 }
 0x77b   :  { %v3061_v26 = vmul.f32 %v7523_v45, %v9613_v39  ;;  %v3884_v39 = vpop.permute.xlu1 %3883 }
 0x77c   :  { %v7525_v56 = vpop.eup %7524  ;;  %v3882_v50 = vpop.permute.xlu0 %3881 }
 0x77d   :  { %6892 = vmatprep.mubr.f32.mxu0 %v3061_v26  ;;  %v3064_v17 = vmul.f32 %v7525_v56, %v9616_v49 }
 0x77e   :  { %v7527_v25 = vpop.eup %7526  ;;  %6893 = vmatmul.mubr.f32.gmra.mxu0 %v3062_v32 }
 0x77f   :  { %v3063_v34 = vmul.f32 %v7527_v25, %v9619_v0  ;;  %v3880_v48 = vpop.permute.xlu1 %3879 }
 0x780   :  { %v7529_v16 = vpop.eup %7528  ;;  %v3878_v29 = vpop.permute.xlu0 %3877 }
 0x781   :  { %6895 = vmatprep.mubr.f32.mxu0 %v3063_v34  ;;  %v3066_v20 = vmul.f32 %v7529_v16, %v9622_v12 }
 0x782   :  { %v7531_v9 = vpop.eup %7530  ;;  %6896 = vmatmul.mubr.f32.gmra.mxu0 %v3064_v17 }
 0x783   :  { %v3065_v38 = vmul.f32 %v7531_v9, %v9625_v30  ;;  %v3876_v37 = vpop.permute.xlu1 %3875 }
 0x784   :  { %v3874_v42 = vpop.permute.xlu0 %3873 }
 0x785   :  { %6898 = vmatprep.mubr.f32.mxu0 %v3065_v38 }
 0x786   :  { %6899 = vmatmul.mubr.f32.gmra.mxu0 %v3066_v20 }
 0x787   :  { %v3872_v27 = vpop.permute.xlu1 %3871 }
 0x788   :  { %v3870_v0 = vpop.permute.xlu0 %3869 }
 0x78b   :  { %v3868_v14 = vpop.permute.xlu1 %3867 }
 0x78c   :  { %v9779_v49 = vpop.permute.xlu0 %3865 }
 0x78f   :  { %v9781_v28 = vpop.permute.xlu1 %3863 }
 0x790   :  { %v9783_v2 = vpop.permute.xlu0 %3861 }
 0x793   :  { %v9785_v30 = vpop.permute.xlu1 %3859 }
 0x794   :  { %v9787_v12 = vpop.permute.xlu0 %3857 }
 0x797   :  { %v9789_v19 = vpop.permute.xlu1 %3855 }
 0x7c3   :  { %v3794_v45 = vpop.xlane.xlu1 %3793 }
 0x7c5   :  { %v3792_v18 = vpop.xlane.xlu0 %3791 }
 0x7c6   :  { %7532 = vrcp.f32 %v3792_v18 }
 0x7c7   :  { %v3798_v34 = vpop.xlane.xlu1 %3797  ;;  %7534 = vrcp.f32 %v3794_v45 }
 0x7c9   :  { %v3796_v32 = vpop.xlane.xlu0 %3795 }
 0x7ca   :  { %7536 = vrcp.f32 %v3796_v32 }
 0x7cb   :  { %7538 = vrcp.f32 %v3798_v34 }
 0x7cd   :  { %v3800_v16 = vpop.xlane.xlu0 %3799 }
 0x7ce   :  { %7540 = vrcp.f32 %v3800_v16 }
 0x82a   :  { %v6879_v58 = vpop.f32.mrf.mxu0 }
 0x82c   :  { %v3181_v26 = vpop.f32.mrf.mxu0 }
 0x82d   :  { %6903 = vmatprep.mubr.msk.f32.mxu0 %vm1217_vm1, %v3181_v26 }
 0x82e   :  { %v6882_v56 = vpop.f32.mrf.mxu0  ;;  %6904 = vmatmul.mubr.msk.f32.vlgmr.msra.gmra.mxu0 %vm1217_vm1, %v6879_v58 }
 0x82f   :  { %6984 = vmatpush3.msra.mxu0 %v3886_v13  ;;  %v3802_v13 = vpop.xlane.xlu1 %3801 }
 0x830   :  { %6985 = vmatprep.subr.mxu0 %v3884_v39  ;;  %v3191_v25 = vpop.f32.mrf.mxu0  ;;  %7542 = vrcp.f32 %v3802_v13 }
 0x831   :  { %6986 = vmatpush3.msra.mxu0 %v3884_v39  ;;  %6906 = vmatprep.mubr.msk.f32.mxu0 %vm1217_vm1, %v3191_v25  ;;  %v3804_v39 = vpop.xlane.xlu0 %3803 }
 0x832   :  { %6987 = vmatprep.subr.mxu0 %v3882_v50  ;;  %v6885_v17 = vpop.f32.mrf.mxu0  ;;  %6907 = vmatmul.mubr.msk.f32.gmra.mxu0 %vm1217_vm1, %v6882_v56  ;;  %7544 = vrcp.f32 %v3804_v39 }
 0x833   :  { %6988 = vmatpush3.msra.mxu0 %v3882_v50  ;;  %v3806_v58 = vpop.xlane.xlu1 %3805 }
 0x834   :  { %6989 = vmatprep.subr.mxu0 %v3880_v48  ;;  %v3201_v9 = vpop.f32.mrf.mxu0  ;;  %7546 = vrcp.f32 %v3806_v58 }
 0x835   :  { %6990 = vmatpush3.msra.mxu0 %v3880_v48  ;;  %6909 = vmatprep.mubr.msk.f32.mxu0 %vm1217_vm1, %v3201_v9 }
 0x836   :  { %6991 = vmatprep.subr.mxu0 %v3878_v29  ;;  %v6888_v38 = vpop.f32.mrf.mxu0  ;;  %6910 = vmatmul.mubr.msk.f32.gmra.mxu0 %vm1217_vm1, %v6885_v17 }
 0x837   :  { %6992 = vmatpush3.msra.mxu0 %v3878_v29 }
 0x838   :  { %6993 = vmatprep.subr.mxu0 %v3876_v37  ;;  %v3211_v20 = vpop.f32.mrf.mxu0 }
 0x839   :  { %6994 = vmatpush3.msra.mxu0 %v3876_v37  ;;  %6912 = vmatprep.mubr.msk.f32.mxu0 %vm1217_vm1, %v3211_v20  ;;  %v3808_v37 = vpop.xlane.xlu0 %3807 }
 0x83a   :  { %6995 = vmatprep.subr.mxu0 %v3874_v42  ;;  %v6891_v50 = vpop.f32.mrf.mxu0  ;;  %6913 = vmatmul.mubr.msk.f32.gmra.mxu0 %vm1217_vm1, %v6888_v38  ;;  %7548 = vrcp.f32 %v3808_v37 }
 0x83b   :  { %6996 = vmatpush3.msra.mxu0 %v3874_v42 }
 0x83c   :  { %6997 = vmatprep.subr.mxu0 %v3872_v27  ;;  %v3221_v48 = vpop.f32.mrf.mxu0 }
 0x83d   :  { %6998 = vmatpush3.msra.mxu0 %v3872_v27  ;;  %6915 = vmatprep.mubr.msk.f32.mxu0 %vm1217_vm1, %v3221_v48  ;;  %v3810_v27 = vpop.xlane.xlu1 %3809  ;;  %v3812_v45 = vpop.xlane.xlu0 %3811 }
 0x83e   :  { %6999 = vmatprep.subr.mxu0 %v3870_v0  ;;  %v6894_v29 = vpop.f32.mrf.mxu0  ;;  %6916 = vmatmul.mubr.msk.f32.gmra.mxu0 %vm1217_vm1, %v6891_v50  ;;  %7550 = vrcp.f32 %v3810_v27 }
 0x83f   :  { %7000 = vmatpush3.msra.mxu0 %v3870_v0  ;;  %7552 = vrcp.f32 %v3812_v45 }
 0x840   :  { %7001 = vmatprep.subr.mxu0 %v3868_v14  ;;  %v3231_v18 = vpop.f32.mrf.mxu0 }
 0x841   :  { %7002 = vmatpush3.msra.mxu0 %v3868_v14  ;;  %6918 = vmatprep.mubr.msk.f32.mxu0 %vm1217_vm1, %v3231_v18  ;;  %v7533_v14 = vpop.eup %7532  ;;  %v3814_v56 = vpop.xlane.xlu1 %3813 }
 0x842   :  { %7003 = vmatprep.subr.mxu0 %v9779_v49  ;;  %v6897_v42 = vpop.f32.mrf.mxu0  ;;  %6919 = vmatmul.mubr.msk.f32.gmra.mxu0 %vm1217_vm1, %v6894_v29  ;;  %v7535_v32 = vpop.eup %7534  ;;  %7554 = vrcp.f32 %v3814_v56 }
 0x843   :  { %7004 = vmatpush3.msra.mxu0 %v9779_v49  ;;  %v7537_v25 = vpop.eup %7536  ;;  %v3816_v34 = vpop.xlane.xlu0 %3815 }
 0x844   :  { %7005 = vmatprep.subr.mxu0 %v9781_v28  ;;  %v3241_v0 = vpop.f32.mrf.mxu0  ;;  %v7539_v17 = vpop.eup %7538  ;;  %7556 = vrcp.f32 %v3816_v34 }
 0x845   :  { %7006 = vmatpush3.msra.mxu0 %v9781_v28  ;;  %6921 = vmatprep.mubr.msk.f32.mxu0 %vm1217_vm1, %v3241_v0  ;;  %v3839_v28 = vmul.f32 %v7533_v14, %v9708_v60  ;;  %v3841_v60 = vmul.f32 %v7537_v25, %v9720_v15  ;;  %v3818_v16 = vpop.xlane.xlu1 %3817 }
 0x846   :  { %7007 = vmatprep.subr.mxu0 %v9783_v2  ;;  %v6900_v26 = vpop.f32.mrf.mxu0  ;;  %6922 = vmatmul.mubr.msk.f32.gmra.mxu0 %vm1217_vm1, %v6897_v42  ;;  %7558 = vrcp.f32 %v3818_v16 }
 0x847   :  { %7008 = vmatpush3.msra.mxu0 %v9783_v2  ;;  %v3840_v2 = vmul.f32 %v7535_v32, %v9702_v62  ;;  %v3820_v13 = vpop.xlane.xlu0 %3819  ;;  %v2613_v32 = vadd.f32 %v9484_v5, %v9498_v3  ;;  %v2633_v3 = vadd.f32 %v9500_v7, %v9512_v6 }
 0x848   :  { %7009 = vmatprep.subr.mxu0 %v9785_v30  ;;  %v3251_v49 = vpop.f32.mrf.mxu0  ;;  %7560 = vrcp.f32 %v3820_v13  ;;  %v10944_v13 = vld [vmem:[#allocation34_spill] sm:$0xff] }
 0x849   :  { %7010 = vmatpush3.msra.mxu0 %v9785_v30  ;;  %6924 = vmatprep.mubr.msk.f32.mxu0 %vm1217_vm1, %v3251_v49  ;;  %v7541_v30 = vpop.eup %7540  ;;  %v3822_v15 = vpop.xlane.xlu1 %3821 }
 0x84a   :  { %7011 = vmatprep.subr.mxu0 %v9787_v12  ;;  %6925 = vmatmul.mubr.msk.f32.gmra.mxu0 %vm1217_vm1, %v6900_v26  ;;  %v7543_v9 = vpop.eup %7542  ;;  %v3843_v62 = vmul.f32 %v7541_v30, %v9729_v36  ;;  %7562 = vrcp.f32 %v3822_v15 }
 0x84b   :  { %7012 = vmatpush3.msra.mxu0 %v9787_v12  ;;  %7015 = vmatprep.mubr.f32.mxu0 %v3839_v28  ;;  %v3842_v12 = vmul.f32 %v7539_v17, %v9714_v57  ;;  %v7545_v38 = vpop.eup %7544 }
 0x84c   :  { %7013 = vmatprep.subr.mxu0 %v9789_v19  ;;  %v7547_v20 = vpop.eup %7546  ;;  %v3845_v39 = vmul.f32 %v7545_v38, %v9735_v35 }
 0x84d   :  { %7014 = vmatpush3.msra.mxu0 %v9789_v19  ;;  %v3844_v19 = vmul.f32 %v7543_v9, %v9726_v23  ;;  %v7549_v50 = vpop.eup %7548  ;;  %v3846_v57 = vmul.f32 %v7547_v20, %v9732_v44 }
 0x84e   :  { %7016 = vmatmul.mubr.f32.vlgmr.msra.gmra.mxu0 %v3840_v2  ;;  %v7551_v48 = vpop.eup %7550  ;;  %v3847_v36 = vmul.f32 %v7549_v50, %v9741_v22 }
 0x84f   :  { %7018 = vmatprep.mubr.f32.mxu0 %v3841_v60  ;;  %v7553_v58 = vpop.eup %7552  ;;  %v3848_v29 = vmul.f32 %v7551_v48, %v9738_v31  ;;  %v10941_v60 = vld [vmem:[#allocation31_spill] sm:$0xff] }
 0x850   :  { %v7555_v23 = vpop.eup %7554  ;;  %v3849_v37 = vmul.f32 %v7553_v58, %v9747_v61  ;;  %v2608_v61 = vadd.f32 %v9478_v40, %v9488_v10  ;;  %v2628_v40 = vadd.f32 %v9486_v53, %v9502_v24  ;;  %v2648_v24 = vadd.f32 %v9504_v55, %v9516_v63  ;;  %v10947_v48 = vld [vmem:[#allocation39_spill] sm:$0xff]  ;;  %v10948_v58 = vld [vmem:[#allocation37_spill] sm:$0xff] }
 0x851   :  { %v7557_v18 = vpop.eup %7556  ;;  %v3850_v35 = vmul.f32 %v7555_v23, %v9744_v11  ;;  %v1200_v11 = vld [vmem:[%s10717_s8 + $0x18] sm:$0xff] }
 0x852   :  { %7019 = vmatmul.mubr.f32.gmra.mxu0 %v3842_v12  ;;  %v3851_v27 = vmul.f32 %v7557_v18, %v9753_v41  ;;  %7039 = vmatprep.subr.mxu0 %v1200_v11  ;;  %v10943_v12 = vld [vmem:[#allocation4_spill] sm:$0xff] }
 0x853   :  { %7021 = vmatprep.mubr.f32.mxu0 %v3843_v62  ;;  %v7559_v42 = vpop.eup %7558  ;;  %7040 = vmatpush3.msra.mxu0 %v1200_v11 }
 0x854   :  { %v3852_v22 = vmul.f32 %v7559_v42, %v9750_v21  ;;  %v2603_v21 = vadd.f32 %v9480_v52, %v9492_v33  ;;  %v2623_v33 = vadd.f32 %v9490_v8, %v9506_v54  ;;  %v10940_v54 = vld [vmem:[#allocation32_spill] sm:$0xff] }
 0x855   :  { %v7561_v44 = vpop.eup %7560  ;;  %v2643_v30 = vadd.f32 %v10941_v60, %v10940_v54  ;;  %v10949_v60 = vld [vmem:[#allocation2_spill] sm:$0xff] }
 0x856   :  { %7022 = vmatmul.mubr.f32.gmra.mxu0 %v3844_v19  ;;  %v3853_v14 = vmul.f32 %v7561_v44, %v9759_v43  ;;  %v10945_v19 = vld [vmem:[#allocation35_spill] sm:$0xff] }
 0x857   :  { %7024 = vmatprep.mubr.f32.mxu0 %v3845_v39  ;;  %v7563_v0 = vpop.eup %7562  ;;  %v10946_v39 = vld [vmem:[#allocation36_spill] sm:$0xff] }
 0x858   :  { %v3854_v31 = vmul.f32 %v7563_v0, %v9756_v4  ;;  %v2618_v4 = vadd.f32 %v9482_v47, %v9496_v1  ;;  %v2638_v1 = vadd.f32 %v9494_v46, %v9508_v59  ;;  %v10942_v59 = vld [vmem:[#allocation33_spill] sm:$0xff] }
 0x859   :  { %v2658_v9 = vadd.f32 %v10943_v12, %v10942_v59  ;;  %v9923_v12 = vld [vmem:[%s10715_s11] sm:$0xff] }
 0x85a   :  { %7025 = vmatmul.mubr.f32.gmra.mxu0 %v3846_v57 }
 0x85b   :  { %7027 = vmatprep.mubr.f32.mxu0 %v3847_v36  ;;  %v2673_v36 = vadd.f32 %v9791_v51, %v10947_v48 }
 0x85e   :  { %7028 = vmatmul.mubr.f32.gmra.mxu0 %v3848_v29 }
 0x85f   :  { %7030 = vmatprep.mubr.f32.mxu0 %v3849_v37 }
 0x862   :  { %7031 = vmatmul.mubr.f32.gmra.mxu0 %v3850_v35 }
 0x863   :  { %7033 = vmatprep.mubr.f32.mxu0 %v3851_v27 }
 0x866   :  { %7034 = vmatmul.mubr.f32.gmra.mxu0 %v3852_v22 }
 0x867   :  { %7036 = vmatprep.mubr.f32.mxu0 %v3853_v14 }
 0x86a   :  { %7037 = vmatmul.mubr.f32.gmra.mxu0 %v3854_v31 }
 0x8ee   :  { %v6905_v41 = vpop.f32.mrf.mxu0 }
 0x8ef   :  { %v9844_v45 = vadd.f32 %v6905_v41, %v2608_v61 }
 0x8f0   :  { %v3374_v43 = vpop.f32.mrf.mxu0 }
 0x8f1   :  { %v9848_v26 = vadd.f32 %v3374_v43, %v2603_v21 }
 0x8f2   :  { %v6908_v49 = vpop.f32.mrf.mxu0 }
 0x8f3   :  { %v9852_v56 = vadd.f32 %v6908_v49, %v2618_v4  ;;  %v4277_v49 = vld [vmem:[%s10718_s2] sm:$0xff] }
 0x8f4   :  { %v3384_v28 = vpop.f32.mrf.mxu0  ;;  %7097 = vmatprep.mubr.f32.mxu1 %v4277_v49  ;;  %v4289_v49 = vld [vmem:[%s10718_s2 + $0x60] sm:$0xff] }
 0x8f5   :  { %v9856_v10 = vadd.f32 %v3384_v28, %v2613_v32 }
 0x8f6   :  { %v6911_v52 = vpop.f32.mrf.mxu0 }
 0x8f7   :  { %v9860_v25 = vadd.f32 %v6911_v52, %v2628_v40 }
 0x8f8   :  { %v3394_v47 = vpop.f32.mrf.mxu0 }
 0x8f9   :  { %v9864_v2 = vadd.f32 %v3394_v47, %v2623_v33 }
 0x8fa   :  { %v6914_v5 = vpop.f32.mrf.mxu0 }
 0x8fb   :  { %v9868_v34 = vadd.f32 %v6914_v5, %v2638_v1 }
 0x8fc   :  { %v3404_v53 = vpop.f32.mrf.mxu0 }
 0x8fd   :  { %v9872_v17 = vadd.f32 %v3404_v53, %v2633_v3 }
 0x8fe   :  { %v6917_v8 = vpop.f32.mrf.mxu0 }
 0x8ff   :  { %v9876_v16 = vadd.f32 %v6917_v8, %v2648_v24 }
 0x900   :  { %v3414_v46 = vpop.f32.mrf.mxu0 }
 0x901   :  { %v9880_v62 = vadd.f32 %v3414_v46, %v2643_v30  ;;  %v4259_v30 = vsub.s32 3, %v10949_v60 }
 0x902   :  { %v6920_v7 = vpop.f32.mrf.mxu0 }
 0x903   :  { %v9882_v6 = vadd.f32 %v6920_v7, %v2658_v9  ;;  %v4260_v9 = vrot.slane %v9923_v12, %v4259_v30 }
 0x904   :  { %v3424_v38 = vpop.f32.mrf.mxu0 }
 0x905   :  { %v9885_v55 = vadd.f32 %v3424_v38, %v10944_v13 }
 0x906   :  { %v6923_v63 = vpop.f32.mrf.mxu0 }
 0x907   :  { %v9888_v20 = vadd.f32 %v6923_v63, %v10945_v19 }
 0x908   :  { %v3434_v15 = vpop.f32.mrf.mxu0 }
 0x909   :  { %v9891_v50 = vadd.f32 %v3434_v15, %v10946_v39 }
 0x90a   :  { %v6926_v57 = vpop.f32.mrf.mxu0 }
 0x90b   :  { %v3468_v29 = vadd.f32 %v6926_v57, %v10948_v58 }
 0x90c   :  { %v3444_v23 = vpop.f32.mrf.mxu0 }
 0x90d   :  { %v3467_v37 = vadd.f32 %v3444_v23, %v2673_v36 }
 0x90e   :  { %v7017_v18 = vpop.f32.mrf.mxu0 }
 0x910   :  { %v3969_v35 = vpop.f32.mrf.mxu0 }
 0x911   :  { %7041 = vmatprep.mubr.msk.f32.mxu0 %vm1217_vm1, %v3969_v35 }
 0x912   :  { %v7020_v42 = vpop.f32.mrf.mxu0  ;;  %7042 = vmatmul.mubr.msk.f32.vlgmr.msra.gmra.mxu0 %vm1217_vm1, %v7017_v18 }
 0x914   :  { %v3979_v27 = vpop.f32.mrf.mxu0 }
 0x915   :  { %7044 = vmatprep.mubr.msk.f32.mxu0 %vm1217_vm1, %v3979_v27 }
 0x916   :  { %v7023_v44 = vpop.f32.mrf.mxu0  ;;  %7045 = vmatmul.mubr.msk.f32.gmra.mxu0 %vm1217_vm1, %v7020_v42 }
 0x918   :  { %v3989_v22 = vpop.f32.mrf.mxu0 }
 0x919   :  { %7047 = vmatprep.mubr.msk.f32.mxu0 %vm1217_vm1, %v3989_v22 }
 0x91a   :  { %v7026_v51 = vpop.f32.mrf.mxu0  ;;  %7048 = vmatmul.mubr.msk.f32.gmra.mxu0 %vm1217_vm1, %v7023_v44 }
 0x91c   :  { %v3999_v0 = vpop.f32.mrf.mxu0 }
 0x91d   :  { %7050 = vmatprep.mubr.msk.f32.mxu0 %vm1217_vm1, %v3999_v0 }
 0x91e   :  { %v7029_v14 = vpop.f32.mrf.mxu0  ;;  %7051 = vmatmul.mubr.msk.f32.gmra.mxu0 %vm1217_vm1, %v7026_v51 }
 0x920   :  { %v4009_v31 = vpop.f32.mrf.mxu0 }
 0x921   :  { %7053 = vmatprep.mubr.msk.f32.mxu0 %vm1217_vm1, %v4009_v31  ;;  %v4282_v31 = vld [vmem:[%s10718_s2 + $0x28] sm:$0xff] }
 0x922   :  { %v7032_v11 = vpop.f32.mrf.mxu0  ;;  %7054 = vmatmul.mubr.msk.f32.gmra.mxu0 %vm1217_vm1, %v7029_v14  ;;  %v4281_v14 = vld [vmem:[%s10718_s2 + $0x20] sm:$0xff] }
 0x924   :  { %v4019_v61 = vpop.f32.mrf.mxu0 }
 0x925   :  { %7056 = vmatprep.mubr.msk.f32.mxu0 %vm1217_vm1, %v4019_v61  ;;  %v4284_v61 = vld [vmem:[%s10718_s2 + $0x38] sm:$0xff] }
 0x926   :  { %v7035_v41 = vpop.f32.mrf.mxu0  ;;  %7057 = vmatmul.mubr.msk.f32.gmra.mxu0 %vm1217_vm1, %v7032_v11  ;;  %v4283_v11 = vld [vmem:[%s10718_s2 + $0x30] sm:$0xff] }
 0x928   :  { %v4029_v21 = vpop.f32.mrf.mxu0 }
 0x929   :  { %7059 = vmatprep.mubr.msk.f32.mxu0 %vm1217_vm1, %v4029_v21  ;;  %v4286_v21 = vld [vmem:[%s10718_s2 + $0x48] sm:$0xff] }
 0x92a   :  { %v7038_v43 = vpop.f32.mrf.mxu0  ;;  %7060 = vmatmul.mubr.msk.f32.gmra.mxu0 %vm1217_vm1, %v7035_v41  ;;  %v4285_v41 = vld [vmem:[%s10718_s2 + $0x40] sm:$0xff] }
 0x92c   :  { %v4039_v4 = vpop.f32.mrf.mxu0 }
 0x92d   :  { %7062 = vmatprep.mubr.msk.f32.mxu0 %vm1217_vm1, %v4039_v4  ;;  %v4288_v4 = vld [vmem:[%s10718_s2 + $0x58] sm:$0xff] }
 0x92e   :  { %7063 = vmatmul.mubr.msk.f32.gmra.mxu0 %vm1217_vm1, %v7038_v43  ;;  %v4287_v43 = vld [vmem:[%s10718_s2 + $0x50] sm:$0xff] }
 0x9d2   :  { %v9915_v32 = vpop.f32.mrf.mxu0 }
 0x9d4   :  { %v9917_v28 = vpop.f32.mrf.mxu0 }
 0x9d6   :  { %v7046_v40 = vpop.f32.mrf.mxu0 }
 0x9d8   :  { %v4172_v52 = vpop.f32.mrf.mxu0 }
 0x9da   :  { %v7049_v33 = vpop.f32.mrf.mxu0 }
 0x9dc   :  { %v4182_v47 = vpop.f32.mrf.mxu0 }
 0x9de   :  { %v7052_v1 = vpop.f32.mrf.mxu0 }
 0x9e0   :  { %v4192_v5 = vpop.f32.mrf.mxu0 }
 0x9e2   :  { %v7055_v3 = vpop.f32.mrf.mxu0 }
 0x9e4   :  { %v4202_v53 = vpop.f32.mrf.mxu0 }
 0x9e6   :  { %v7058_v24 = vpop.f32.mrf.mxu0 }
 0x9e7   :  { %v4252_v57 = vadd.f32 %v7058_v24, %v9882_v6  ;;  %v4248_v6 = vadd.f32 %v7052_v1, %v9868_v34  ;;  %v4244_v34 = vadd.f32 %v7046_v40, %v9852_v56  ;;  %v4292_v40 = vld [vmem:[%s10718_s2 + $0x78] sm:$0xff] }
 0x9e8   :  { %v4212_v8 = vpop.f32.mrf.mxu0 }
 0x9e9   :  { %v4251_v36 = vadd.f32 %v4212_v8, %v9885_v55  ;;  %v4247_v55 = vadd.f32 %v4192_v5, %v9872_v17  ;;  %v4268_v35 = vadd.f32 %v4260_v9, %v4248_v6  ;;  %v4243_v17 = vadd.f32 %v4172_v52, %v9856_v10  ;;  %v4278_v10 = vld [vmem:[%s10718_s2 + $0x8] sm:$0xff] }
 0x9ea   :  { %v7061_v54 = vpop.f32.mrf.mxu0  ;;  %v4264_v22 = vadd.f32 %v4260_v9, %v4244_v34 }
 0x9eb   :  { %v4254_v13 = vadd.f32 %v7061_v54, %v9888_v20  ;;  %v4272_v20 = vadd.f32 %v4260_v9, %v4252_v57  ;;  %v4271_v23 = vadd.f32 %v4260_v9, %v4251_v36  ;;  %v4267_v42 = vadd.f32 %v4260_v9, %v4247_v55 }
 0x9ec   :  { %v4222_v46 = vpop.f32.mrf.mxu0  ;;  %v4263_v51 = vadd.f32 %v4260_v9, %v4243_v17 }
 0x9ed   :  { %v4253_v15 = vadd.f32 %v4222_v46, %v9891_v50  ;;  %v4274_v48 = vadd.f32 %v4260_v9, %v4254_v13  ;;  %v4249_v50 = vadd.f32 %v4202_v53, %v9880_v62  ;;  %v4245_v62 = vadd.f32 %v4182_v47, %v9864_v2 }
 0x9ee   :  { %v7064_v59 = vpop.f32.mrf.mxu0  ;;  %v4241_v2 = vadd.f32 %v9917_v28, %v9848_v26  ;;  %v4280_v26 = vld [vmem:[%s10718_s2 + $0x18] sm:$0xff]  ;;  %v4291_v28 = vld [vmem:[%s10718_s2 + $0x70] sm:$0xff] }
 0x9ef   :  { %v4256_v7 = vadd.f32 %v7064_v59, %v3468_v29  ;;  %v4273_v58 = vadd.f32 %v4260_v9, %v4253_v15  ;;  %v4250_v29 = vadd.f32 %v7055_v3, %v9876_v16  ;;  %v4269_v18 = vadd.f32 %v4260_v9, %v4249_v50 }
 0x9f0   :  { %v4232_v38 = vpop.f32.mrf.mxu0  ;;  %v4246_v16 = vadd.f32 %v7049_v33, %v9860_v25  ;;  %v4265_v44 = vadd.f32 %v4260_v9, %v4245_v62  ;;  %v4242_v25 = vadd.f32 %v9915_v32, %v9844_v45  ;;  %v4261_v0 = vadd.f32 %v4260_v9, %v4241_v2  ;;  %v4279_v45 = vld [vmem:[%s10718_s2 + $0x10] sm:$0xff]  ;;  %v4290_v32 = vld [vmem:[%s10718_s2 + $0x68] sm:$0xff] }
 0x9f1   :  { %v4276_v63 = vadd.f32 %v4260_v9, %v4256_v7  ;;  %v4255_v19 = vadd.f32 %v4232_v38, %v3467_v37  ;;  %v4270_v37 = vadd.f32 %v4260_v9, %v4250_v29 }
 0x9f2   :  { %v4266_v27 = vadd.f32 %v4260_v9, %v4246_v16  ;;  %v4262_v56 = vadd.f32 %v4260_v9, %v4242_v25 }
 0x9f3   :  { %v4275_v39 = vadd.f32 %v4260_v9, %v4255_v19  ;;  %7065 = vmatprep.subr.mxu1 %v4276_v63 }
 0x9f4   :  { %7066 = vmatpush3.msra.mxu1 %v4276_v63 }
 0x9f5   :  { %7067 = vmatprep.subr.mxu1 %v4275_v39 }
 0x9f6   :  { %7068 = vmatpush3.msra.mxu1 %v4275_v39 }
 0x9f7   :  { %7069 = vmatprep.subr.mxu1 %v4274_v48 }
 0x9f8   :  { %7070 = vmatpush3.msra.mxu1 %v4274_v48 }
 0x9f9   :  { %7071 = vmatprep.subr.mxu1 %v4273_v58 }
 0x9fa   :  { %7072 = vmatpush3.msra.mxu1 %v4273_v58 }
 0x9fb   :  { %7073 = vmatprep.subr.mxu1 %v4272_v20 }
 0x9fc   :  { %7074 = vmatpush3.msra.mxu1 %v4272_v20 }
 0x9fd   :  { %7075 = vmatprep.subr.mxu1 %v4271_v23 }
 0x9fe   :  { %7076 = vmatpush3.msra.mxu1 %v4271_v23 }
 0x9ff   :  { %7077 = vmatprep.subr.mxu1 %v4270_v37 }
 0xa00   :  { %7078 = vmatpush3.msra.mxu1 %v4270_v37 }
 0xa01   :  { %7079 = vmatprep.subr.mxu1 %v4269_v18 }
 0xa02   :  { %7080 = vmatpush3.msra.mxu1 %v4269_v18  ;;  %v4706_v18 = vld [vmem:[%s10719_s9 + $0x18] sm:$0xff] }
 0xa03   :  { %7081 = vmatprep.subr.mxu1 %v4268_v35  ;;  %7121 = vmatprep.subr.mxu0 %v4706_v18 }
 0xa04   :  { %7082 = vmatpush3.msra.mxu1 %v4268_v35  ;;  %7122 = vmatpush3.msra.mxu0 %v4706_v18 }
 0xa05   :  { %7083 = vmatprep.subr.mxu1 %v4267_v42 }
 0xa06   :  { %7084 = vmatpush3.msra.mxu1 %v4267_v42 }
 0xa07   :  { %7085 = vmatprep.subr.mxu1 %v4266_v27 }
 0xa08   :  { %7086 = vmatpush3.msra.mxu1 %v4266_v27 }
 0xa09   :  { %7087 = vmatprep.subr.mxu1 %v4265_v44 }
 0xa0a   :  { %7088 = vmatpush3.msra.mxu1 %v4265_v44 }
 0xa0b   :  { %7089 = vmatprep.subr.mxu1 %v4264_v22 }
 0xa0c   :  { %7090 = vmatpush3.msra.mxu1 %v4264_v22 }
 0xa0d   :  { %7091 = vmatprep.subr.mxu1 %v4263_v51 }
 0xa0e   :  { %7092 = vmatpush3.msra.mxu1 %v4263_v51 }
 0xa0f   :  { %7093 = vmatprep.subr.mxu1 %v4262_v56 }
 0xa10   :  { %7094 = vmatpush3.msra.mxu1 %v4262_v56 }
 0xa11   :  { %7095 = vmatprep.subr.mxu1 %v4261_v0 }
 0xa12   :  { %7096 = vmatpush3.msra.mxu1 %v4261_v0 }
 0xa13   :  { %7098 = vmatmul.mubr.f32.vlgmr.msra.gmra.mxu1 %v4278_v10 }
 0xa14   :  { %7100 = vmatprep.mubr.f32.mxu1 %v4279_v45 }
 0xa17   :  { %7101 = vmatmul.mubr.f32.gmra.mxu1 %v4280_v26 }
 0xa18   :  { %7103 = vmatprep.mubr.f32.mxu1 %v4281_v14 }
 0xa1b   :  { %7104 = vmatmul.mubr.f32.gmra.mxu1 %v4282_v31 }
 0xa1c   :  { %7106 = vmatprep.mubr.f32.mxu1 %v4283_v11 }
 0xa1f   :  { %7107 = vmatmul.mubr.f32.gmra.mxu1 %v4284_v61 }
 0xa20   :  { %7109 = vmatprep.mubr.f32.mxu1 %v4285_v41 }
 0xa23   :  { %7110 = vmatmul.mubr.f32.gmra.mxu1 %v4286_v21 }
 0xa24   :  { %7112 = vmatprep.mubr.f32.mxu1 %v4287_v43 }
 0xa27   :  { %7113 = vmatmul.mubr.f32.gmra.mxu1 %v4288_v4 }
 0xa28   :  { %7115 = vmatprep.mubr.f32.mxu1 %v4289_v49 }
 0xa2b   :  { %7116 = vmatmul.mubr.f32.gmra.mxu1 %v4290_v32 }
 0xa2c   :  { %7118 = vmatprep.mubr.f32.mxu1 %v4291_v28 }
 0xa2f   :  { %7119 = vmatmul.mubr.f32.gmra.mxu1 %v4292_v40 }
 0xad3   :  { %v7099_v52 = vpop.f32.mrf.mxu1 }
 0xad4   :  { %v4441_v33 = vsel %vm228_vm0, %v7099_v52, 0.0 }
 0xad5   :  { %4442 = vadd.xlane.f32.xlu0 %v4441_v33  ;;  %v4359_v47 = vpop.f32.mrf.mxu1 }
 0xad6   :  { %v4438_v5 = vsel %vm228_vm0, %v4359_v47, 0.0 }
 0xad7   :  { %v7102_v1 = vpop.f32.mrf.mxu1 }
 0xad8   :  { %v4447_v3 = vsel %vm228_vm0, %v7102_v1, 0.0 }
 0xad9   :  { %4439 = vadd.xlane.f32.xlu0 %v4438_v5  ;;  %4448 = vadd.xlane.f32.xlu1 %v4447_v3  ;;  %v4369_v53 = vpop.f32.mrf.mxu1 }
 0xada   :  { %v4444_v8 = vsel %vm228_vm0, %v4369_v53, 0.0 }
 0xadb   :  { %v7105_v24 = vpop.f32.mrf.mxu1 }
 0xadc   :  { %v4453_v54 = vsel %vm228_vm0, %v7105_v24, 0.0 }
 0xadd   :  { %4445 = vadd.xlane.f32.xlu0 %v4444_v8  ;;  %4454 = vadd.xlane.f32.xlu1 %v4453_v54  ;;  %v9992_v30 = vpop.f32.mrf.mxu1 }
 0xade   :  { %v4450_v59 = vsel %vm228_vm0, %v9992_v30, 0.0 }
 0xadf   :  { %v9994_v46 = vpop.f32.mrf.mxu1 }
 0xae0   :  { %v4459_v9 = vsel %vm228_vm0, %v9994_v46, 0.0 }
 0xae1   :  { %4451 = vadd.xlane.f32.xlu0 %v4450_v59  ;;  %4460 = vadd.xlane.f32.xlu1 %v4459_v9  ;;  %v10000_v7 = vpop.f32.mrf.mxu1 }
 0xae2   :  { %v4456_v13 = vsel %vm228_vm0, %v10000_v7, 0.0 }
 0xae3   :  { %v10002_v38 = vpop.f32.mrf.mxu1 }
 0xae4   :  { %v4465_v63 = vsel %vm228_vm0, %v10002_v38, 0.0 }
 0xae5   :  { %4457 = vadd.xlane.f32.xlu0 %v4456_v13  ;;  %4466 = vadd.xlane.f32.xlu1 %v4465_v63  ;;  %v10008_v19 = vpop.f32.mrf.mxu1 }
 0xae6   :  { %v4462_v39 = vsel %vm228_vm0, %v10008_v19, 0.0 }
 0xae7   :  { %v10010_v15 = vpop.f32.mrf.mxu1 }
 0xae8   :  { %v4471_v57 = vsel %vm228_vm0, %v10010_v15, 0.0 }
 0xae9   :  { %4463 = vadd.xlane.f32.xlu0 %v4462_v39  ;;  %4472 = vadd.xlane.f32.xlu1 %v4471_v57  ;;  %v10016_v48 = vpop.f32.mrf.mxu1 }
 0xaea   :  { %v4468_v58 = vsel %vm228_vm0, %v10016_v48, 0.0 }
 0xaeb   :  { %v10018_v36 = vpop.f32.mrf.mxu1 }
 0xaec   :  { %v4477_v29 = vsel %vm228_vm0, %v10018_v36, 0.0 }
 0xaed   :  { %4469 = vadd.xlane.f32.xlu0 %v4468_v58  ;;  %4478 = vadd.xlane.f32.xlu1 %v4477_v29  ;;  %v10024_v20 = vpop.f32.mrf.mxu1 }
 0xaee   :  { %v4474_v23 = vsel %vm228_vm0, %v10024_v20, 0.0 }
 0xaef   :  { %v10026_v50 = vpop.f32.mrf.mxu1 }
 0xaf0   :  { %v4483_v6 = vsel %vm228_vm0, %v10026_v50, 0.0 }
 0xaf1   :  { %4475 = vadd.xlane.f32.xlu0 %v4474_v23  ;;  %4484 = vadd.xlane.f32.xlu1 %v4483_v6  ;;  %v10032_v37 = vpop.f32.mrf.mxu1 }
 0xaf2   :  { %v4480_v55 = vsel %vm228_vm0, %v10032_v37, 0.0 }
 0xaf5   :  { %4481 = vadd.xlane.f32.xlu0 %v4480_v55 }
 0xb5e   :  { %v4443_v16 = vpop.xlane.xlu0 %4442 }
 0xb5f   :  { %v4488_v35 = vmul.f32 0.03125, %v4443_v16 }
 0xb61   :  { %v10039_v62 = vsub.f32 %v7099_v52, %v4488_v35 }
 0xb62   :  { %v4440_v42 = vpop.xlane.xlu0 %4439  ;;  %v4449_v34 = vpop.xlane.xlu1 %4448 }
 0xb63   :  { %v4487_v27 = vmul.f32 0.03125, %v4440_v42  ;;  %v4490_v17 = vmul.f32 0.03125, %v4449_v34  ;;  %v4520_v44 = vmul.f32 %v10039_v62, %v10039_v62 }
 0xb65   :  { %v10043_v25 = vsub.f32 %v4359_v47, %v4487_v27  ;;  %v10045_v22 = vsub.f32 %v7102_v1, %v4490_v17  ;;  %v4538_v2 = vsel %vm228_vm0, %v4520_v44, 0.0 }
 0xb66   :  { %v4446_v51 = vpop.xlane.xlu0 %4445  ;;  %v4455_v56 = vpop.xlane.xlu1 %4454  ;;  %4539 = vadd.xlane.f32.xlu1 %v4538_v2 }
 0xb67   :  { %v4489_v0 = vmul.f32 0.03125, %v4446_v51  ;;  %v4492_v10 = vmul.f32 0.03125, %v4455_v56  ;;  %v4522_v45 = vmul.f32 %v10045_v22, %v10045_v22  ;;  %v4519_v26 = vmul.f32 %v10043_v25, %v10043_v25 }
 0xb69   :  { %v10052_v14 = vsub.f32 %v4369_v53, %v4489_v0  ;;  %v10054_v31 = vsub.f32 %v7105_v24, %v4492_v10  ;;  %v4544_v11 = vsel %vm228_vm0, %v4522_v45, 0.0  ;;  %v4535_v61 = vsel %vm228_vm0, %v4519_v26, 0.0 }
 0xb6a   :  { %v4452_v41 = vpop.xlane.xlu0 %4451  ;;  %v4461_v21 = vpop.xlane.xlu1 %4460  ;;  %4545 = vadd.xlane.f32.xlu1 %v4544_v11  ;;  %4536 = vadd.xlane.f32.xlu0 %v4535_v61 }
 0xb6b   :  { %v4491_v43 = vmul.f32 0.03125, %v4452_v41  ;;  %v4494_v4 = vmul.f32 0.03125, %v4461_v21  ;;  %v4524_v49 = vmul.f32 %v10054_v31, %v10054_v31  ;;  %v4521_v32 = vmul.f32 %v10052_v14, %v10052_v14 }
 0xb6d   :  { %v10063_v28 = vsub.f32 %v9992_v30, %v4491_v43  ;;  %v10066_v40 = vsub.f32 %v9994_v46, %v4494_v4  ;;  %v4550_v52 = vsel %vm228_vm0, %v4524_v49, 0.0  ;;  %v4541_v33 = vsel %vm228_vm0, %v4521_v32, 0.0  ;;  %v4705_v4 = vld [vmem:[%s10719_s9 + $0x10] sm:$0xff]  ;;  %v4703_v49 = vld [vmem:[%s10719_s9] sm:$0xff]  ;;  %v4999_v32 = vld [vmem:[%s10720_s10 + $0x78] sm:$0xff] }
 0xb6e   :  { %v4458_v47 = vpop.xlane.xlu0 %4457  ;;  %v4467_v1 = vpop.xlane.xlu1 %4466  ;;  %4551 = vadd.xlane.f32.xlu1 %v4550_v52  ;;  %4542 = vadd.xlane.f32.xlu0 %v4541_v33  ;;  %v4998_v52 = vld [vmem:[%s10720_s10 + $0x70] sm:$0xff]  ;;  %v4997_v33 = vld [vmem:[%s10720_s10 + $0x68] sm:$0xff] }
 0xb6f   :  { %v4493_v5 = vmul.f32 0.03125, %v4458_v47  ;;  %v4496_v3 = vmul.f32 0.03125, %v4467_v1  ;;  %v4526_v53 = vmul.f32 %v10066_v40, %v10066_v40  ;;  %v4523_v24 = vmul.f32 %v10063_v28, %v10063_v28  ;;  %7123 = vmatprep.subr.mxu0 %v4705_v4  ;;  %7153 = vmatprep.subr.mxu1 %v4999_v32 }
 0xb70   :  { %7124 = vmatpush3.msra.mxu0 %v4705_v4  ;;  %7154 = vmatpush3.msra.mxu1 %v4999_v32 }
 0xb71   :  { %v10075_v8 = vsub.f32 %v10000_v7, %v4493_v5  ;;  %v10078_v54 = vsub.f32 %v10002_v38, %v4496_v3  ;;  %v4556_v30 = vsel %vm228_vm0, %v4526_v53, 0.0  ;;  %v4547_v46 = vsel %vm228_vm0, %v4523_v24, 0.0  ;;  %7155 = vmatprep.subr.mxu1 %v4998_v52 }
 0xb72   :  { %v4464_v59 = vpop.xlane.xlu0 %4463  ;;  %v4473_v9 = vpop.xlane.xlu1 %4472  ;;  %4557 = vadd.xlane.f32.xlu1 %v4556_v30  ;;  %4548 = vadd.xlane.f32.xlu0 %v4547_v46 }
 0xb73   :  { %v4495_v13 = vmul.f32 0.03125, %v4464_v59  ;;  %v4498_v63 = vmul.f32 0.03125, %v4473_v9  ;;  %v4528_v39 = vmul.f32 %v10078_v54, %v10078_v54  ;;  %v4525_v7 = vmul.f32 %v10075_v8, %v10075_v8  ;;  %7156 = vmatpush3.msra.mxu1 %v4998_v52 }
 0xb74   :  { %7157 = vmatprep.subr.mxu1 %v4997_v33 }
 0xb75   :  { %v10087_v57 = vsub.f32 %v10008_v19, %v4495_v13  ;;  %v10090_v38 = vsub.f32 %v10010_v15, %v4498_v63  ;;  %v4562_v58 = vsel %vm228_vm0, %v4528_v39, 0.0  ;;  %v4553_v29 = vsel %vm228_vm0, %v4525_v7, 0.0  ;;  %7158 = vmatpush3.msra.mxu1 %v4997_v33 }
 0xb76   :  { %v4470_v23 = vpop.xlane.xlu0 %4469  ;;  %v4479_v6 = vpop.xlane.xlu1 %4478  ;;  %4563 = vadd.xlane.f32.xlu1 %v4562_v58  ;;  %4554 = vadd.xlane.f32.xlu0 %v4553_v29 }
 0xb77   :  { %v4497_v55 = vmul.f32 0.03125, %v4470_v23  ;;  %v4500_v18 = vmul.f32 0.03125, %v4479_v6  ;;  %v4530_v16 = vmul.f32 %v10090_v38, %v10090_v38  ;;  %v4527_v19 = vmul.f32 %v10087_v57, %v10087_v57 }
 0xb78   :  { %v4649_v6 = vsub.s32 4, %v10949_v60 }
 0xb79   :  { %v10099_v35 = vsub.f32 %v10016_v48, %v4497_v55  ;;  %v10102_v15 = vsub.f32 %v10018_v36, %v4500_v18  ;;  %v4568_v42 = vsel %vm228_vm0, %v4530_v16, 0.0  ;;  %v4559_v34 = vsel %vm228_vm0, %v4527_v19, 0.0 }
 0xb7a   :  { %v4476_v27 = vpop.xlane.xlu0 %4475  ;;  %4569 = vadd.xlane.f32.xlu1 %v4568_v42  ;;  %v4485_v17 = vpop.xlane.xlu1 %4484  ;;  %4560 = vadd.xlane.f32.xlu0 %v4559_v34  ;;  %v4669_v42 = vsub.s32 5, %v10949_v60 }
 0xb7b   :  { %v4499_v44 = vmul.f32 0.03125, %v4476_v27  ;;  %v4502_v2 = vmul.f32 0.03125, %v4485_v17  ;;  %v4532_v51 = vmul.f32 %v10102_v15, %v10102_v15  ;;  %v4529_v48 = vmul.f32 %v10099_v35, %v10099_v35 }
 0xb7c   :  { %v10151_v17 = vrot.slane %v9923_v12, %v4649_v6 }
 0xb7d   :  { %v10111_v56 = vsub.f32 %v10024_v20, %v4499_v44  ;;  %v10114_v36 = vsub.f32 %v10026_v50, %v4502_v2  ;;  %v4574_v0 = vsel %vm228_vm0, %v4532_v51, 0.0  ;;  %v4565_v10 = vsel %vm228_vm0, %v4529_v48, 0.0 }
 0xb7e   :  { %4575 = vadd.xlane.f32.xlu1 %v4574_v0  ;;  %4566 = vadd.xlane.f32.xlu0 %v4565_v10  ;;  %v4482_v45 = vpop.xlane.xlu0 %4481 }
 0xb7f   :  { %v4501_v26 = vmul.f32 0.03125, %v4482_v45  ;;  %v4534_v11 = vmul.f32 %v10114_v36, %v10114_v36  ;;  %v4531_v61 = vmul.f32 %v10111_v56, %v10111_v56  ;;  %v10155_v45 = vrot.slane %v9923_v12, %v4669_v42 }
 0xb81   :  { %v10123_v20 = vsub.f32 %v10032_v37, %v4501_v26  ;;  %v4580_v50 = vsel %vm228_vm0, %v4534_v11, 0.0  ;;  %v4571_v41 = vsel %vm228_vm0, %v4531_v61, 0.0  ;;  %v4704_v37 = vld [vmem:[%s10719_s9 + $0x8] sm:$0xff] }
 0xb82   :  { %4581 = vadd.xlane.f32.xlu1 %v4580_v50  ;;  %4572 = vadd.xlane.f32.xlu0 %v4571_v41 }
 0xb83   :  { %v4533_v21 = vmul.f32 %v10123_v20, %v10123_v20  ;;  %7125 = vmatprep.subr.mxu0 %v4704_v37 }
 0xb84   :  { %7126 = vmatpush3.msra.mxu0 %v4704_v37 }
 0xb85   :  { %v4577_v43 = vsel %vm228_vm0, %v4533_v21, 0.0  ;;  %7127 = vmatprep.subr.mxu0 %v4703_v49 }
 0xb86   :  { %4578 = vadd.xlane.f32.xlu0 %v4577_v43  ;;  %7128 = vmatpush3.msra.mxu0 %v4703_v49 }
 0xbef   :  { %v4540_v47 = vpop.xlane.xlu1 %4539 }
 0xbf0   :  { %v4584_v1 = vmul.f32 0.03125, %v4540_v47 }
 0xbf2   :  { %v4600_v5 = vadd.f32 1e-05, %v4584_v1 }
 0xbf3   :  { %v4546_v3 = vpop.xlane.xlu1 %4545  ;;  %v4537_v53 = vpop.xlane.xlu0 %4536 }
 0xbf4   :  { %7564 = vrsqrt.f32 %v4600_v5  ;;  %v4586_v24 = vmul.f32 0.03125, %v4546_v3  ;;  %v4583_v30 = vmul.f32 0.03125, %v4537_v53 }
 0xbf6   :  { %v4602_v46 = vadd.f32 1e-05, %v4586_v24  ;;  %v4599_v59 = vadd.f32 1e-05, %v4583_v30 }
 0xbf7   :  { %v4552_v9 = vpop.xlane.xlu1 %4551  ;;  %v4543_v13 = vpop.xlane.xlu0 %4542 }
 0xbf8   :  { %7566 = vrsqrt.f32 %v4602_v46  ;;  %v4588_v63 = vmul.f32 0.03125, %v4552_v9  ;;  %v4585_v39 = vmul.f32 0.03125, %v4543_v13  ;;  %v7661_v13 = vld [vmem:[%s10709_s0 + $0x8] sm:$0xff] }
 0xbf9   :  { %7568 = vrsqrt.f32 %v4599_v59 }
 0xbfa   :  { %v4604_v7 = vadd.f32 1e-05, %v4588_v63  ;;  %v4601_v58 = vadd.f32 1e-05, %v4585_v39 }
 0xbfb   :  { %v4558_v29 = vpop.xlane.xlu1 %4557  ;;  %v4549_v23 = vpop.xlane.xlu0 %4548 }
 0xbfc   :  { %7570 = vrsqrt.f32 %v4604_v7  ;;  %v4590_v55 = vmul.f32 0.03125, %v4558_v29  ;;  %v4587_v18 = vmul.f32 0.03125, %v4549_v23 }
 0xbfd   :  { %7572 = vrsqrt.f32 %v4601_v58 }
 0xbfe   :  { %v4606_v16 = vadd.f32 1e-05, %v4590_v55  ;;  %v4603_v19 = vadd.f32 1e-05, %v4587_v18 }
 0xbff   :  { %v4564_v34 = vpop.xlane.xlu1 %4563  ;;  %v4555_v27 = vpop.xlane.xlu0 %4554 }
 0xc00   :  { %7574 = vrsqrt.f32 %v4606_v16  ;;  %v4592_v44 = vmul.f32 0.03125, %v4564_v34  ;;  %v4589_v2 = vmul.f32 0.03125, %v4555_v27 }
 0xc01   :  { %v7565_v51 = vpop.eup %7564  ;;  %7576 = vrsqrt.f32 %v4603_v19 }
 0xc02   :  { %v4632_v48 = vmul.f32 %v7565_v51, %v10039_v62  ;;  %v4608_v0 = vadd.f32 1e-05, %v4592_v44  ;;  %v4605_v10 = vadd.f32 1e-05, %v4589_v2 }
 0xc03   :  { %v4570_v26 = vpop.xlane.xlu1 %4569  ;;  %v4561_v11 = vpop.xlane.xlu0 %4560 }
 0xc04   :  { %v4652_v61 = vmul.f32 %v10151_v17, %v4632_v48  ;;  %7578 = vrsqrt.f32 %v4608_v0  ;;  %v4594_v50 = vmul.f32 0.03125, %v4570_v26  ;;  %v4591_v41 = vmul.f32 0.03125, %v4561_v11  ;;  %v7664_v48 = vld [vmem:[%s10709_s0 + $0x18] sm:$0xff] }
 0xc05   :  { %v7567_v21 = vpop.eup %7566  ;;  %7580 = vrsqrt.f32 %v4605_v10 }
 0xc06   :  { %v7569_v43 = vpop.eup %7568  ;;  %v4634_v4 = vmul.f32 %v7567_v21, %v10045_v22  ;;  %v4610_v37 = vadd.f32 1e-05, %v4594_v50  ;;  %v4607_v49 = vadd.f32 1e-05, %v4591_v41  ;;  %v4672_v12 = vadd.f32 %v10155_v45, %v4652_v61 }
 0xc07   :  { %v4576_v62 = vpop.xlane.xlu1 %4575  ;;  %v4567_v32 = vpop.xlane.xlu0 %4566  ;;  %v4631_v52 = vmul.f32 %v7569_v43, %v10043_v25 }
 0xc08   :  { %7582 = vrsqrt.f32 %v4610_v37  ;;  %v4596_v33 = vmul.f32 0.03125, %v4576_v62  ;;  %v4593_v47 = vmul.f32 0.03125, %v4567_v32  ;;  %v4654_v3 = vmul.f32 %v10151_v17, %v4634_v4 }
 0xc09   :  { %v7571_v1 = vpop.eup %7570  ;;  %7584 = vrsqrt.f32 %v4607_v49  ;;  %v4651_v5 = vmul.f32 %v10151_v17, %v4631_v52  ;;  %v10169_v63 = vadd.f32 %v7661_v13, %v4672_v12 }
 0xc0a   :  { %v7573_v53 = vpop.eup %7572  ;;  %v4636_v22 = vmul.f32 %v7571_v1, %v10054_v31  ;;  %v4612_v24 = vadd.f32 1e-05, %v4596_v33  ;;  %v4609_v30 = vadd.f32 1e-05, %v4593_v47  ;;  %v7662_v31 = vld [vmem:[%s10709_s0] sm:$0xff]  ;;  %v7667_v1 = vld [vmem:[%s10709_s0 + $0x30] sm:$0xff] }
 0xc0b   :  { %v4582_v46 = vpop.xlane.xlu1 %4581  ;;  %v4573_v59 = vpop.xlane.xlu0 %4572  ;;  %v4671_v25 = vadd.f32 %v10155_v45, %v4651_v5  ;;  %v4633_v9 = vmul.f32 %v7573_v53, %v10052_v14  ;;  %v4674_v14 = vadd.f32 %v10155_v45, %v4654_v3 }
 0xc0c   :  { %7586 = vrsqrt.f32 %v4612_v24  ;;  %v4598_v39 = vmul.f32 0.03125, %v4582_v46  ;;  %v4595_v7 = vmul.f32 0.03125, %v4573_v59  ;;  %v4656_v19 = vmul.f32 %v10151_v17, %v4636_v22  ;;  %v7668_v24 = vld [vmem:[%s10709_s0 + $0x38] sm:$0xff] }
 0xc0d   :  { %v7575_v58 = vpop.eup %7574  ;;  %7588 = vrsqrt.f32 %v4609_v30  ;;  %v10174_v29 = vadd.f32 %v7662_v31, %v4671_v25  ;;  %v4653_v23 = vmul.f32 %v10151_v17, %v4633_v9  ;;  %v10194_v0 = vadd.f32 %v7664_v48, %v4674_v14  ;;  %v7669_v9 = vld [vmem:[%s10709_s0 + $0x40] sm:$0xff]  ;;  %v7670_v31 = vld [vmem:[%s10709_s0 + $0x48] sm:$0xff] }
 0xc0e   :  { %v7577_v6 = vpop.eup %7576  ;;  %v4638_v55 = vmul.f32 %v7575_v58, %v10066_v40  ;;  %v4614_v18 = vadd.f32 1e-05, %v4598_v39  ;;  %v4611_v16 = vadd.f32 1e-05, %v4595_v7  ;;  %v7663_v40 = vld [vmem:[%s10709_s0 + $0x10] sm:$0xff]  ;;  %v4676_v61 = vadd.f32 %v10155_v45, %v4656_v19  ;;  %v7673_v48 = vld [vmem:[%s10709_s0 + $0x60] sm:$0xff] }
 0xc0f   :  { %7129 = vmatprep.mubr.msk.f32.mxu0 %vm228_vm0, %v10174_v29  ;;  %v4579_v42 = vpop.xlane.xlu0 %4578  ;;  %v4673_v34 = vadd.f32 %v10155_v45, %v4653_v23  ;;  %v4635_v27 = vmul.f32 %v7577_v6, %v10063_v28 }
 0xc10   :  { %7590 = vrsqrt.f32 %v4614_v18  ;;  %7130 = vmatmul.mubr.msk.f32.vlgmr.msra.gmra.mxu0 %vm228_vm0, %v10169_v63  ;;  %v4597_v44 = vmul.f32 0.03125, %v4579_v42  ;;  %v4658_v50 = vmul.f32 %v10151_v17, %v4638_v55  ;;  %v7671_v18 = vld [vmem:[%s10709_s0 + $0x50] sm:$0xff]  ;;  %v7672_v42 = vld [vmem:[%s10709_s0 + $0x58] sm:$0xff] }
 0xc11   :  { %v7579_v2 = vpop.eup %7578  ;;  %7592 = vrsqrt.f32 %v4611_v16  ;;  %v10189_v51 = vadd.f32 %v7663_v40, %v4673_v34  ;;  %v4655_v28 = vmul.f32 %v10151_v17, %v4635_v27 }
 0xc12   :  { %v7581_v10 = vpop.eup %7580  ;;  %v4640_v26 = vmul.f32 %v7579_v2, %v10078_v54  ;;  %v4613_v11 = vadd.f32 1e-05, %v4597_v44  ;;  %v7665_v54 = vld [vmem:[%s10709_s0 + $0x20] sm:$0xff]  ;;  %v4678_v52 = vadd.f32 %v10155_v45, %v4658_v50  ;;  %v7676_v50 = vld [vmem:[%s10709_s0 + $0x78] sm:$0xff] }
 0xc13   :  { %7132 = vmatprep.mubr.msk.f32.mxu0 %vm228_vm0, %v10189_v51  ;;  %v4675_v41 = vadd.f32 %v10155_v45, %v4655_v28  ;;  %v4637_v21 = vmul.f32 %v7581_v10, %v10075_v8  ;;  %v7666_v8 = vld [vmem:[%s10709_s0 + $0x28] sm:$0xff] }
 0xc14   :  { %7594 = vrsqrt.f32 %v4613_v11  ;;  %7133 = vmatmul.mubr.msk.f32.gmra.mxu0 %vm228_vm0, %v10194_v0  ;;  %v10216_v32 = vadd.f32 %v7666_v8, %v4676_v61  ;;  %v4660_v12 = vmul.f32 %v10151_v17, %v4640_v26  ;;  %v4989_v8 = vld [vmem:[%s10720_s10 + $0x28] sm:$0xff] }
 0xc15   :  { %v7583_v43 = vpop.eup %7582  ;;  %v10209_v4 = vadd.f32 %v7665_v54, %v4675_v41  ;;  %v4657_v37 = vmul.f32 %v10151_v17, %v4637_v21  ;;  %v4996_v41 = vld [vmem:[%s10720_s10 + $0x60] sm:$0xff]  ;;  %v4995_v21 = vld [vmem:[%s10720_s10 + $0x58] sm:$0xff]  ;;  %v4993_v54 = vld [vmem:[%s10720_s10 + $0x48] sm:$0xff] }
 0xc16   :  { %v7585_v49 = vpop.eup %7584  ;;  %v4642_v62 = vmul.f32 %v7583_v43, %v10090_v38  ;;  %v4680_v30 = vadd.f32 %v10155_v45, %v4660_v12  ;;  %7159 = vmatprep.subr.mxu1 %v4996_v41  ;;  %v4994_v43 = vld [vmem:[%s10720_s10 + $0x50] sm:$0xff]  ;;  %v4987_v12 = vld [vmem:[%s10720_s10 + $0x18] sm:$0xff] }
 0xc17   :  { %7135 = vmatprep.mubr.msk.f32.mxu0 %vm228_vm0, %v10209_v4  ;;  %v4677_v33 = vadd.f32 %v10155_v45, %v4657_v37  ;;  %v4639_v47 = vmul.f32 %v7585_v49, %v10087_v57  ;;  %v10236_v57 = vadd.f32 %v7668_v24, %v4678_v52  ;;  %7160 = vmatpush3.msra.mxu1 %v4996_v41  ;;  %v4992_v37 = vld [vmem:[%s10720_s10 + $0x40] sm:$0xff]  ;;  %v4991_v49 = vld [vmem:[%s10720_s10 + $0x38] sm:$0xff] }
 0xc18   :  { %7136 = vmatmul.mubr.msk.f32.gmra.mxu0 %vm228_vm0, %v10216_v32  ;;  %v4662_v46 = vmul.f32 %v10151_v17, %v4642_v62  ;;  %7161 = vmatprep.subr.mxu1 %v4995_v21  ;;  %v4990_v62 = vld [vmem:[%s10720_s10 + $0x30] sm:$0xff]  ;;  %v4988_v52 = vld [vmem:[%s10720_s10 + $0x20] sm:$0xff] }
 0xc19   :  { %v7587_v38 = vpop.eup %7586  ;;  %v10229_v5 = vadd.f32 %v7667_v1, %v4677_v33  ;;  %v4659_v3 = vmul.f32 %v10151_v17, %v4639_v47  ;;  %7162 = vmatpush3.msra.mxu1 %v4995_v21  ;;  %v4986_v33 = vld [vmem:[%s10720_s10 + $0x10] sm:$0xff]  ;;  %v4985_v47 = vld [vmem:[%s10720_s10 + $0x8] sm:$0xff] }
 0xc1a   :  { %v7589_v53 = vpop.eup %7588  ;;  %v4644_v22 = vmul.f32 %v7587_v38, %v10102_v15  ;;  %v4682_v23 = vadd.f32 %v10155_v45, %v4662_v46  ;;  %7163 = vmatprep.subr.mxu1 %v4994_v43  ;;  %v4984_v38 = vld [vmem:[%s10720_s10] sm:$0xff]  ;;  %v10358_v1 = vld [vmem:[%s10715_s11 + $0x8] sm:$0x3] }
 0xc1b   :  { %7138 = vmatprep.mubr.msk.f32.mxu0 %vm228_vm0, %v10229_v5  ;;  %v4679_v59 = vadd.f32 %v10155_v45, %v4659_v3  ;;  %v4641_v25 = vmul.f32 %v7589_v53, %v10099_v35  ;;  %v10256_v35 = vadd.f32 %v7670_v31, %v4680_v30  ;;  %7164 = vmatpush3.msra.mxu1 %v4994_v43  ;;  %v10950_v3 = vsub.s32 1, %v10949_v60 }
 0xc1c   :  { %7139 = vmatmul.mubr.msk.f32.gmra.mxu0 %vm228_vm0, %v10236_v57  ;;  %v4664_v14 = vmul.f32 %v10151_v17, %v4644_v22  ;;  %v10275_v34 = vadd.f32 %v7672_v42, %v4682_v23  ;;  %7165 = vmatprep.subr.mxu1 %v4993_v54 }
 0xc1d   :  { %v7591_v15 = vpop.eup %7590  ;;  %v10249_v13 = vadd.f32 %v7669_v9, %v4679_v59  ;;  %v4661_v39 = vmul.f32 %v10151_v17, %v4641_v25  ;;  %7166 = vmatpush3.msra.mxu1 %v4993_v54  ;;  %v10363_v53 = vrot.slane %v10358_v1, %v10950_v3 }
 0xc1e   :  { %v7593_v7 = vpop.eup %7592  ;;  %v4646_v58 = vmul.f32 %v7591_v15, %v10114_v36  ;;  %7167 = vmatprep.subr.mxu1 %v4992_v37 }
 0xc1f   :  { %7141 = vmatprep.mubr.msk.f32.mxu0 %vm228_vm0, %v10249_v13  ;;  %v4681_v6 = vadd.f32 %v10155_v45, %v4661_v39  ;;  %v4643_v55 = vmul.f32 %v7593_v7, %v10111_v56  ;;  %v4684_v56 = vadd.f32 %v10155_v45, %v4664_v14  ;;  %7168 = vmatpush3.msra.mxu1 %v4992_v37 }
 0xc20   :  { %7142 = vmatmul.mubr.msk.f32.gmra.mxu0 %vm228_vm0, %v10256_v35  ;;  %v4666_v44 = vmul.f32 %v10151_v17, %v4646_v58  ;;  %7169 = vmatprep.subr.mxu1 %v4991_v49 }
 0xc21   :  { %v7595_v36 = vpop.eup %7594  ;;  %v10269_v16 = vadd.f32 %v7671_v18, %v4681_v6  ;;  %v4663_v19 = vmul.f32 %v10151_v17, %v4643_v55  ;;  %7170 = vmatpush3.msra.mxu1 %v4991_v49 }
 0xc22   :  { %v4645_v27 = vmul.f32 %v7595_v36, %v10123_v20  ;;  %v7674_v20 = vld [vmem:[%s10709_s0 + $0x68] sm:$0xff]  ;;  %v4686_v11 = vadd.f32 %v10155_v45, %v4666_v44  ;;  %7171 = vmatprep.subr.mxu1 %v4990_v62 }
 0xc23   :  { %7144 = vmatprep.mubr.msk.f32.mxu0 %vm228_vm0, %v10269_v16  ;;  %v4683_v2 = vadd.f32 %v10155_v45, %v4663_v19  ;;  %v10294_v10 = vadd.f32 %v7674_v20, %v4684_v56  ;;  %7172 = vmatpush3.msra.mxu1 %v4990_v62 }
 0xc24   :  { %7145 = vmatmul.mubr.msk.f32.gmra.mxu0 %vm228_vm0, %v10275_v34  ;;  %v4665_v40 = vmul.f32 %v10151_v17, %v4645_v27  ;;  %v7675_v17 = vld [vmem:[%s10709_s0 + $0x70] sm:$0xff]  ;;  %7173 = vmatprep.subr.mxu1 %v4989_v8 }
 0xc25   :  { %v10289_v28 = vadd.f32 %v7673_v48, %v4683_v2  ;;  %7174 = vmatpush3.msra.mxu1 %v4989_v8 }
 0xc26   :  { %v4685_v26 = vadd.f32 %v10155_v45, %v4665_v40  ;;  %v10312_v45 = vadd.f32 %v7676_v50, %v4686_v11  ;;  %7175 = vmatprep.subr.mxu1 %v4988_v52 }
 0xc27   :  { %7147 = vmatprep.mubr.msk.f32.mxu0 %vm228_vm0, %v10289_v28  ;;  %7176 = vmatpush3.msra.mxu1 %v4988_v52 }
 0xc28   :  { %7148 = vmatmul.mubr.msk.f32.gmra.mxu0 %vm228_vm0, %v10294_v10  ;;  %v10305_v61 = vadd.f32 %v7675_v17, %v4685_v26  ;;  %7177 = vmatprep.subr.mxu1 %v4987_v12 }
 0xc29   :  { %7178 = vmatpush3.msra.mxu1 %v4987_v12 }
 0xc2a   :  { %7150 = vmatprep.mubr.msk.f32.mxu0 %vm228_vm0, %v10305_v61  ;;  %7179 = vmatprep.subr.mxu1 %v4986_v33 }
 0xc2b   :  { %7180 = vmatpush3.msra.mxu1 %v4986_v33 }
 0xc2c   :  { %7151 = vmatmul.mubr.msk.f32.gmra.mxu0 %vm228_vm0, %v10312_v45  ;;  %7181 = vmatprep.subr.mxu1 %v4985_v47 }
 0xc2d   :  { %7182 = vmatpush3.msra.mxu1 %v4985_v47 }
 0xc2e   :  { %7183 = vmatprep.subr.mxu1 %v4984_v38 }
 0xc2f   :  { %7184 = vmatpush3.msra.mxu1 %v4984_v38 }
 0xcd0   :  { %v7131_v22 = vpop.f32.mrf.mxu0 }
 0xcd1   :  { %v4831_v24 = vadd.f32 %v7131_v22, %v10363_v53 }
 0xcd2   :  { %v4825_v30 = vpop.f32.mrf.mxu0 }
 0xcd3   :  { %v4921_v46 = vmul.f32 0.70710677, %v4831_v24  ;;  %v4826_v59 = vadd.f32 %v4825_v30, %v10363_v53  ;;  %v4905_v52 = vmul.f32 0.5, %v4831_v24 }
 0xcd4   :  { %v7134_v25 = vpop.f32.mrf.mxu0 }
 0xcd5   :  { %7596 = verf.f32 %v4921_v46  ;;  %v4920_v15 = vmul.f32 0.70710677, %v4826_v59  ;;  %v4841_v9 = vadd.f32 %v7134_v25, %v10363_v53  ;;  %v4904_v49 = vmul.f32 0.5, %v4826_v59 }
 0xcd6   :  { %v4835_v39 = vpop.f32.mrf.mxu0 }
 0xcd7   :  { %7598 = verf.f32 %v4920_v15  ;;  %v4923_v7 = vmul.f32 0.70710677, %v4841_v9  ;;  %v4836_v58 = vadd.f32 %v4835_v39, %v10363_v53 }
 0xcd8   :  { %v7137_v31 = vpop.f32.mrf.mxu0 }
 0xcd9   :  { %7600 = verf.f32 %v4923_v7  ;;  %v4922_v23 = vmul.f32 0.70710677, %v4836_v58  ;;  %v10370_v14 = vadd.f32 %v7137_v31, %v10363_v53  ;;  %v4906_v59 = vmul.f32 0.5, %v4836_v58 }
 0xcda   :  { %v4845_v6 = vpop.f32.mrf.mxu0  ;;  %v4907_v7 = vmul.f32 0.5, %v4841_v9 }
 0xcdb   :  { %7602 = verf.f32 %v4922_v23  ;;  %v4925_v55 = vmul.f32 0.70710677, %v10370_v14  ;;  %v4846_v36 = vadd.f32 %v4845_v6, %v10363_v53 }
 0xcdc   :  { %v7140_v18 = vpop.f32.mrf.mxu0 }
 0xcdd   :  { %7604 = verf.f32 %v4925_v55  ;;  %v4924_v19 = vmul.f32 0.70710677, %v4846_v36  ;;  %v10375_v42 = vadd.f32 %v7140_v18, %v10363_v53 }
 0xcde   :  { %v4855_v56 = vpop.f32.mrf.mxu0 }
 0xcdf   :  { %7606 = verf.f32 %v4924_v19  ;;  %v4927_v27 = vmul.f32 0.70710677, %v10375_v42  ;;  %v4856_v44 = vadd.f32 %v4855_v56, %v10363_v53 }
 0xce0   :  { %v7143_v2 = vpop.f32.mrf.mxu0 }
 0xce1   :  { %7608 = verf.f32 %v4927_v27  ;;  %v4926_v40 = vmul.f32 0.70710677, %v4856_v44  ;;  %v10380_v48 = vadd.f32 %v7143_v2, %v10363_v53 }
 0xce2   :  { %v7597_v20 = vpop.eup %7596  ;;  %v4865_v26 = vpop.f32.mrf.mxu0 }
 0xce3   :  { %7610 = verf.f32 %v4926_v40  ;;  %v4929_v11 = vmul.f32 0.70710677, %v10380_v48  ;;  %v10384_v50 = vadd.f32 %v4865_v26, %v10363_v53  ;;  %v4953_v21 = vadd.f32 1.0, %v7597_v20 }
 0xce4   :  { %v7599_v17 = vpop.eup %7598  ;;  %v7146_v41 = vpop.f32.mrf.mxu0  ;;  %v4908_v40 = vmul.f32 0.5, %v4846_v36  ;;  %v4909_v26 = vmul.f32 0.5, %v10370_v14 }
 0xce5   :  { %7612 = verf.f32 %v4929_v11  ;;  %v10387_v43 = vadd.f32 %v7146_v41, %v10363_v53  ;;  %v4952_v54 = vadd.f32 1.0, %v7599_v17  ;;  %v4928_v62 = vmul.f32 0.70710677, %v10384_v50 }
 0xce6   :  { %v7601_v37 = vpop.eup %7600  ;;  %v4875_v8 = vpop.f32.mrf.mxu0  ;;  %v4969_v22 = vmul.f32 %v4953_v21, %v4905_v52  ;;  %v4910_v41 = vmul.f32 0.5, %v4856_v44  ;;  %v4911_v52 = vmul.f32 0.5, %v10375_v42 }
 0xce7   :  { %v4931_v12 = vmul.f32 0.70710677, %v10387_v43  ;;  %v10392_v33 = vadd.f32 %v4875_v8, %v10363_v53  ;;  %7614 = verf.f32 %v4928_v62  ;;  %v4968_v3 = vmul.f32 %v4952_v54, %v4904_v49 }
 0xce8   :  { %v7603_v47 = vpop.eup %7602  ;;  %v7149_v38 = vpop.f32.mrf.mxu0  ;;  %v4955_v30 = vadd.f32 1.0, %v7601_v37 }
 0xce9   :  { %7616 = verf.f32 %v4931_v12  ;;  %v4930_v46 = vmul.f32 0.70710677, %v10392_v33  ;;  %v10396_v15 = vadd.f32 %v7149_v38, %v10363_v53  ;;  %7185 = vmatprep.mubr.f32.mxu1 %v4968_v3  ;;  %v4954_v39 = vadd.f32 1.0, %v7603_v47 }
 0xcea   :  { %v7605_v25 = vpop.eup %7604  ;;  %v4885_v24 = vpop.f32.mrf.mxu0  ;;  %7186 = vmatmul.mubr.f32.vlgmr.msra.gmra.mxu1 %v4969_v22  ;;  %v4971_v19 = vmul.f32 %v4955_v30, %v4907_v7  ;;  %v4913_v22 = vmul.f32 0.5, %v10380_v48  ;;  %v4914_v42 = vmul.f32 0.5, %v10392_v33  ;;  %v4915_v7 = vmul.f32 0.5, %v10387_v43 }
 0xceb   :  { %7618 = verf.f32 %v4930_v46  ;;  %v4886_v31 = vadd.f32 %v4885_v24, %v10363_v53  ;;  %v4933_v6 = vmul.f32 0.70710677, %v10396_v15  ;;  %v4970_v18 = vmul.f32 %v4954_v39, %v4906_v59 }
 0xcec   :  { %v7607_v23 = vpop.eup %7606  ;;  %v7152_v55 = vpop.f32.mrf.mxu0  ;;  %v4957_v56 = vadd.f32 1.0, %v7605_v25 }
 0xced   :  { %v4932_v27 = vmul.f32 0.70710677, %v4886_v31  ;;  %v4901_v58 = vadd.f32 %v7152_v55, %v10363_v53  ;;  %7620 = verf.f32 %v4933_v6  ;;  %7188 = vmatprep.mubr.f32.mxu1 %v4970_v18  ;;  %v4956_v9 = vadd.f32 1.0, %v7607_v23 }
 0xcee   :  { %v7609_v2 = vpop.eup %7608  ;;  %v4895_v20 = vpop.f32.mrf.mxu0  ;;  %7189 = vmatmul.mubr.f32.gmra.mxu1 %v4971_v19  ;;  %v4973_v37 = vmul.f32 %v4957_v56, %v4909_v26  ;;  %v4916_v18 = vmul.f32 0.5, %v4886_v31  ;;  %v4917_v56 = vmul.f32 0.5, %v10396_v15  ;;  %v10951_v31 = vsub.s32 0, %v10949_v60 }
 0xcef   :  { %7622 = verf.f32 %v4932_v27  ;;  %v4935_v11 = vmul.f32 0.70710677, %v4901_v58  ;;  %v4896_v21 = vadd.f32 %v4895_v20, %v10363_v53  ;;  %v4972_v54 = vmul.f32 %v4956_v9, %v4908_v40 }
 0xcf0   :  { %v7611_v17 = vpop.eup %7610  ;;  %v4959_v49 = vadd.f32 1.0, %v7609_v2  ;;  %v4912_v53 = vmul.f32 0.5, %v10384_v50  ;;  %v4919_v43 = vmul.f32 0.5, %v4901_v58 }
 0xcf1   :  { %7624 = verf.f32 %v4935_v11  ;;  %v4958_v62 = vadd.f32 1.0, %v7611_v17  ;;  %v4934_v36 = vmul.f32 0.70710677, %v4896_v21  ;;  %7191 = vmatprep.mubr.f32.mxu1 %v4972_v54  ;;  %v4918_v20 = vmul.f32 0.5, %v4896_v21 }
 0xcf2   :  { %v7613_v8 = vpop.eup %7612  ;;  %7192 = vmatmul.mubr.f32.gmra.mxu1 %v4973_v37  ;;  %v4975_v47 = vmul.f32 %v4959_v49, %v4911_v52  ;;  %v5003_v17 = vrot.slane %v10358_v1, %v10951_v31 }
 0xcf3   :  { %v4974_v12 = vmul.f32 %v4958_v62, %v4910_v41  ;;  %7626 = verf.f32 %v4934_v36  ;;  %v4961_v38 = vadd.f32 1.0, %v7613_v8 }
 0xcf4   :  { %v7615_v14 = vpop.eup %7614 }
 0xcf5   :  { %7194 = vmatprep.mubr.f32.mxu1 %v4974_v12  ;;  %v4960_v3 = vadd.f32 1.0, %v7615_v14  ;;  %v4977_v25 = vmul.f32 %v4961_v38, %v4913_v22 }
 0xcf6   :  { %v7617_v44 = vpop.eup %7616  ;;  %7195 = vmatmul.mubr.f32.gmra.mxu1 %v4975_v47 }
 0xcf7   :  { %v4976_v46 = vmul.f32 %v4960_v3, %v4912_v53  ;;  %v4963_v59 = vadd.f32 1.0, %v7617_v44 }
 0xcf8   :  { %v7619_v30 = vpop.eup %7618 }
 0xcf9   :  { %v4962_v24 = vadd.f32 1.0, %v7619_v30  ;;  %7197 = vmatprep.mubr.f32.mxu1 %v4976_v46  ;;  %v4979_v55 = vmul.f32 %v4963_v59, %v4915_v7 }
 0xcfa   :  { %v7621_v39 = vpop.eup %7620  ;;  %7198 = vmatmul.mubr.f32.gmra.mxu1 %v4977_v25 }
 0xcfb   :  { %v4978_v23 = vmul.f32 %v4962_v24, %v4914_v42  ;;  %v4965_v50 = vadd.f32 1.0, %v7621_v39 }
 0xcfc   :  { %v7623_v6 = vpop.eup %7622 }
 0xcfd   :  { %7200 = vmatprep.mubr.f32.mxu1 %v4978_v23  ;;  %v4964_v48 = vadd.f32 1.0, %v7623_v6  ;;  %v4981_v33 = vmul.f32 %v4965_v50, %v4917_v56 }
 0xcfe   :  { %v7625_v19 = vpop.eup %7624  ;;  %7201 = vmatmul.mubr.f32.gmra.mxu1 %v4979_v55 }
 0xcff   :  { %v4980_v27 = vmul.f32 %v4964_v48, %v4916_v18  ;;  %v4967_v40 = vadd.f32 1.0, %v7625_v19 }
 0xd00   :  { %v7627_v2 = vpop.eup %7626 }
 0xd01   :  { %7203 = vmatprep.mubr.f32.mxu1 %v4980_v27  ;;  %v4966_v9 = vadd.f32 1.0, %v7627_v2  ;;  %v4983_v11 = vmul.f32 %v4967_v40, %v4919_v43 }
 0xd02   :  { %7204 = vmatmul.mubr.f32.gmra.mxu1 %v4981_v33 }
 0xd03   :  { %v4982_v26 = vmul.f32 %v4966_v9, %v4918_v20 }
 0xd05   :  { %7206 = vmatprep.mubr.f32.mxu1 %v4982_v26 }
 0xd06   :  { %7207 = vmatmul.mubr.f32.gmra.mxu1 %v4983_v11 }
 0xdaa   :  { %v7187_v41 = vpop.f32.mrf.mxu1 }
 0xdab   :  { %v10412_v15 = vadd.f32 %v7187_v41, %v5003_v17 }
 0xdac   :  { %v5070_v54 = vpop.f32.mrf.mxu1 }
 0xdad   :  { %v10414_v37 = vadd.f32 %v5070_v54, %v5003_v17  ;;  %v5152_v21 = vsel %vm228_vm0, %v10412_v15, 0.0 }
 0xdae   :  { %5153 = vadd.xlane.f32.xlu1 %v5152_v21  ;;  %v7190_v58 = vpop.f32.mrf.mxu1 }
 0xdaf   :  { %v10418_v49 = vadd.f32 %v7190_v58, %v5003_v17  ;;  %v5149_v62 = vsel %vm228_vm0, %v10414_v37, 0.0 }
 0xdb0   :  { %5150 = vadd.xlane.f32.xlu0 %v5149_v62  ;;  %v5080_v8 = vpop.f32.mrf.mxu1 }
 0xdb1   :  { %v10422_v36 = vadd.f32 %v5080_v8, %v5003_v17  ;;  %v5158_v1 = vsel %vm228_vm0, %v10418_v49, 0.0 }
 0xdb2   :  { %5159 = vadd.xlane.f32.xlu1 %v5158_v1  ;;  %v7193_v52 = vpop.f32.mrf.mxu1 }
 0xdb3   :  { %v10426_v12 = vadd.f32 %v7193_v52, %v5003_v17  ;;  %v5155_v14 = vsel %vm228_vm0, %v10422_v36, 0.0 }
 0xdb4   :  { %5156 = vadd.xlane.f32.xlu0 %v5155_v14  ;;  %v5090_v47 = vpop.f32.mrf.mxu1 }
 0xdb5   :  { %v10430_v38 = vadd.f32 %v5090_v47, %v5003_v17  ;;  %v5164_v44 = vsel %vm228_vm0, %v10426_v12, 0.0 }
 0xdb6   :  { %5165 = vadd.xlane.f32.xlu1 %v5164_v44  ;;  %v7196_v53 = vpop.f32.mrf.mxu1 }
 0xdb7   :  { %v10434_v3 = vadd.f32 %v7196_v53, %v5003_v17  ;;  %v5161_v22 = vsel %vm228_vm0, %v10430_v38, 0.0 }
 0xdb8   :  { %5162 = vadd.xlane.f32.xlu0 %v5161_v22  ;;  %v5100_v30 = vpop.f32.mrf.mxu1 }
 0xdb9   :  { %v10438_v46 = vadd.f32 %v5100_v30, %v5003_v17  ;;  %v5170_v25 = vsel %vm228_vm0, %v10434_v3, 0.0 }
 0xdba   :  { %5171 = vadd.xlane.f32.xlu1 %v5170_v25  ;;  %v7199_v59 = vpop.f32.mrf.mxu1 }
 0xdbb   :  { %v10442_v42 = vadd.f32 %v7199_v59, %v5003_v17  ;;  %v5167_v24 = vsel %vm228_vm0, %v10438_v46, 0.0 }
 0xdbc   :  { %5168 = vadd.xlane.f32.xlu0 %v5167_v24  ;;  %v5110_v39 = vpop.f32.mrf.mxu1 }
 0xdbd   :  { %v10446_v7 = vadd.f32 %v5110_v39, %v5003_v17  ;;  %v5176_v23 = vsel %vm228_vm0, %v10442_v42, 0.0 }
 0xdbe   :  { %5177 = vadd.xlane.f32.xlu1 %v5176_v23  ;;  %v7202_v6 = vpop.f32.mrf.mxu1 }
 0xdbf   :  { %v10450_v55 = vadd.f32 %v7202_v6, %v5003_v17  ;;  %v5173_v50 = vsel %vm228_vm0, %v10446_v7, 0.0 }
 0xdc0   :  { %5174 = vadd.xlane.f32.xlu0 %v5173_v50  ;;  %v5120_v18 = vpop.f32.mrf.mxu1 }
 0xdc1   :  { %v10454_v48 = vadd.f32 %v5120_v18, %v5003_v17  ;;  %v5182_v19 = vsel %vm228_vm0, %v10450_v55, 0.0 }
 0xdc2   :  { %5183 = vadd.xlane.f32.xlu1 %v5182_v19  ;;  %v7205_v56 = vpop.f32.mrf.mxu1 }
 0xdc3   :  { %v10458_v27 = vadd.f32 %v7205_v56, %v5003_v17  ;;  %v5179_v2 = vsel %vm228_vm0, %v10454_v48, 0.0 }
 0xdc4   :  { %5180 = vadd.xlane.f32.xlu0 %v5179_v2  ;;  %v5130_v33 = vpop.f32.mrf.mxu1 }
 0xdc5   :  { %v10462_v40 = vadd.f32 %v5130_v33, %v5003_v17  ;;  %v5188_v20 = vsel %vm228_vm0, %v10458_v27, 0.0 }
 0xdc6   :  { %5189 = vadd.xlane.f32.xlu1 %v5188_v20  ;;  %v7208_v9 = vpop.f32.mrf.mxu1 }
 0xdc7   :  { %v10466_v43 = vadd.f32 %v7208_v9, %v5003_v17  ;;  %v5185_v26 = vsel %vm228_vm0, %v10462_v40, 0.0 }
 0xdc8   :  { %5186 = vadd.xlane.f32.xlu0 %v5185_v26  ;;  %v5140_v11 = vpop.f32.mrf.mxu1 }
 0xdc9   :  { %v10470_v31 = vadd.f32 %v5140_v11, %v5003_v17  ;;  %v5194_v41 = vsel %vm228_vm0, %v10466_v43, 0.0 }
 0xdca   :  { %5195 = vadd.xlane.f32.xlu1 %v5194_v41 }
 0xdcb   :  { %v5191_v54 = vsel %vm228_vm0, %v10470_v31, 0.0 }
 0xdcc   :  { %5192 = vadd.xlane.f32.xlu0 %v5191_v54 }
 0xe37   :  { %v5154_v21 = vpop.xlane.xlu1 %5153 }
 0xe38   :  { %v5198_v58 = vmul.f32 0.03125, %v5154_v21 }
 0xe39   :  { %v5151_v62 = vpop.xlane.xlu0 %5150 }
 0xe3a   :  { %v10477_v8 = vsub.f32 %v10412_v15, %v5198_v58  ;;  %v5197_v1 = vmul.f32 0.03125, %v5151_v62 }
 0xe3b   :  { %v5160_v52 = vpop.xlane.xlu1 %5159 }
 0xe3c   :  { %v10480_v14 = vsub.f32 %v10414_v37, %v5197_v1  ;;  %v5200_v17 = vmul.f32 0.03125, %v5160_v52  ;;  %v5230_v47 = vmul.f32 %v10477_v8, %v10477_v8 }
 0xe3d   :  { %v5157_v44 = vpop.xlane.xlu0 %5156 }
 0xe3e   :  { %v10485_v53 = vsub.f32 %v10418_v49, %v5200_v17  ;;  %v5199_v22 = vmul.f32 0.03125, %v5157_v44  ;;  %v5248_v30 = vsel %vm228_vm0, %v5230_v47, 0.0  ;;  %v5229_v15 = vmul.f32 %v10480_v14, %v10480_v14 }
 0xe3f   :  { %v5166_v25 = vpop.xlane.xlu1 %5165  ;;  %5249 = vadd.xlane.f32.xlu1 %v5248_v30 }
 0xe40   :  { %v10491_v59 = vsub.f32 %v10422_v36, %v5199_v22  ;;  %v5202_v37 = vmul.f32 0.03125, %v5166_v25  ;;  %v5245_v24 = vsel %vm228_vm0, %v5229_v15, 0.0  ;;  %v5232_v39 = vmul.f32 %v10485_v53, %v10485_v53 }
 0xe41   :  { %5246 = vadd.xlane.f32.xlu0 %v5245_v24  ;;  %v5163_v49 = vpop.xlane.xlu0 %5162 }
 0xe42   :  { %v10497_v23 = vsub.f32 %v10426_v12, %v5202_v37  ;;  %v5201_v6 = vmul.f32 0.03125, %v5163_v49  ;;  %v5254_v50 = vsel %vm228_vm0, %v5232_v39, 0.0  ;;  %v5231_v18 = vmul.f32 %v10491_v59, %v10491_v59 }
 0xe43   :  { %v5172_v19 = vpop.xlane.xlu1 %5171  ;;  %5255 = vadd.xlane.f32.xlu1 %v5254_v50 }
 0xe44   :  { %v10503_v36 = vsub.f32 %v10430_v38, %v5201_v6  ;;  %v5204_v56 = vmul.f32 0.03125, %v5172_v19  ;;  %v5251_v2 = vsel %vm228_vm0, %v5231_v18, 0.0  ;;  %v5234_v33 = vmul.f32 %v10497_v23, %v10497_v23 }
 0xe45   :  { %5252 = vadd.xlane.f32.xlu0 %v5251_v2  ;;  %v5169_v12 = vpop.xlane.xlu0 %5168 }
 0xe46   :  { %v10509_v20 = vsub.f32 %v10434_v3, %v5204_v56  ;;  %v5203_v9 = vmul.f32 0.03125, %v5169_v12  ;;  %v5260_v26 = vsel %vm228_vm0, %v5234_v33, 0.0  ;;  %v5233_v11 = vmul.f32 %v10503_v36, %v10503_v36 }
 0xe47   :  { %v5178_v41 = vpop.xlane.xlu1 %5177  ;;  %5261 = vadd.xlane.f32.xlu1 %v5260_v26 }
 0xe48   :  { %v10515_v38 = vsub.f32 %v10438_v46, %v5203_v9  ;;  %v5206_v54 = vmul.f32 0.03125, %v5178_v41  ;;  %v5257_v21 = vsel %vm228_vm0, %v5233_v11, 0.0  ;;  %v5236_v58 = vmul.f32 %v10509_v20, %v10509_v20 }
 0xe49   :  { %5258 = vadd.xlane.f32.xlu0 %v5257_v21  ;;  %v5175_v3 = vpop.xlane.xlu0 %5174 }
 0xe4a   :  { %v10521_v62 = vsub.f32 %v10442_v42, %v5206_v54  ;;  %v5205_v1 = vmul.f32 0.03125, %v5175_v3  ;;  %v5266_v52 = vsel %vm228_vm0, %v5236_v58, 0.0  ;;  %v5235_v17 = vmul.f32 %v10515_v38, %v10515_v38 }
 0xe4b   :  { %v5184_v47 = vpop.xlane.xlu1 %5183  ;;  %5267 = vadd.xlane.f32.xlu1 %v5266_v52 }
 0xe4c   :  { %v10527_v46 = vsub.f32 %v10446_v7, %v5205_v1  ;;  %v5208_v44 = vmul.f32 0.03125, %v5184_v47  ;;  %v5263_v22 = vsel %vm228_vm0, %v5235_v17, 0.0  ;;  %v5238_v30 = vmul.f32 %v10521_v62, %v10521_v62 }
 0xe4d   :  { %5264 = vadd.xlane.f32.xlu0 %v5263_v22  ;;  %v5181_v42 = vpop.xlane.xlu0 %5180 }
 0xe4e   :  { %v10533_v15 = vsub.f32 %v10450_v55, %v5208_v44  ;;  %v5207_v25 = vmul.f32 0.03125, %v5181_v42  ;;  %v5272_v37 = vsel %vm228_vm0, %v5238_v30, 0.0  ;;  %v5237_v24 = vmul.f32 %v10527_v46, %v10527_v46 }
 0xe4f   :  { %v5190_v39 = vpop.xlane.xlu1 %5189  ;;  %5273 = vadd.xlane.f32.xlu1 %v5272_v37 }
 0xe50   :  { %v10539_v7 = vsub.f32 %v10454_v48, %v5207_v25  ;;  %v5210_v49 = vmul.f32 0.03125, %v5190_v39  ;;  %v5269_v6 = vsel %vm228_vm0, %v5237_v24, 0.0  ;;  %v5240_v50 = vmul.f32 %v10533_v15, %v10533_v15 }
 0xe51   :  { %5270 = vadd.xlane.f32.xlu0 %v5269_v6  ;;  %v5187_v55 = vpop.xlane.xlu0 %5186 }
 0xe52   :  { %v10545_v18 = vsub.f32 %v10458_v27, %v5210_v49  ;;  %v5209_v19 = vmul.f32 0.03125, %v5187_v55  ;;  %v5278_v56 = vsel %vm228_vm0, %v5240_v50, 0.0  ;;  %v5239_v2 = vmul.f32 %v10539_v7, %v10539_v7 }
 0xe53   :  { %5279 = vadd.xlane.f32.xlu1 %v5278_v56  ;;  %v5196_v48 = vpop.xlane.xlu1 %5195 }
 0xe54   :  { %v10551_v33 = vsub.f32 %v10462_v40, %v5209_v19  ;;  %v5212_v12 = vmul.f32 0.03125, %v5196_v48  ;;  %v5275_v9 = vsel %vm228_vm0, %v5239_v2, 0.0  ;;  %v5242_v26 = vmul.f32 %v10545_v18, %v10545_v18 }
 0xe55   :  { %5276 = vadd.xlane.f32.xlu0 %v5275_v9  ;;  %v5193_v27 = vpop.xlane.xlu0 %5192  ;;  %v5359_v48 = vsub.s32 6, %v10949_v60 }
 0xe56   :  { %v10557_v11 = vsub.f32 %v10466_v43, %v5212_v12  ;;  %v5211_v41 = vmul.f32 0.03125, %v5193_v27  ;;  %v5284_v54 = vsel %vm228_vm0, %v5242_v26, 0.0  ;;  %v5241_v21 = vmul.f32 %v10551_v33, %v10551_v33 }
 0xe57   :  { %5285 = vadd.xlane.f32.xlu1 %v5284_v54  ;;  %v5379_v26 = vsub.s32 7, %v10949_v60 }
 0xe58   :  { %v10563_v40 = vsub.f32 %v10470_v31, %v5211_v41  ;;  %v5281_v58 = vsel %vm228_vm0, %v5241_v21, 0.0  ;;  %v5244_v3 = vmul.f32 %v10557_v11, %v10557_v11 }
 0xe59   :  { %5282 = vadd.xlane.f32.xlu0 %v5281_v58  ;;  %v7677_v58 = vld [vmem:[%s10715_s11] sm:$0xff] }
 0xe5a   :  { %v5290_v1 = vsel %vm228_vm0, %v5244_v3, 0.0  ;;  %v5243_v43 = vmul.f32 %v10563_v40, %v10563_v40  ;;  %v10577_v3 = vrot.slane %v7677_v58, %v5359_v48 }
 0xe5b   :  { %5291 = vadd.xlane.f32.xlu1 %v5290_v1 }
 0xe5c   :  { %v5287_v52 = vsel %vm228_vm0, %v5243_v43, 0.0 }
 0xe5d   :  { %5288 = vadd.xlane.f32.xlu0 %v5287_v52 }
 0xec8   :  { %v5250_v17 = vpop.xlane.xlu1 %5249 }
 0xec9   :  { %v5294_v47 = vmul.f32 0.03125, %v5250_v17  ;;  %v10579_v17 = vrot.slane %v7677_v58, %v5379_v26 }
 0xeca   :  { %v5247_v44 = vpop.xlane.xlu0 %5246 }
 0xecb   :  { %v5310_v31 = vadd.f32 1e-05, %v5294_v47  ;;  %v5293_v22 = vmul.f32 0.03125, %v5247_v44 }
 0xecc   :  { %v5256_v30 = vpop.xlane.xlu1 %5255 }
 0xecd   :  { %7628 = vrsqrt.f32 %v5310_v31  ;;  %v5309_v42 = vadd.f32 1e-05, %v5293_v22  ;;  %v5296_v25 = vmul.f32 0.03125, %v5256_v30 }
 0xece   :  { %v5253_v37 = vpop.xlane.xlu0 %5252 }
 0xecf   :  { %7630 = vrsqrt.f32 %v5309_v42  ;;  %v5312_v24 = vadd.f32 1e-05, %v5296_v25  ;;  %v5295_v39 = vmul.f32 0.03125, %v5253_v37 }
 0xed0   :  { %v5262_v49 = vpop.xlane.xlu1 %5261 }
 0xed1   :  { %7632 = vrsqrt.f32 %v5312_v24  ;;  %v5311_v6 = vadd.f32 1e-05, %v5295_v39  ;;  %v5298_v50 = vmul.f32 0.03125, %v5262_v49 }
 0xed2   :  { %v5259_v55 = vpop.xlane.xlu0 %5258 }
 0xed3   :  { %7634 = vrsqrt.f32 %v5311_v6  ;;  %v5314_v19 = vadd.f32 1e-05, %v5298_v50  ;;  %v5297_v56 = vmul.f32 0.03125, %v5259_v55 }
 0xed4   :  { %v5268_v2 = vpop.xlane.xlu1 %5267 }
 0xed5   :  { %7636 = vrsqrt.f32 %v5314_v19  ;;  %v5313_v12 = vadd.f32 1e-05, %v5297_v56  ;;  %v5300_v9 = vmul.f32 0.03125, %v5268_v2 }
 0xed6   :  { %v5265_v27 = vpop.xlane.xlu0 %5264 }
 0xed7   :  { %7638 = vrsqrt.f32 %v5313_v12  ;;  %v5316_v41 = vadd.f32 1e-05, %v5300_v9  ;;  %v5299_v54 = vmul.f32 0.03125, %v5265_v27 }
 0xed8   :  { %v5274_v21 = vpop.xlane.xlu1 %5273 }
 0xed9   :  { %7640 = vrsqrt.f32 %v5316_v41  ;;  %v5315_v1 = vadd.f32 1e-05, %v5299_v54  ;;  %v5302_v43 = vmul.f32 0.03125, %v5274_v21 }
 0xeda   :  { %v7629_v52 = vpop.eup %7628  ;;  %v5271_v47 = vpop.xlane.xlu0 %5270 }
 0xedb   :  { %v5342_v60 = vmul.f32 %v7629_v52, %v10477_v8  ;;  %7642 = vrsqrt.f32 %v5315_v1  ;;  %v5318_v44 = vadd.f32 1e-05, %v5302_v43  ;;  %v5301_v31 = vmul.f32 0.03125, %v5271_v47 }
 0xedc   :  { %v7631_v22 = vpop.eup %7630  ;;  %v5280_v30 = vpop.xlane.xlu1 %5279 }
 0xedd   :  { %v5362_v42 = vmul.f32 %v10577_v3, %v5342_v60  ;;  %v5341_v25 = vmul.f32 %v7631_v22, %v10480_v14  ;;  %7644 = vrsqrt.f32 %v5318_v44  ;;  %v5317_v37 = vadd.f32 1e-05, %v5301_v31 }
 0xede   :  { %v7633_v24 = vpop.eup %7632  ;;  %v5304_v39 = vmul.f32 0.03125, %v5280_v30  ;;  %v5277_v49 = vpop.xlane.xlu0 %5276 }
 0xedf   :  { %v5382_v6 = vadd.f32 %v10579_v17, %v5362_v42  ;;  %v5361_v50 = vmul.f32 %v10577_v3, %v5341_v25  ;;  %v5344_v8 = vmul.f32 %v7633_v24, %v10485_v53  ;;  %7646 = vrsqrt.f32 %v5317_v37 }
 0xee0   :  { %v7635_v55 = vpop.eup %7634  ;;  %v5320_v19 = vadd.f32 1e-05, %v5304_v39  ;;  %v5303_v56 = vmul.f32 0.03125, %v5277_v49  ;;  %v5286_v2 = vpop.xlane.xlu1 %5285 }
 0xee1   :  { %v5398_v48 = vadd.f32 %v5382_v6, %v10169_v63  ;;  %v5381_v14 = vadd.f32 %v10579_v17, %v5361_v50  ;;  %v5364_v12 = vmul.f32 %v10577_v3, %v5344_v8  ;;  %v5343_v9 = vmul.f32 %v7635_v55, %v10491_v59 }
 0xee2   :  { %v7637_v26 = vpop.eup %7636  ;;  %7648 = vrsqrt.f32 %v5320_v19  ;;  %v5319_v27 = vadd.f32 1e-05, %v5303_v56  ;;  %v5306_v41 = vmul.f32 0.03125, %v5286_v2  ;;  %v5283_v54 = vpop.xlane.xlu0 %5282 }
 0xee3   :  { %5414 = vst.msk [vmem:[%s10721_s12 + $0x8] sm:$0xff] %vm228_vm0, %v5398_v48  ;;  %v5397_v53 = vadd.f32 %v5381_v14, %v10174_v29  ;;  %v5384_v63 = vadd.f32 %v10579_v17, %v5364_v12  ;;  %v5363_v21 = vmul.f32 %v10577_v3, %v5343_v9  ;;  %v5346_v58 = vmul.f32 %v7637_v26, %v10497_v23 }
 0xee4   :  { %v7639_v1 = vpop.eup %7638  ;;  %7650 = vrsqrt.f32 %v5319_v27  ;;  %v5322_v59 = vadd.f32 1e-05, %v5306_v41  ;;  %v5305_v43 = vmul.f32 0.03125, %v5283_v54  ;;  %v5292_v52 = vpop.xlane.xlu1 %5291 }
 0xee5   :  { %5413 = vst.msk [vmem:[%s10721_s12] sm:$0xff] %vm228_vm0, %v5397_v53  ;;  %v5400_v47 = vadd.f32 %v5384_v63, %v10194_v0  ;;  %v5383_v29 = vadd.f32 %v10579_v17, %v5363_v21  ;;  %v5366_v60 = vmul.f32 %v10577_v3, %v5346_v58  ;;  %v5345_v44 = vmul.f32 %v7639_v1, %v10503_v36 }
 0xee6   :  { %v7641_v31 = vpop.eup %7640  ;;  %7652 = vrsqrt.f32 %v5322_v59  ;;  %v5321_v23 = vadd.f32 1e-05, %v5305_v43  ;;  %v5308_v22 = vmul.f32 0.03125, %v5292_v52  ;;  %v5289_v30 = vpop.xlane.xlu0 %5288 }
 0xee7   :  { %5416 = vst.msk [vmem:[%s10721_s12 + $0x18] sm:$0xff] %vm228_vm0, %v5400_v47  ;;  %v5399_v42 = vadd.f32 %v5383_v29, %v10189_v51  ;;  %v5386_v0 = vadd.f32 %v10579_v17, %v5366_v60  ;;  %v5365_v25 = vmul.f32 %v10577_v3, %v5345_v44  ;;  %v5348_v37 = vmul.f32 %v7641_v31, %v10509_v20 }
 0xee8   :  { %v7643_v24 = vpop.eup %7642  ;;  %7654 = vrsqrt.f32 %v5321_v23  ;;  %v5324_v36 = vadd.f32 1e-05, %v5308_v22  ;;  %v5307_v39 = vmul.f32 0.03125, %v5289_v30 }
 0xee9   :  { %5415 = vst.msk [vmem:[%s10721_s12 + $0x10] sm:$0xff] %vm228_vm0, %v5399_v42  ;;  %v5402_v49 = vadd.f32 %v5386_v0, %v10216_v32  ;;  %v5385_v6 = vadd.f32 %v10579_v17, %v5365_v25  ;;  %v5368_v51 = vmul.f32 %v10577_v3, %v5348_v37  ;;  %v5347_v50 = vmul.f32 %v7643_v24, %v10515_v38 }
 0xeea   :  { %v7645_v8 = vpop.eup %7644  ;;  %7656 = vrsqrt.f32 %v5324_v36  ;;  %v5323_v20 = vadd.f32 1e-05, %v5307_v39 }
 0xeeb   :  { %5418 = vst.msk [vmem:[%s10721_s12 + $0x28] sm:$0xff] %vm228_vm0, %v5402_v49  ;;  %v5401_v55 = vadd.f32 %v5385_v6, %v10209_v4  ;;  %v5388_v19 = vadd.f32 %v10579_v17, %v5368_v51  ;;  %v5367_v32 = vmul.f32 %v10577_v3, %v5347_v50  ;;  %v5350_v56 = vmul.f32 %v7645_v8, %v10521_v62 }
 0xeec   :  { %v7647_v2 = vpop.eup %7646  ;;  %7658 = vrsqrt.f32 %v5323_v20 }
 0xeed   :  { %5417 = vst.msk [vmem:[%s10721_s12 + $0x20] sm:$0xff] %vm228_vm0, %v5401_v55  ;;  %v5404_v38 = vadd.f32 %v5388_v19, %v10236_v57  ;;  %v5387_v48 = vadd.f32 %v10579_v17, %v5367_v32  ;;  %v5370_v14 = vmul.f32 %v10577_v3, %v5350_v56  ;;  %v5349_v4 = vmul.f32 %v7647_v2, %v10527_v46 }
 0xeef   :  { %v7649_v12 = vpop.eup %7648  ;;  %5420 = vst.msk [vmem:[%s10721_s12 + $0x38] sm:$0xff] %vm228_vm0, %v5404_v38  ;;  %v5403_v62 = vadd.f32 %v5387_v48, %v10229_v5  ;;  %v5390_v9 = vadd.f32 %v10579_v17, %v5370_v14  ;;  %v5369_v26 = vmul.f32 %v10577_v3, %v5349_v4 }
 0xef0   :  { %v5352_v57 = vmul.f32 %v7649_v12, %v10533_v15 }
 0xef1   :  { %v7651_v27 = vpop.eup %7650  ;;  %5419 = vst.msk [vmem:[%s10721_s12 + $0x30] sm:$0xff] %vm228_vm0, %v5403_v62  ;;  %v5406_v46 = vadd.f32 %v5390_v9, %v10256_v35  ;;  %v5389_v41 = vadd.f32 %v10579_v17, %v5369_v26 }
 0xef2   :  { %v5372_v54 = vmul.f32 %v10577_v3, %v5352_v57  ;;  %v5351_v5 = vmul.f32 %v7651_v27, %v10539_v7 }
 0xef3   :  { %v7653_v53 = vpop.eup %7652  ;;  %5422 = vst.msk [vmem:[%s10721_s12 + $0x48] sm:$0xff] %vm228_vm0, %v5406_v46  ;;  %v5405_v15 = vadd.f32 %v5389_v41, %v10249_v13 }
 0xef4   :  { %v5392_v63 = vadd.f32 %v10579_v17, %v5372_v54  ;;  %v5371_v21 = vmul.f32 %v10577_v3, %v5351_v5  ;;  %v5354_v35 = vmul.f32 %v7653_v53, %v10545_v18 }
 0xef5   :  { %v7655_v58 = vpop.eup %7654  ;;  %5421 = vst.msk [vmem:[%s10721_s12 + $0x40] sm:$0xff] %vm228_vm0, %v5405_v15 }
 0xef6   :  { %v5408_v7 = vadd.f32 %v5392_v63, %v10275_v34  ;;  %v5391_v1 = vadd.f32 %v10579_v17, %v5371_v21  ;;  %v5374_v59 = vmul.f32 %v10577_v3, %v5354_v35  ;;  %v5353_v13 = vmul.f32 %v7655_v58, %v10551_v33 }
 0xef7   :  { %v7657_v43 = vpop.eup %7656 }
 0xef8   :  { %5424 = vst.msk [vmem:[%s10721_s12 + $0x58] sm:$0xff] %vm228_vm0, %v5408_v7  ;;  %v5407_v18 = vadd.f32 %v5391_v1, %v10269_v16  ;;  %v5394_v52 = vadd.f32 %v10579_v17, %v5374_v59  ;;  %v5373_v47 = vmul.f32 %v10577_v3, %v5353_v13  ;;  %v5356_v34 = vmul.f32 %v7657_v43, %v10557_v11 }
 0xef9   :  { %v7659_v29 = vpop.eup %7658 }
 0xefa   :  { %5423 = vst.msk [vmem:[%s10721_s12 + $0x50] sm:$0xff] %vm228_vm0, %v5407_v18  ;;  %v5410_v33 = vadd.f32 %v5394_v52, %v10294_v10  ;;  %v5393_v60 = vadd.f32 %v10579_v17, %v5373_v47  ;;  %v5376_v44 = vmul.f32 %v10577_v3, %v5356_v34  ;;  %v5355_v16 = vmul.f32 %v7659_v29, %v10563_v40 }
 0xefc   :  { %5426 = vst.msk [vmem:[%s10721_s12 + $0x68] sm:$0xff] %vm228_vm0, %v5410_v33  ;;  %v5409_v11 = vadd.f32 %v5393_v60, %v10289_v28  ;;  %v5396_v31 = vadd.f32 %v10579_v17, %v5376_v44  ;;  %v5375_v23 = vmul.f32 %v10577_v3, %v5355_v16 }
 0xefe   :  { %5425 = vst.msk [vmem:[%s10721_s12 + $0x60] sm:$0xff] %vm228_vm0, %v5409_v11  ;;  %v5412_v10 = vadd.f32 %v5396_v31, %v10312_v45  ;;  %v5395_v40 = vadd.f32 %v10579_v17, %v5375_v23 }
 0xf00   :  { %5428 = vst.msk [vmem:[%s10721_s12 + $0x78] sm:$0xff] %vm228_vm0, %v5412_v10  ;;  %v5411_v28 = vadd.f32 %v5395_v40, %v10305_v61 }
 0xf02   :  { %5427 = vst.msk [vmem:[%s10721_s12 + $0x70] sm:$0xff] %vm228_vm0, %v5411_v28 }

</bundles_post_ra>
